<compile_context>
chip_gen: v5e
topology: v5e:2x2
jax: 0.10.0
libtpu: 0.0.40
codegen_flags: <defaults>
</compile_context>

<pallas_src>
import numpy as np

import jax
import jax.numpy as jnp
from jax import lax
from jax.experimental import pallas as pl
from jax.experimental.pallas import tpu as pltpu

H = 8            # hidden size
G = 4 * H        # gates per layer
INPUT = 1

LANE = 128
SUB = 8

T_CHUNK_MAX = 256   # multiple of 8
TB_MAX = 256        # batch lanes per block (multiple of 128)


def _round_up(x, m):
    return ((x + m - 1) // m) * m


def _vmem_bytes(t_chunk, tb):
    """Double-buffered VMEM footprint, including sublane/lane padding."""
    x_b = 2 * t_chunk * SUB * tb * 4          # (Tc, 1->8, TB) f32, double-buffered
    w_b = 2 * G * LANE * 4                    # (32, 29->128) param slab
    o_b = 2 * SUB * tb * 4                    # (1->8, TB) output block
    s_b = 2 * (2 * H) * tb * 4                # two (2H, TB) scratch buffers
    return x_b + w_b + o_b + s_b


def _plan(B, T):
    """Pick (t_chunk, t_pad, tb, b_pad, vmem_limit) with generation-aware budget."""
    try:
        cap = int(pltpu.get_tpu_info().vmem_capacity_bytes)
    except Exception:
        cap = 64 * 1024 * 1024                # conservative: v7x per-TC VMEM
    budget = min(cap // 2, 48 * 1024 * 1024)

    if T <= T_CHUNK_MAX:
        t_chunk, t_pad = T, T
    else:
        t_chunk = T_CHUNK_MAX
        t_pad = _round_up(T, t_chunk)

    b128 = _round_up(B, LANE)
    tb = min(TB_MAX, b128)
    if b128 >= 2 * LANE:
        # prefer >=2 batch blocks so v7x can shard the "parallel" axis on 2 TCs
        tb = min(tb, (b128 // 2 // LANE) * LANE)
    tb = max(tb, LANE)
    while tb > LANE and _vmem_bytes(t_chunk, tb) > budget:
        tb -= LANE
    b_pad = _round_up(B, tb)

    vmem_limit = int(min(budget, max(2 * _vmem_bytes(t_chunk, tb),
                                     32 * 1024 * 1024)))
    return t_chunk, t_pad, tb, b_pad, vmem_limit


def _make_kernel(t_real, t_chunk, t_pad):
    mask_time = (t_pad != t_real)

    def kernel(x_ref, w_ref, out_ref, hh_sc, cc_sc):
        # x_ref  : (Tc, 1, TB)  raw input, time-major, batch in lanes.
        # w_ref  : (4H, 3H+5)   packed params, gate rows ordered (i, f, o, g):
        #            cols [0:H)      W_hh1
        #            cols [H:3H)     [W_ih2 | W_hh2]  (fused layer-2 weight)
        #            col  3H         w_ih1 column
        #            col  3H+1       b1 = b_ih1 + b_hh1
        #            col  3H+2       b2 = b_ih2 + b_hh2
        #            col  3H+3[:H]   w_lin column
        #            col  3H+4[0]    b_lin
        # out_ref: (1, TB)       lane-dense output.
        # hh_sc  : (2H, TB)      packed [h1 ; h2], persists across time chunks.
        # cc_sc  : (2H, TB)      packed [c1 ; c2].
        tc_id = pl.program_id(1)

        @pl.when(tc_id == 0)
        def _():
            hh_sc[...] = jnp.zeros_like(hh_sc)
            cc_sc[...] = jnp.zeros_like(cc_sc)

        # Hoisted parameter loads (slab block is constant across the grid).
        whh1 = w_ref[:, 0:H]                       # (4H, H)
        w2 = w_ref[:, H:3 * H]                     # (4H, 2H)
        wih1 = w_ref[:, 3 * H:3 * H + 1]           # (4H, 1)
        b1 = w_ref[:, 3 * H + 1:3 * H + 2]         # (4H, 1)
        b2 = w_ref[:, 3 * H + 2:3 * H + 3]         # (4H, 1)

        hi = lax.Precision.HIGHEST

        def step(t, carry):
            xt = x_ref[t]                          # (1, TB)

            # ---- layer 1: outer-product input gate + recurrent dot ----
            h1 = hh_sc[0:H, :]
            c1 = cc_sc[0:H, :]
            g1 = wih1 * xt + b1 + jnp.dot(
                whh1, h1, precision=hi, preferred_element_type=jnp.float32)
            a1 = jax.nn.sigmoid(g1[0:3 * H, :])    # rows: i | f | o
            t1 = jnp.tanh(g1[3 * H:4 * H, :])      # rows: g
            c1n = a1[H:2 * H, :] * c1 + a1[0:H, :] * t1
            h1n = a1[2 * H:3 * H, :] * jnp.tanh(c1n)
            if mask_time:
                valid = (tc_id * t_chunk + t) < t_real
                h1n = jnp.where(valid, h1n, h1)
                c1n = jnp.where(valid, c1n, c1)
            hh_sc[0:H, :] = h1n
            cc_sc[0:H, :] = c1n

            # ---- layer 2: fused dot straight from the packed state scratch ----
            h12 = hh_sc[...]                       # [h1_new ; h2_old]
            h2 = h12[H:2 * H, :]
            c2 = cc_sc[H:2 * H, :]
            g2 = b2 + jnp.dot(
                w2, h12, precision=hi, preferred_element_type=jnp.float32)
            a2 = jax.nn.sigmoid(g2[0:3 * H, :])
            t2 = jnp.tanh(g2[3 * H:4 * H, :])
            c2n = a2[H:2 * H, :] * c2 + a2[0:H, :] * t2
            h2n = a2[2 * H:3 * H, :] * jnp.tanh(c2n)
            if mask_time:
                h2n = jnp.where(valid, h2n, h2)
                c2n = jnp.where(valid, c2n, c2)
            hh_sc[H:2 * H, :] = h2n
            cc_sc[H:2 * H, :] = c2n
            return carry

        unroll = t_chunk if t_chunk <= 8 else 8
        lax.fori_loop(0, t_chunk, step, 0, unroll=unroll)

        # ReLU -> Linear(8,1) -> ReLU on the final h2, only at the last chunk.
        @pl.when(tc_id == pl.num_programs(1) - 1)
        def _():
            wlin = w_ref[0:H, 3 * H + 3:3 * H + 4]     # (H, 1)
            blin = w_ref[0:1, 3 * H + 4:3 * H + 5]     # (1, 1)
            y = jnp.maximum(hh_sc[H:2 * H, :], 0.0)    # (H, TB)
            y = jnp.sum(y * wlin, axis=0, keepdims=True) + blin
            out_ref[...] = jnp.maximum(y, 0.0)

    return kernel


def init_params(key):
    keys = jax.random.split(key, 10)

    def u(k, shape, bound):
        return jax.random.uniform(k, shape, jnp.float32, -bound, bound)

    kb = 1.0 / np.sqrt(H)  # PyTorch default init bound for LSTM and Linear(8,.)
    w_ih1 = u(keys[0], (G, INPUT), kb)
    w_hh1 = u(keys[1], (G, H), kb)
    b_ih1 = u(keys[2], (G,), kb)
    b_hh1 = u(keys[3], (G,), kb)
    w_ih2 = u(keys[4], (G, H), kb)
    w_hh2 = u(keys[5], (G, H), kb)
    b_ih2 = u(keys[6], (G,), kb)
    b_hh2 = u(keys[7], (G,), kb)
    w_lin = u(keys[8], (1, H), kb)
    b_lin = u(keys[9], (1,), kb)

    # Raw PyTorch-layout params (gate order i,f,g,o) for the reference check.
    raw = dict(w_ih1=w_ih1, w_hh1=w_hh1, b1=b_ih1 + b_hh1,
               w_ih2=w_ih2, w_hh2=w_hh2, b2=b_ih2 + b_hh2,
               w_lin=w_lin, b_lin=b_lin)

    # Kernel gate order (i, f, o, g): permute gate ROWS (gates live on sublanes).
    perm = np.concatenate([np.arange(0, H), np.arange(H, 2 * H),
                           np.arange(3 * H, 4 * H), np.arange(2 * H, 3 * H)])

    whh1_p = w_hh1[perm, :]                                        # (4H, H)
    w2_p = jnp.concatenate([w_ih2, w_hh2], axis=1)[perm, :]        # (4H, 2H)
    wih1_col = w_ih1[perm, 0:1]                                    # (4H, 1)
    b1_col = (b_ih1 + b_hh1)[perm][:, None]                        # (4H, 1)
    b2_col = (b_ih2 + b_hh2)[perm][:, None]                        # (4H, 1)
    wlin_col = jnp.zeros((G, 1), jnp.float32).at[:H, 0].set(w_lin[0])
    blin_col = jnp.zeros((G, 1), jnp.float32).at[0, 0].set(b_lin[0])

    # Single resident parameter slab (4H, 3H+5) = (32, 29).
    w_slab = jnp.concatenate(
        [whh1_p, w2_p, wih1_col, b1_col, b2_col, wlin_col, blin_col], axis=1)

    # TODO(synk): nn.BatchNorm1d(49) is declared in __init__ but never used in
    # forward(), so it is intentionally not implemented.
    return raw, dict(w_slab=w_slab)


def lstm_forward(X, kp):
    # X: (B, T, 1) float32, batch_first (matches nn.LSTM(batch_first=True)).
    B, T, _ = X.shape
    x = X[..., 0].astype(jnp.float32).T                    # (T, B) time-major

    t_chunk, t_pad, tb, b_pad, vmem_limit = _plan(B, T)
    x = jnp.pad(x, ((0, t_pad - T), (0, b_pad - B)))
    x = x[:, None, :]                                      # (T_pad, 1, B_pad)

    w_slab = kp["w_slab"]
    nb = b_pad // tb
    nt = t_pad // t_chunk

    out = pl.pallas_call(
        _make_kernel(T, t_chunk, t_pad),
        out_shape=jax.ShapeDtypeStruct((1, b_pad), jnp.float32),
        grid_spec=pltpu.PrefetchScalarGridSpec(
            num_scalar_prefetch=0,
            grid=(nb, nt),
            in_specs=[
                pl.BlockSpec((t_chunk, 1, tb), lambda i, t: (t, 0, i)),   # x
                pl.BlockSpec(w_slab.shape, lambda i, t: (0, 0)),          # params
            ],
            out_specs=pl.BlockSpec((1, tb), lambda i, t: (0, i)),
            scratch_shapes=[
                pltpu.VMEM((2 * H, tb), jnp.float32),   # packed [h1 ; h2]
                pltpu.VMEM((2 * H, tb), jnp.float32),   # packed [c1 ; c2]
            ],
        ),
        compiler_params=pltpu.CompilerParams(
            dimension_semantics=("parallel", "arbitrary"),
            vmem_limit_bytes=vmem_limit,
        ),
    )(x, w_slab)
    return out[0, :B]                                      # squeeze(-1) -> (B,)


def _reference_forward(X, raw):
    """Pure-JAX reference with exact PyTorch LSTM semantics (gate order i,f,g,o)."""
    B, T, _ = X.shape
    x = X[..., 0].astype(jnp.float32)
    hi = lax.Precision.HIGHEST
    wih1_t, whh1_t = raw["w_ih1"].T, raw["w_hh1"].T
    wih2_t, whh2_t = raw["w_ih2"].T, raw["w_hh2"].T

    def cell(xgate, h, c, whh_t, b):
        g = xgate + jnp.dot(h, whh_t, precision=hi) + b[None, :]
        i = jax.nn.sigmoid(g[:, 0:H])
        f = jax.nn.sigmoid(g[:, H:2 * H])
        gg = jnp.tanh(g[:, 2 * H:3 * H])
        o = jax.nn.sigmoid(g[:, 3 * H:4 * H])
        c = f * c + i * gg
        h = o * jnp.tanh(c)
        return h, c

    def step(carry, x_t):
        h1, c1, h2, c2 = carry
        h1, c1 = cell(x_t[:, None] * wih1_t, h1, c1, whh1_t, raw["b1"])
        h2, c2 = cell(jnp.dot(h1, wih2_t, precision=hi), h2, c2, whh2_t, raw["b2"])
        return (h1, c1, h2, c2), None

    z = jnp.zeros((B, H), jnp.float32)
    (_, _, h2, _), _ = lax.scan(step, (z, z, z, z), x.T)
    y = jnp.dot(jnp.maximum(h2, 0.0), raw["w_lin"].T, precision=hi)
    y = jnp.maximum(y + raw["b_lin"][None, :], 0.0)
    return y[:, 0]


if __name__ == "__main__":
    key = jax.random.PRNGKey(0)
    pkey, xkey = jax.random.split(key)
    raw, kp = init_params(pkey)

    B, T = 4, 8
    X = jax.random.normal(xkey, (B, T, 1), dtype=jnp.float32)

    out = jax.block_until_ready(lstm_forward(X, kp))
    ref = jax.block_until_ready(_reference_forward(X, raw))

    assert out.shape == (B,)
    np.testing.assert_allclose(np.asarray(out), np.asarray(ref),
                               rtol=1e-4, atol=1e-5)
    print("KERNEL_OK")
</pallas_src>

<mosaic_0001>
module attributes {stable_mosaic.version = 11 : i64} {
  func.func @kernel(%arg0: i32, %arg1: i32, %arg2: memref<8x1x128xf32, #tpu.memory_space<vmem>>, %arg3: memref<32x29xf32, #tpu.memory_space<vmem>>, %arg4: memref<1x128xf32, #tpu.memory_space<vmem>>, %arg5: memref<16x128xf32, #tpu.memory_space<vmem>>, %arg6: memref<16x128xf32, #tpu.memory_space<vmem>>) attributes {dimension_semantics = [#tpu.dimension_semantics<parallel>, #tpu.dimension_semantics<arbitrary>], iteration_bounds = array<i64: 1, 1>, scalar_prefetch = 0 : i64, scratch_operands = 2 : i64, tpu.core_type = #tpu.core_type<tc>, window_params = [{transform_indices = @transform_0, window_bounds = array<i64: 8, 1, 128>}, {pipeline_mode = #tpu.pipeline_mode<synchronous>, transform_indices = @transform_1, window_bounds = array<i64: 32, 29>}, {transform_indices = @transform_2, window_bounds = array<i64: 1, 128>}]} {
    %c0_i32 = arith.constant 0 : i32
    %0 = arith.cmpi eq, %arg1, %c0_i32 : i32
    %1 = arith.extui %0 : i1 to i32
    %c0_i32_0 = arith.constant 0 : i32
    %2 = arith.cmpi ne, %1, %c0_i32_0 : i32
    scf.if %2 {
      %cst_184 = arith.constant 0.000000e+00 : f32
      %435 = vector.broadcast %cst_184 : f32 to vector<16x128xf32>
      %c0_185 = arith.constant 0 : index
      %c0_186 = arith.constant 0 : index
      %436 = vector.load %arg5[%c0_185, %c0_186] : memref<16x128xf32, #tpu.memory_space<vmem>>, vector<16x128xf32>
      tpu.vector_store %arg5[%c0_185, %c0_186], %435 {strides = array<i32>} : memref<16x128xf32, #tpu.memory_space<vmem>>, vector<16x128xf32>,
      %cst_187 = arith.constant 0.000000e+00 : f32
      %437 = vector.broadcast %cst_187 : f32 to vector<16x128xf32>
      %c0_188 = arith.constant 0 : index
      %c0_189 = arith.constant 0 : index
      %438 = vector.load %arg6[%c0_188, %c0_189] : memref<16x128xf32, #tpu.memory_space<vmem>>, vector<16x128xf32>
      tpu.vector_store %arg6[%c0_188, %c0_189], %437 {strides = array<i32>} : memref<16x128xf32, #tpu.memory_space<vmem>>, vector<16x128xf32>,
    } else {
    }
    %c0 = arith.constant 0 : index
    %c0_1 = arith.constant 0 : index
    %3 = vector.load %arg3[%c0, %c0_1] : memref<32x29xf32, #tpu.memory_space<vmem>>, vector<32x8xf32>
    %c0_2 = arith.constant 0 : index
    %c8 = arith.constant 8 : index
    %4 = vector.load %arg3[%c0_2, %c8] : memref<32x29xf32, #tpu.memory_space<vmem>>, vector<32x16xf32>
    %c0_3 = arith.constant 0 : index
    %c24 = arith.constant 24 : index
    %5 = vector.load %arg3[%c0_3, %c24] : memref<32x29xf32, #tpu.memory_space<vmem>>, vector<32x1xf32>
    %c0_4 = arith.constant 0 : index
    %c25 = arith.constant 25 : index
    %6 = vector.load %arg3[%c0_4, %c25] : memref<32x29xf32, #tpu.memory_space<vmem>>, vector<32x1xf32>
    %c0_5 = arith.constant 0 : index
    %c26 = arith.constant 26 : index
    %7 = vector.load %arg3[%c0_5, %c26] : memref<32x29xf32, #tpu.memory_space<vmem>>, vector<32x1xf32>
    %c0_i32_6 = arith.constant 0 : i32
    %8 = arith.index_cast %c0_i32_6 : i32 to index
    %c0_7 = arith.constant 0 : index
    %c0_8 = arith.constant 0 : index
    %9 = vector.load %arg2[%8, %c0_7, %c0_8] : memref<8x1x128xf32, #tpu.memory_space<vmem>>, vector<1x1x128xf32>
    %10 = vector.shape_cast %9 : vector<1x1x128xf32> to vector<1x128xf32>
    %c0_9 = arith.constant 0 : index
    %c0_10 = arith.constant 0 : index
    %11 = vector.load %arg5[%c0_9, %c0_10] : memref<16x128xf32, #tpu.memory_space<vmem>>, vector<8x128xf32>
    %c0_11 = arith.constant 0 : index
    %c0_12 = arith.constant 0 : index
    %12 = vector.load %arg6[%c0_11, %c0_12] : memref<16x128xf32, #tpu.memory_space<vmem>>, vector<8x128xf32>
    %13 = vector.broadcast %5 : vector<32x1xf32> to vector<32x128xf32>
    %14 = vector.broadcast %10 : vector<1x128xf32> to vector<32x128xf32>
    %15 = arith.mulf %13, %14 : vector<32x128xf32>
    %16 = vector.broadcast %6 : vector<32x1xf32> to vector<32x128xf32>
    %17 = arith.addf %15, %16 : vector<32x128xf32>
    %cst = arith.constant dense<0.000000e+00> : vector<32x128xf32>
    %18 = tpu.matmul %3, %11, %cst {dimension_numbers = #tpu.dot_dimension_numbers<[1], [0], [0], [1], [0, 0, 1, 1], [], []>, precision = #tpu.contract_precision<fp32>} : vector<32x8xf32>, vector<8x128xf32>, vector<32x128xf32> -> vector<32x128xf32>
    %19 = arith.addf %17, %18 : vector<32x128xf32>
    %20 = vector.extract_strided_slice %19 {offsets = [0, 0], sizes = [24, 128], strides = [1, 1]} : vector<32x128xf32> to vector<24x128xf32>
    %21 = arith.negf %20 : vector<24x128xf32>
    %22 = math.exp %21 : vector<24x128xf32>
    %cst_13 = arith.constant 1.000000e+00 : f32
    %23 = vector.broadcast %cst_13 : f32 to vector<24x128xf32>
    %24 = arith.addf %23, %22 : vector<24x128xf32>
    %25 = arith.divf %23, %24 : vector<24x128xf32>
    %26 = vector.extract_strided_slice %19 {offsets = [24, 0], sizes = [8, 128], strides = [1, 1]} : vector<32x128xf32> to vector<8x128xf32>
    %27 = math.tanh %26 : vector<8x128xf32>
    %28 = vector.extract_strided_slice %25 {offsets = [8, 0], sizes = [8, 128], strides = [1, 1]} : vector<24x128xf32> to vector<8x128xf32>
    %29 = arith.mulf %28, %12 : vector<8x128xf32>
    %30 = vector.extract_strided_slice %25 {offsets = [0, 0], sizes = [8, 128], strides = [1, 1]} : vector<24x128xf32> to vector<8x128xf32>
    %31 = arith.mulf %30, %27 : vector<8x128xf32>
    %32 = arith.addf %29, %31 : vector<8x128xf32>
    %33 = vector.extract_strided_slice %25 {offsets = [16, 0], sizes = [8, 128], strides = [1, 1]} : vector<24x128xf32> to vector<8x128xf32>
    %34 = math.tanh %32 : vector<8x128xf32>
    %35 = arith.mulf %33, %34 : vector<8x128xf32>
    %c0_14 = arith.constant 0 : index
    %c0_15 = arith.constant 0 : index
    %36 = vector.load %arg5[%c0_14, %c0_15] : memref<16x128xf32, #tpu.memory_space<vmem>>, vector<8x128xf32>
    tpu.vector_store %arg5[%c0_14, %c0_15], %35 {strides = array<i32>} : memref<16x128xf32, #tpu.memory_space<vmem>>, vector<8x128xf32>,
    %c0_16 = arith.constant 0 : index
    %c0_17 = arith.constant 0 : index
    %37 = vector.load %arg6[%c0_16, %c0_17] : memref<16x128xf32, #tpu.memory_space<vmem>>, vector<8x128xf32>
    tpu.vector_store %arg6[%c0_16, %c0_17], %32 {strides = array<i32>} : memref<16x128xf32, #tpu.memory_space<vmem>>, vector<8x128xf32>,
    %c0_18 = arith.constant 0 : index
    %c0_19 = arith.constant 0 : index
    %38 = vector.load %arg5[%c0_18, %c0_19] : memref<16x128xf32, #tpu.memory_space<vmem>>, vector<16x128xf32>
    %c8_20 = arith.constant 8 : index
    %c0_21 = arith.constant 0 : index
    %39 = vector.load %arg6[%c8_20, %c0_21] : memref<16x128xf32, #tpu.memory_space<vmem>>, vector<8x128xf32>
    %cst_22 = arith.constant dense<0.000000e+00> : vector<32x128xf32>
    %40 = tpu.matmul %4, %38, %cst_22 {dimension_numbers = #tpu.dot_dimension_numbers<[1], [0], [0], [1], [0, 0, 1, 1], [], []>, precision = #tpu.contract_precision<fp32>} : vector<32x16xf32>, vector<16x128xf32>, vector<32x128xf32> -> vector<32x128xf32>
    %41 = vector.broadcast %7 : vector<32x1xf32> to vector<32x128xf32>
    %42 = arith.addf %41, %40 : vector<32x128xf32>
    %43 = vector.extract_strided_slice %42 {offsets = [0, 0], sizes = [24, 128], strides = [1, 1]} : vector<32x128xf32> to vector<24x128xf32>
    %44 = arith.negf %43 : vector<24x128xf32>
    %45 = math.exp %44 : vector<24x128xf32>
    %cst_23 = arith.constant 1.000000e+00 : f32
    %46 = vector.broadcast %cst_23 : f32 to vector<24x128xf32>
    %47 = arith.addf %46, %45 : vector<24x128xf32>
    %48 = arith.divf %46, %47 : vector<24x128xf32>
    %49 = vector.extract_strided_slice %42 {offsets = [24, 0], sizes = [8, 128], strides = [1, 1]} : vector<32x128xf32> to vector<8x128xf32>
    %50 = math.tanh %49 : vector<8x128xf32>
    %51 = vector.extract_strided_slice %48 {offsets = [8, 0], sizes = [8, 128], strides = [1, 1]} : vector<24x128xf32> to vector<8x128xf32>
    %52 = arith.mulf %51, %39 : vector<8x128xf32>
    %53 = vector.extract_strided_slice %48 {offsets = [0, 0], sizes = [8, 128], strides = [1, 1]} : vector<24x128xf32> to vector<8x128xf32>
    %54 = arith.mulf %53, %50 : vector<8x128xf32>
    %55 = arith.addf %52, %54 : vector<8x128xf32>
    %56 = vector.extract_strided_slice %48 {offsets = [16, 0], sizes = [8, 128], strides = [1, 1]} : vector<24x128xf32> to vector<8x128xf32>
    %57 = math.tanh %55 : vector<8x128xf32>
    %58 = arith.mulf %56, %57 : vector<8x128xf32>
    %c8_24 = arith.constant 8 : index
    %c0_25 = arith.constant 0 : index
    %59 = vector.load %arg5[%c8_24, %c0_25] : memref<16x128xf32, #tpu.memory_space<vmem>>, vector<8x128xf32>
    tpu.vector_store %arg5[%c8_24, %c0_25], %58 {strides = array<i32>} : memref<16x128xf32, #tpu.memory_space<vmem>>, vector<8x128xf32>,
    %c8_26 = arith.constant 8 : index
    %c0_27 = arith.constant 0 : index
    %60 = vector.load %arg6[%c8_26, %c0_27] : memref<16x128xf32, #tpu.memory_space<vmem>>, vector<8x128xf32>
    tpu.vector_store %arg6[%c8_26, %c0_27], %55 {strides = array<i32>} : memref<16x128xf32, #tpu.memory_space<vmem>>, vector<8x128xf32>,
    %c1_i32 = arith.constant 1 : i32
    %61 = arith.index_cast %c1_i32 : i32 to index
    %c0_28 = arith.constant 0 : index
    %c0_29 = arith.constant 0 : index
    %62 = vector.load %arg2[%61, %c0_28, %c0_29] : memref<8x1x128xf32, #tpu.memory_space<vmem>>, vector<1x1x128xf32>
    %63 = vector.shape_cast %62 : vector<1x1x128xf32> to vector<1x128xf32>
    %c0_30 = arith.constant 0 : index
    %c0_31 = arith.constant 0 : index
    %64 = vector.load %arg5[%c0_30, %c0_31] : memref<16x128xf32, #tpu.memory_space<vmem>>, vector<8x128xf32>
    %c0_32 = arith.constant 0 : index
    %c0_33 = arith.constant 0 : index
    %65 = vector.load %arg6[%c0_32, %c0_33] : memref<16x128xf32, #tpu.memory_space<vmem>>, vector<8x128xf32>
    %66 = vector.broadcast %5 : vector<32x1xf32> to vector<32x128xf32>
    %67 = vector.broadcast %63 : vector<1x128xf32> to vector<32x128xf32>
    %68 = arith.mulf %66, %67 : vector<32x128xf32>
    %69 = vector.broadcast %6 : vector<32x1xf32> to vector<32x128xf32>
    %70 = arith.addf %68, %69 : vector<32x128xf32>
    %cst_34 = arith.constant dense<0.000000e+00> : vector<32x128xf32>
    %71 = tpu.matmul %3, %64, %cst_34 {dimension_numbers = #tpu.dot_dimension_numbers<[1], [0], [0], [1], [0, 0, 1, 1], [], []>, precision = #tpu.contract_precision<fp32>} : vector<32x8xf32>, vector<8x128xf32>, vector<32x128xf32> -> vector<32x128xf32>
    %72 = arith.addf %70, %71 : vector<32x128xf32>
    %73 = vector.extract_strided_slice %72 {offsets = [0, 0], sizes = [24, 128], strides = [1, 1]} : vector<32x128xf32> to vector<24x128xf32>
    %74 = arith.negf %73 : vector<24x128xf32>
    %75 = math.exp %74 : vector<24x128xf32>
    %cst_35 = arith.constant 1.000000e+00 : f32
    %76 = vector.broadcast %cst_35 : f32 to vector<24x128xf32>
    %77 = arith.addf %76, %75 : vector<24x128xf32>
    %78 = arith.divf %76, %77 : vector<24x128xf32>
    %79 = vector.extract_strided_slice %72 {offsets = [24, 0], sizes = [8, 128], strides = [1, 1]} : vector<32x128xf32> to vector<8x128xf32>
    %80 = math.tanh %79 : vector<8x128xf32>
    %81 = vector.extract_strided_slice %78 {offsets = [8, 0], sizes = [8, 128], strides = [1, 1]} : vector<24x128xf32> to vector<8x128xf32>
    %82 = arith.mulf %81, %65 : vector<8x128xf32>
    %83 = vector.extract_strided_slice %78 {offsets = [0, 0], sizes = [8, 128], strides = [1, 1]} : vector<24x128xf32> to vector<8x128xf32>
    %84 = arith.mulf %83, %80 : vector<8x128xf32>
    %85 = arith.addf %82, %84 : vector<8x128xf32>
    %86 = vector.extract_strided_slice %78 {offsets = [16, 0], sizes = [8, 128], strides = [1, 1]} : vector<24x128xf32> to vector<8x128xf32>
    %87 = math.tanh %85 : vector<8x128xf32>
    %88 = arith.mulf %86, %87 : vector<8x128xf32>
    %c0_36 = arith.constant 0 : index
    %c0_37 = arith.constant 0 : index
    %89 = vector.load %arg5[%c0_36, %c0_37] : memref<16x128xf32, #tpu.memory_space<vmem>>, vector<8x128xf32>
    tpu.vector_store %arg5[%c0_36, %c0_37], %88 {strides = array<i32>} : memref<16x128xf32, #tpu.memory_space<vmem>>, vector<8x128xf32>,
    %c0_38 = arith.constant 0 : index
    %c0_39 = arith.constant 0 : index
    %90 = vector.load %arg6[%c0_38, %c0_39] : memref<16x128xf32, #tpu.memory_space<vmem>>, vector<8x128xf32>
    tpu.vector_store %arg6[%c0_38, %c0_39], %85 {strides = array<i32>} : memref<16x128xf32, #tpu.memory_space<vmem>>, vector<8x128xf32>,
    %c0_40 = arith.constant 0 : index
    %c0_41 = arith.constant 0 : index
    %91 = vector.load %arg5[%c0_40, %c0_41] : memref<16x128xf32, #tpu.memory_space<vmem>>, vector<16x128xf32>
    %c8_42 = arith.constant 8 : index
    %c0_43 = arith.constant 0 : index
    %92 = vector.load %arg6[%c8_42, %c0_43] : memref<16x128xf32, #tpu.memory_space<vmem>>, vector<8x128xf32>
    %cst_44 = arith.constant dense<0.000000e+00> : vector<32x128xf32>
    %93 = tpu.matmul %4, %91, %cst_44 {dimension_numbers = #tpu.dot_dimension_numbers<[1], [0], [0], [1], [0, 0, 1, 1], [], []>, precision = #tpu.contract_precision<fp32>} : vector<32x16xf32>, vector<16x128xf32>, vector<32x128xf32> -> vector<32x128xf32>
    %94 = vector.broadcast %7 : vector<32x1xf32> to vector<32x128xf32>
    %95 = arith.addf %94, %93 : vector<32x128xf32>
    %96 = vector.extract_strided_slice %95 {offsets = [0, 0], sizes = [24, 128], strides = [1, 1]} : vector<32x128xf32> to vector<24x128xf32>
    %97 = arith.negf %96 : vector<24x128xf32>
    %98 = math.exp %97 : vector<24x128xf32>
    %cst_45 = arith.constant 1.000000e+00 : f32
    %99 = vector.broadcast %cst_45 : f32 to vector<24x128xf32>
    %100 = arith.addf %99, %98 : vector<24x128xf32>
    %101 = arith.divf %99, %100 : vector<24x128xf32>
    %102 = vector.extract_strided_slice %95 {offsets = [24, 0], sizes = [8, 128], strides = [1, 1]} : vector<32x128xf32> to vector<8x128xf32>
    %103 = math.tanh %102 : vector<8x128xf32>
    %104 = vector.extract_strided_slice %101 {offsets = [8, 0], sizes = [8, 128], strides = [1, 1]} : vector<24x128xf32> to vector<8x128xf32>
    %105 = arith.mulf %104, %92 : vector<8x128xf32>
    %106 = vector.extract_strided_slice %101 {offsets = [0, 0], sizes = [8, 128], strides = [1, 1]} : vector<24x128xf32> to vector<8x128xf32>
    %107 = arith.mulf %106, %103 : vector<8x128xf32>
    %108 = arith.addf %105, %107 : vector<8x128xf32>
    %109 = vector.extract_strided_slice %101 {offsets = [16, 0], sizes = [8, 128], strides = [1, 1]} : vector<24x128xf32> to vector<8x128xf32>
    %110 = math.tanh %108 : vector<8x128xf32>
    %111 = arith.mulf %109, %110 : vector<8x128xf32>
    %c8_46 = arith.constant 8 : index
    %c0_47 = arith.constant 0 : index
    %112 = vector.load %arg5[%c8_46, %c0_47] : memref<16x128xf32, #tpu.memory_space<vmem>>, vector<8x128xf32>
    tpu.vector_store %arg5[%c8_46, %c0_47], %111 {strides = array<i32>} : memref<16x128xf32, #tpu.memory_space<vmem>>, vector<8x128xf32>,
    %c8_48 = arith.constant 8 : index
    %c0_49 = arith.constant 0 : index
    %113 = vector.load %arg6[%c8_48, %c0_49] : memref<16x128xf32, #tpu.memory_space<vmem>>, vector<8x128xf32>
    tpu.vector_store %arg6[%c8_48, %c0_49], %108 {strides = array<i32>} : memref<16x128xf32, #tpu.memory_space<vmem>>, vector<8x128xf32>,
    %c2_i32 = arith.constant 2 : i32
    %114 = arith.index_cast %c2_i32 : i32 to index
    %c0_50 = arith.constant 0 : index
    %c0_51 = arith.constant 0 : index
    %115 = vector.load %arg2[%114, %c0_50, %c0_51] : memref<8x1x128xf32, #tpu.memory_space<vmem>>, vector<1x1x128xf32>
    %116 = vector.shape_cast %115 : vector<1x1x128xf32> to vector<1x128xf32>
    %c0_52 = arith.constant 0 : index
    %c0_53 = arith.constant 0 : index
    %117 = vector.load %arg5[%c0_52, %c0_53] : memref<16x128xf32, #tpu.memory_space<vmem>>, vector<8x128xf32>
    %c0_54 = arith.constant 0 : index
    %c0_55 = arith.constant 0 : index
    %118 = vector.load %arg6[%c0_54, %c0_55] : memref<16x128xf32, #tpu.memory_space<vmem>>, vector<8x128xf32>
    %119 = vector.broadcast %5 : vector<32x1xf32> to vector<32x128xf32>
    %120 = vector.broadcast %116 : vector<1x128xf32> to vector<32x128xf32>
    %121 = arith.mulf %119, %120 : vector<32x128xf32>
    %122 = vector.broadcast %6 : vector<32x1xf32> to vector<32x128xf32>
    %123 = arith.addf %121, %122 : vector<32x128xf32>
    %cst_56 = arith.constant dense<0.000000e+00> : vector<32x128xf32>
    %124 = tpu.matmul %3, %117, %cst_56 {dimension_numbers = #tpu.dot_dimension_numbers<[1], [0], [0], [1], [0, 0, 1, 1], [], []>, precision = #tpu.contract_precision<fp32>} : vector<32x8xf32>, vector<8x128xf32>, vector<32x128xf32> -> vector<32x128xf32>
    %125 = arith.addf %123, %124 : vector<32x128xf32>
    %126 = vector.extract_strided_slice %125 {offsets = [0, 0], sizes = [24, 128], strides = [1, 1]} : vector<32x128xf32> to vector<24x128xf32>
    %127 = arith.negf %126 : vector<24x128xf32>
    %128 = math.exp %127 : vector<24x128xf32>
    %cst_57 = arith.constant 1.000000e+00 : f32
    %129 = vector.broadcast %cst_57 : f32 to vector<24x128xf32>
    %130 = arith.addf %129, %128 : vector<24x128xf32>
    %131 = arith.divf %129, %130 : vector<24x128xf32>
    %132 = vector.extract_strided_slice %125 {offsets = [24, 0], sizes = [8, 128], strides = [1, 1]} : vector<32x128xf32> to vector<8x128xf32>
    %133 = math.tanh %132 : vector<8x128xf32>
    %134 = vector.extract_strided_slice %131 {offsets = [8, 0], sizes = [8, 128], strides = [1, 1]} : vector<24x128xf32> to vector<8x128xf32>
    %135 = arith.mulf %134, %118 : vector<8x128xf32>
    %136 = vector.extract_strided_slice %131 {offsets = [0, 0], sizes = [8, 128], strides = [1, 1]} : vector<24x128xf32> to vector<8x128xf32>
    %137 = arith.mulf %136, %133 : vector<8x128xf32>
    %138 = arith.addf %135, %137 : vector<8x128xf32>
    %139 = vector.extract_strided_slice %131 {offsets = [16, 0], sizes = [8, 128], strides = [1, 1]} : vector<24x128xf32> to vector<8x128xf32>
    %140 = math.tanh %138 : vector<8x128xf32>
    %141 = arith.mulf %139, %140 : vector<8x128xf32>
    %c0_58 = arith.constant 0 : index
    %c0_59 = arith.constant 0 : index
    %142 = vector.load %arg5[%c0_58, %c0_59] : memref<16x128xf32, #tpu.memory_space<vmem>>, vector<8x128xf32>
    tpu.vector_store %arg5[%c0_58, %c0_59], %141 {strides = array<i32>} : memref<16x128xf32, #tpu.memory_space<vmem>>, vector<8x128xf32>,
    %c0_60 = arith.constant 0 : index
    %c0_61 = arith.constant 0 : index
    %143 = vector.load %arg6[%c0_60, %c0_61] : memref<16x128xf32, #tpu.memory_space<vmem>>, vector<8x128xf32>
    tpu.vector_store %arg6[%c0_60, %c0_61], %138 {strides = array<i32>} : memref<16x128xf32, #tpu.memory_space<vmem>>, vector<8x128xf32>,
    %c0_62 = arith.constant 0 : index
    %c0_63 = arith.constant 0 : index
    %144 = vector.load %arg5[%c0_62, %c0_63] : memref<16x128xf32, #tpu.memory_space<vmem>>, vector<16x128xf32>
    %c8_64 = arith.constant 8 : index
    %c0_65 = arith.constant 0 : index
    %145 = vector.load %arg6[%c8_64, %c0_65] : memref<16x128xf32, #tpu.memory_space<vmem>>, vector<8x128xf32>
    %cst_66 = arith.constant dense<0.000000e+00> : vector<32x128xf32>
    %146 = tpu.matmul %4, %144, %cst_66 {dimension_numbers = #tpu.dot_dimension_numbers<[1], [0], [0], [1], [0, 0, 1, 1], [], []>, precision = #tpu.contract_precision<fp32>} : vector<32x16xf32>, vector<16x128xf32>, vector<32x128xf32> -> vector<32x128xf32>
    %147 = vector.broadcast %7 : vector<32x1xf32> to vector<32x128xf32>
    %148 = arith.addf %147, %146 : vector<32x128xf32>
    %149 = vector.extract_strided_slice %148 {offsets = [0, 0], sizes = [24, 128], strides = [1, 1]} : vector<32x128xf32> to vector<24x128xf32>
    %150 = arith.negf %149 : vector<24x128xf32>
    %151 = math.exp %150 : vector<24x128xf32>
    %cst_67 = arith.constant 1.000000e+00 : f32
    %152 = vector.broadcast %cst_67 : f32 to vector<24x128xf32>
    %153 = arith.addf %152, %151 : vector<24x128xf32>
    %154 = arith.divf %152, %153 : vector<24x128xf32>
    %155 = vector.extract_strided_slice %148 {offsets = [24, 0], sizes = [8, 128], strides = [1, 1]} : vector<32x128xf32> to vector<8x128xf32>
    %156 = math.tanh %155 : vector<8x128xf32>
    %157 = vector.extract_strided_slice %154 {offsets = [8, 0], sizes = [8, 128], strides = [1, 1]} : vector<24x128xf32> to vector<8x128xf32>
    %158 = arith.mulf %157, %145 : vector<8x128xf32>
    %159 = vector.extract_strided_slice %154 {offsets = [0, 0], sizes = [8, 128], strides = [1, 1]} : vector<24x128xf32> to vector<8x128xf32>
    %160 = arith.mulf %159, %156 : vector<8x128xf32>
    %161 = arith.addf %158, %160 : vector<8x128xf32>
    %162 = vector.extract_strided_slice %154 {offsets = [16, 0], sizes = [8, 128], strides = [1, 1]} : vector<24x128xf32> to vector<8x128xf32>
    %163 = math.tanh %161 : vector<8x128xf32>
    %164 = arith.mulf %162, %163 : vector<8x128xf32>
    %c8_68 = arith.constant 8 : index
    %c0_69 = arith.constant 0 : index
    %165 = vector.load %arg5[%c8_68, %c0_69] : memref<16x128xf32, #tpu.memory_space<vmem>>, vector<8x128xf32>
    tpu.vector_store %arg5[%c8_68, %c0_69], %164 {strides = array<i32>} : memref<16x128xf32, #tpu.memory_space<vmem>>, vector<8x128xf32>,
    %c8_70 = arith.constant 8 : index
    %c0_71 = arith.constant 0 : index
    %166 = vector.load %arg6[%c8_70, %c0_71] : memref<16x128xf32, #tpu.memory_space<vmem>>, vector<8x128xf32>
    tpu.vector_store %arg6[%c8_70, %c0_71], %161 {strides = array<i32>} : memref<16x128xf32, #tpu.memory_space<vmem>>, vector<8x128xf32>,
    %c3_i32 = arith.constant 3 : i32
    %167 = arith.index_cast %c3_i32 : i32 to index
    %c0_72 = arith.constant 0 : index
    %c0_73 = arith.constant 0 : index
    %168 = vector.load %arg2[%167, %c0_72, %c0_73] : memref<8x1x128xf32, #tpu.memory_space<vmem>>, vector<1x1x128xf32>
    %169 = vector.shape_cast %168 : vector<1x1x128xf32> to vector<1x128xf32>
    %c0_74 = arith.constant 0 : index
    %c0_75 = arith.constant 0 : index
    %170 = vector.load %arg5[%c0_74, %c0_75] : memref<16x128xf32, #tpu.memory_space<vmem>>, vector<8x128xf32>
    %c0_76 = arith.constant 0 : index
    %c0_77 = arith.constant 0 : index
    %171 = vector.load %arg6[%c0_76, %c0_77] : memref<16x128xf32, #tpu.memory_space<vmem>>, vector<8x128xf32>
    %172 = vector.broadcast %5 : vector<32x1xf32> to vector<32x128xf32>
    %173 = vector.broadcast %169 : vector<1x128xf32> to vector<32x128xf32>
    %174 = arith.mulf %172, %173 : vector<32x128xf32>
    %175 = vector.broadcast %6 : vector<32x1xf32> to vector<32x128xf32>
    %176 = arith.addf %174, %175 : vector<32x128xf32>
    %cst_78 = arith.constant dense<0.000000e+00> : vector<32x128xf32>
    %177 = tpu.matmul %3, %170, %cst_78 {dimension_numbers = #tpu.dot_dimension_numbers<[1], [0], [0], [1], [0, 0, 1, 1], [], []>, precision = #tpu.contract_precision<fp32>} : vector<32x8xf32>, vector<8x128xf32>, vector<32x128xf32> -> vector<32x128xf32>
    %178 = arith.addf %176, %177 : vector<32x128xf32>
    %179 = vector.extract_strided_slice %178 {offsets = [0, 0], sizes = [24, 128], strides = [1, 1]} : vector<32x128xf32> to vector<24x128xf32>
    %180 = arith.negf %179 : vector<24x128xf32>
    %181 = math.exp %180 : vector<24x128xf32>
    %cst_79 = arith.constant 1.000000e+00 : f32
    %182 = vector.broadcast %cst_79 : f32 to vector<24x128xf32>
    %183 = arith.addf %182, %181 : vector<24x128xf32>
    %184 = arith.divf %182, %183 : vector<24x128xf32>
    %185 = vector.extract_strided_slice %178 {offsets = [24, 0], sizes = [8, 128], strides = [1, 1]} : vector<32x128xf32> to vector<8x128xf32>
    %186 = math.tanh %185 : vector<8x128xf32>
    %187 = vector.extract_strided_slice %184 {offsets = [8, 0], sizes = [8, 128], strides = [1, 1]} : vector<24x128xf32> to vector<8x128xf32>
    %188 = arith.mulf %187, %171 : vector<8x128xf32>
    %189 = vector.extract_strided_slice %184 {offsets = [0, 0], sizes = [8, 128], strides = [1, 1]} : vector<24x128xf32> to vector<8x128xf32>
    %190 = arith.mulf %189, %186 : vector<8x128xf32>
    %191 = arith.addf %188, %190 : vector<8x128xf32>
    %192 = vector.extract_strided_slice %184 {offsets = [16, 0], sizes = [8, 128], strides = [1, 1]} : vector<24x128xf32> to vector<8x128xf32>
    %193 = math.tanh %191 : vector<8x128xf32>
    %194 = arith.mulf %192, %193 : vector<8x128xf32>
    %c0_80 = arith.constant 0 : index
    %c0_81 = arith.constant 0 : index
    %195 = vector.load %arg5[%c0_80, %c0_81] : memref<16x128xf32, #tpu.memory_space<vmem>>, vector<8x128xf32>
    tpu.vector_store %arg5[%c0_80, %c0_81], %194 {strides = array<i32>} : memref<16x128xf32, #tpu.memory_space<vmem>>, vector<8x128xf32>,
    %c0_82 = arith.constant 0 : index
    %c0_83 = arith.constant 0 : index
    %196 = vector.load %arg6[%c0_82, %c0_83] : memref<16x128xf32, #tpu.memory_space<vmem>>, vector<8x128xf32>
    tpu.vector_store %arg6[%c0_82, %c0_83], %191 {strides = array<i32>} : memref<16x128xf32, #tpu.memory_space<vmem>>, vector<8x128xf32>,
    %c0_84 = arith.constant 0 : index
    %c0_85 = arith.constant 0 : index
    %197 = vector.load %arg5[%c0_84, %c0_85] : memref<16x128xf32, #tpu.memory_space<vmem>>, vector<16x128xf32>
    %c8_86 = arith.constant 8 : index
    %c0_87 = arith.constant 0 : index
    %198 = vector.load %arg6[%c8_86, %c0_87] : memref<16x128xf32, #tpu.memory_space<vmem>>, vector<8x128xf32>
    %cst_88 = arith.constant dense<0.000000e+00> : vector<32x128xf32>
    %199 = tpu.matmul %4, %197, %cst_88 {dimension_numbers = #tpu.dot_dimension_numbers<[1], [0], [0], [1], [0, 0, 1, 1], [], []>, precision = #tpu.contract_precision<fp32>} : vector<32x16xf32>, vector<16x128xf32>, vector<32x128xf32> -> vector<32x128xf32>
    %200 = vector.broadcast %7 : vector<32x1xf32> to vector<32x128xf32>
    %201 = arith.addf %200, %199 : vector<32x128xf32>
    %202 = vector.extract_strided_slice %201 {offsets = [0, 0], sizes = [24, 128], strides = [1, 1]} : vector<32x128xf32> to vector<24x128xf32>
    %203 = arith.negf %202 : vector<24x128xf32>
    %204 = math.exp %203 : vector<24x128xf32>
    %cst_89 = arith.constant 1.000000e+00 : f32
    %205 = vector.broadcast %cst_89 : f32 to vector<24x128xf32>
    %206 = arith.addf %205, %204 : vector<24x128xf32>
    %207 = arith.divf %205, %206 : vector<24x128xf32>
    %208 = vector.extract_strided_slice %201 {offsets = [24, 0], sizes = [8, 128], strides = [1, 1]} : vector<32x128xf32> to vector<8x128xf32>
    %209 = math.tanh %208 : vector<8x128xf32>
    %210 = vector.extract_strided_slice %207 {offsets = [8, 0], sizes = [8, 128], strides = [1, 1]} : vector<24x128xf32> to vector<8x128xf32>
    %211 = arith.mulf %210, %198 : vector<8x128xf32>
    %212 = vector.extract_strided_slice %207 {offsets = [0, 0], sizes = [8, 128], strides = [1, 1]} : vector<24x128xf32> to vector<8x128xf32>
    %213 = arith.mulf %212, %209 : vector<8x128xf32>
    %214 = arith.addf %211, %213 : vector<8x128xf32>
    %215 = vector.extract_strided_slice %207 {offsets = [16, 0], sizes = [8, 128], strides = [1, 1]} : vector<24x128xf32> to vector<8x128xf32>
    %216 = math.tanh %214 : vector<8x128xf32>
    %217 = arith.mulf %215, %216 : vector<8x128xf32>
    %c8_90 = arith.constant 8 : index
    %c0_91 = arith.constant 0 : index
    %218 = vector.load %arg5[%c8_90, %c0_91] : memref<16x128xf32, #tpu.memory_space<vmem>>, vector<8x128xf32>
    tpu.vector_store %arg5[%c8_90, %c0_91], %217 {strides = array<i32>} : memref<16x128xf32, #tpu.memory_space<vmem>>, vector<8x128xf32>,
    %c8_92 = arith.constant 8 : index
    %c0_93 = arith.constant 0 : index
    %219 = vector.load %arg6[%c8_92, %c0_93] : memref<16x128xf32, #tpu.memory_space<vmem>>, vector<8x128xf32>
    tpu.vector_store %arg6[%c8_92, %c0_93], %214 {strides = array<i32>} : memref<16x128xf32, #tpu.memory_space<vmem>>, vector<8x128xf32>,
    %c4_i32 = arith.constant 4 : i32
    %220 = arith.index_cast %c4_i32 : i32 to index
    %c0_94 = arith.constant 0 : index
    %c0_95 = arith.constant 0 : index
    %221 = vector.load %arg2[%220, %c0_94, %c0_95] : memref<8x1x128xf32, #tpu.memory_space<vmem>>, vector<1x1x128xf32>
    %222 = vector.shape_cast %221 : vector<1x1x128xf32> to vector<1x128xf32>
    %c0_96 = arith.constant 0 : index
    %c0_97 = arith.constant 0 : index
    %223 = vector.load %arg5[%c0_96, %c0_97] : memref<16x128xf32, #tpu.memory_space<vmem>>, vector<8x128xf32>
    %c0_98 = arith.constant 0 : index
    %c0_99 = arith.constant 0 : index
    %224 = vector.load %arg6[%c0_98, %c0_99] : memref<16x128xf32, #tpu.memory_space<vmem>>, vector<8x128xf32>
    %225 = vector.broadcast %5 : vector<32x1xf32> to vector<32x128xf32>
    %226 = vector.broadcast %222 : vector<1x128xf32> to vector<32x128xf32>
    %227 = arith.mulf %225, %226 : vector<32x128xf32>
    %228 = vector.broadcast %6 : vector<32x1xf32> to vector<32x128xf32>
    %229 = arith.addf %227, %228 : vector<32x128xf32>
    %cst_100 = arith.constant dense<0.000000e+00> : vector<32x128xf32>
    %230 = tpu.matmul %3, %223, %cst_100 {dimension_numbers = #tpu.dot_dimension_numbers<[1], [0], [0], [1], [0, 0, 1, 1], [], []>, precision = #tpu.contract_precision<fp32>} : vector<32x8xf32>, vector<8x128xf32>, vector<32x128xf32> -> vector<32x128xf32>
    %231 = arith.addf %229, %230 : vector<32x128xf32>
    %232 = vector.extract_strided_slice %231 {offsets = [0, 0], sizes = [24, 128], strides = [1, 1]} : vector<32x128xf32> to vector<24x128xf32>
    %233 = arith.negf %232 : vector<24x128xf32>
    %234 = math.exp %233 : vector<24x128xf32>
    %cst_101 = arith.constant 1.000000e+00 : f32
    %235 = vector.broadcast %cst_101 : f32 to vector<24x128xf32>
    %236 = arith.addf %235, %234 : vector<24x128xf32>
    %237 = arith.divf %235, %236 : vector<24x128xf32>
    %238 = vector.extract_strided_slice %231 {offsets = [24, 0], sizes = [8, 128], strides = [1, 1]} : vector<32x128xf32> to vector<8x128xf32>
    %239 = math.tanh %238 : vector<8x128xf32>
    %240 = vector.extract_strided_slice %237 {offsets = [8, 0], sizes = [8, 128], strides = [1, 1]} : vector<24x128xf32> to vector<8x128xf32>
    %241 = arith.mulf %240, %224 : vector<8x128xf32>
    %242 = vector.extract_strided_slice %237 {offsets = [0, 0], sizes = [8, 128], strides = [1, 1]} : vector<24x128xf32> to vector<8x128xf32>
    %243 = arith.mulf %242, %239 : vector<8x128xf32>
    %244 = arith.addf %241, %243 : vector<8x128xf32>
    %245 = vector.extract_strided_slice %237 {offsets = [16, 0], sizes = [8, 128], strides = [1, 1]} : vector<24x128xf32> to vector<8x128xf32>
    %246 = math.tanh %244 : vector<8x128xf32>
    %247 = arith.mulf %245, %246 : vector<8x128xf32>
    %c0_102 = arith.constant 0 : index
    %c0_103 = arith.constant 0 : index
    %248 = vector.load %arg5[%c0_102, %c0_103] : memref<16x128xf32, #tpu.memory_space<vmem>>, vector<8x128xf32>
    tpu.vector_store %arg5[%c0_102, %c0_103], %247 {strides = array<i32>} : memref<16x128xf32, #tpu.memory_space<vmem>>, vector<8x128xf32>,
    %c0_104 = arith.constant 0 : index
    %c0_105 = arith.constant 0 : index
    %249 = vector.load %arg6[%c0_104, %c0_105] : memref<16x128xf32, #tpu.memory_space<vmem>>, vector<8x128xf32>
    tpu.vector_store %arg6[%c0_104, %c0_105], %244 {strides = array<i32>} : memref<16x128xf32, #tpu.memory_space<vmem>>, vector<8x128xf32>,
    %c0_106 = arith.constant 0 : index
    %c0_107 = arith.constant 0 : index
    %250 = vector.load %arg5[%c0_106, %c0_107] : memref<16x128xf32, #tpu.memory_space<vmem>>, vector<16x128xf32>
    %c8_108 = arith.constant 8 : index
    %c0_109 = arith.constant 0 : index
    %251 = vector.load %arg6[%c8_108, %c0_109] : memref<16x128xf32, #tpu.memory_space<vmem>>, vector<8x128xf32>
    %cst_110 = arith.constant dense<0.000000e+00> : vector<32x128xf32>
    %252 = tpu.matmul %4, %250, %cst_110 {dimension_numbers = #tpu.dot_dimension_numbers<[1], [0], [0], [1], [0, 0, 1, 1], [], []>, precision = #tpu.contract_precision<fp32>} : vector<32x16xf32>, vector<16x128xf32>, vector<32x128xf32> -> vector<32x128xf32>
    %253 = vector.broadcast %7 : vector<32x1xf32> to vector<32x128xf32>
    %254 = arith.addf %253, %252 : vector<32x128xf32>
    %255 = vector.extract_strided_slice %254 {offsets = [0, 0], sizes = [24, 128], strides = [1, 1]} : vector<32x128xf32> to vector<24x128xf32>
    %256 = arith.negf %255 : vector<24x128xf32>
    %257 = math.exp %256 : vector<24x128xf32>
    %cst_111 = arith.constant 1.000000e+00 : f32
    %258 = vector.broadcast %cst_111 : f32 to vector<24x128xf32>
    %259 = arith.addf %258, %257 : vector<24x128xf32>
    %260 = arith.divf %258, %259 : vector<24x128xf32>
    %261 = vector.extract_strided_slice %254 {offsets = [24, 0], sizes = [8, 128], strides = [1, 1]} : vector<32x128xf32> to vector<8x128xf32>
    %262 = math.tanh %261 : vector<8x128xf32>
    %263 = vector.extract_strided_slice %260 {offsets = [8, 0], sizes = [8, 128], strides = [1, 1]} : vector<24x128xf32> to vector<8x128xf32>
    %264 = arith.mulf %263, %251 : vector<8x128xf32>
    %265 = vector.extract_strided_slice %260 {offsets = [0, 0], sizes = [8, 128], strides = [1, 1]} : vector<24x128xf32> to vector<8x128xf32>
    %266 = arith.mulf %265, %262 : vector<8x128xf32>
    %267 = arith.addf %264, %266 : vector<8x128xf32>
    %268 = vector.extract_strided_slice %260 {offsets = [16, 0], sizes = [8, 128], strides = [1, 1]} : vector<24x128xf32> to vector<8x128xf32>
    %269 = math.tanh %267 : vector<8x128xf32>
    %270 = arith.mulf %268, %269 : vector<8x128xf32>
    %c8_112 = arith.constant 8 : index
    %c0_113 = arith.constant 0 : index
    %271 = vector.load %arg5[%c8_112, %c0_113] : memref<16x128xf32, #tpu.memory_space<vmem>>, vector<8x128xf32>
    tpu.vector_store %arg5[%c8_112, %c0_113], %270 {strides = array<i32>} : memref<16x128xf32, #tpu.memory_space<vmem>>, vector<8x128xf32>,
    %c8_114 = arith.constant 8 : index
    %c0_115 = arith.constant 0 : index
    %272 = vector.load %arg6[%c8_114, %c0_115] : memref<16x128xf32, #tpu.memory_space<vmem>>, vector<8x128xf32>
    tpu.vector_store %arg6[%c8_114, %c0_115], %267 {strides = array<i32>} : memref<16x128xf32, #tpu.memory_space<vmem>>, vector<8x128xf32>,
    %c5_i32 = arith.constant 5 : i32
    %273 = arith.index_cast %c5_i32 : i32 to index
    %c0_116 = arith.constant 0 : index
    %c0_117 = arith.constant 0 : index
    %274 = vector.load %arg2[%273, %c0_116, %c0_117] : memref<8x1x128xf32, #tpu.memory_space<vmem>>, vector<1x1x128xf32>
    %275 = vector.shape_cast %274 : vector<1x1x128xf32> to vector<1x128xf32>
    %c0_118 = arith.constant 0 : index
    %c0_119 = arith.constant 0 : index
    %276 = vector.load %arg5[%c0_118, %c0_119] : memref<16x128xf32, #tpu.memory_space<vmem>>, vector<8x128xf32>
    %c0_120 = arith.constant 0 : index
    %c0_121 = arith.constant 0 : index
    %277 = vector.load %arg6[%c0_120, %c0_121] : memref<16x128xf32, #tpu.memory_space<vmem>>, vector<8x128xf32>
    %278 = vector.broadcast %5 : vector<32x1xf32> to vector<32x128xf32>
    %279 = vector.broadcast %275 : vector<1x128xf32> to vector<32x128xf32>
    %280 = arith.mulf %278, %279 : vector<32x128xf32>
    %281 = vector.broadcast %6 : vector<32x1xf32> to vector<32x128xf32>
    %282 = arith.addf %280, %281 : vector<32x128xf32>
    %cst_122 = arith.constant dense<0.000000e+00> : vector<32x128xf32>
    %283 = tpu.matmul %3, %276, %cst_122 {dimension_numbers = #tpu.dot_dimension_numbers<[1], [0], [0], [1], [0, 0, 1, 1], [], []>, precision = #tpu.contract_precision<fp32>} : vector<32x8xf32>, vector<8x128xf32>, vector<32x128xf32> -> vector<32x128xf32>
    %284 = arith.addf %282, %283 : vector<32x128xf32>
    %285 = vector.extract_strided_slice %284 {offsets = [0, 0], sizes = [24, 128], strides = [1, 1]} : vector<32x128xf32> to vector<24x128xf32>
    %286 = arith.negf %285 : vector<24x128xf32>
    %287 = math.exp %286 : vector<24x128xf32>
    %cst_123 = arith.constant 1.000000e+00 : f32
    %288 = vector.broadcast %cst_123 : f32 to vector<24x128xf32>
    %289 = arith.addf %288, %287 : vector<24x128xf32>
    %290 = arith.divf %288, %289 : vector<24x128xf32>
    %291 = vector.extract_strided_slice %284 {offsets = [24, 0], sizes = [8, 128], strides = [1, 1]} : vector<32x128xf32> to vector<8x128xf32>
    %292 = math.tanh %291 : vector<8x128xf32>
    %293 = vector.extract_strided_slice %290 {offsets = [8, 0], sizes = [8, 128], strides = [1, 1]} : vector<24x128xf32> to vector<8x128xf32>
    %294 = arith.mulf %293, %277 : vector<8x128xf32>
    %295 = vector.extract_strided_slice %290 {offsets = [0, 0], sizes = [8, 128], strides = [1, 1]} : vector<24x128xf32> to vector<8x128xf32>
    %296 = arith.mulf %295, %292 : vector<8x128xf32>
    %297 = arith.addf %294, %296 : vector<8x128xf32>
    %298 = vector.extract_strided_slice %290 {offsets = [16, 0], sizes = [8, 128], strides = [1, 1]} : vector<24x128xf32> to vector<8x128xf32>
    %299 = math.tanh %297 : vector<8x128xf32>
    %300 = arith.mulf %298, %299 : vector<8x128xf32>
    %c0_124 = arith.constant 0 : index
    %c0_125 = arith.constant 0 : index
    %301 = vector.load %arg5[%c0_124, %c0_125] : memref<16x128xf32, #tpu.memory_space<vmem>>, vector<8x128xf32>
    tpu.vector_store %arg5[%c0_124, %c0_125], %300 {strides = array<i32>} : memref<16x128xf32, #tpu.memory_space<vmem>>, vector<8x128xf32>,
    %c0_126 = arith.constant 0 : index
    %c0_127 = arith.constant 0 : index
    %302 = vector.load %arg6[%c0_126, %c0_127] : memref<16x128xf32, #tpu.memory_space<vmem>>, vector<8x128xf32>
    tpu.vector_store %arg6[%c0_126, %c0_127], %297 {strides = array<i32>} : memref<16x128xf32, #tpu.memory_space<vmem>>, vector<8x128xf32>,
    %c0_128 = arith.constant 0 : index
    %c0_129 = arith.constant 0 : index
    %303 = vector.load %arg5[%c0_128, %c0_129] : memref<16x128xf32, #tpu.memory_space<vmem>>, vector<16x128xf32>
    %c8_130 = arith.constant 8 : index
    %c0_131 = arith.constant 0 : index
    %304 = vector.load %arg6[%c8_130, %c0_131] : memref<16x128xf32, #tpu.memory_space<vmem>>, vector<8x128xf32>
    %cst_132 = arith.constant dense<0.000000e+00> : vector<32x128xf32>
    %305 = tpu.matmul %4, %303, %cst_132 {dimension_numbers = #tpu.dot_dimension_numbers<[1], [0], [0], [1], [0, 0, 1, 1], [], []>, precision = #tpu.contract_precision<fp32>} : vector<32x16xf32>, vector<16x128xf32>, vector<32x128xf32> -> vector<32x128xf32>
    %306 = vector.broadcast %7 : vector<32x1xf32> to vector<32x128xf32>
    %307 = arith.addf %306, %305 : vector<32x128xf32>
    %308 = vector.extract_strided_slice %307 {offsets = [0, 0], sizes = [24, 128], strides = [1, 1]} : vector<32x128xf32> to vector<24x128xf32>
    %309 = arith.negf %308 : vector<24x128xf32>
    %310 = math.exp %309 : vector<24x128xf32>
    %cst_133 = arith.constant 1.000000e+00 : f32
    %311 = vector.broadcast %cst_133 : f32 to vector<24x128xf32>
    %312 = arith.addf %311, %310 : vector<24x128xf32>
    %313 = arith.divf %311, %312 : vector<24x128xf32>
    %314 = vector.extract_strided_slice %307 {offsets = [24, 0], sizes = [8, 128], strides = [1, 1]} : vector<32x128xf32> to vector<8x128xf32>
    %315 = math.tanh %314 : vector<8x128xf32>
    %316 = vector.extract_strided_slice %313 {offsets = [8, 0], sizes = [8, 128], strides = [1, 1]} : vector<24x128xf32> to vector<8x128xf32>
    %317 = arith.mulf %316, %304 : vector<8x128xf32>
    %318 = vector.extract_strided_slice %313 {offsets = [0, 0], sizes = [8, 128], strides = [1, 1]} : vector<24x128xf32> to vector<8x128xf32>
    %319 = arith.mulf %318, %315 : vector<8x128xf32>
    %320 = arith.addf %317, %319 : vector<8x128xf32>
    %321 = vector.extract_strided_slice %313 {offsets = [16, 0], sizes = [8, 128], strides = [1, 1]} : vector<24x128xf32> to vector<8x128xf32>
    %322 = math.tanh %320 : vector<8x128xf32>
    %323 = arith.mulf %321, %322 : vector<8x128xf32>
    %c8_134 = arith.constant 8 : index
    %c0_135 = arith.constant 0 : index
    %324 = vector.load %arg5[%c8_134, %c0_135] : memref<16x128xf32, #tpu.memory_space<vmem>>, vector<8x128xf32>
    tpu.vector_store %arg5[%c8_134, %c0_135], %323 {strides = array<i32>} : memref<16x128xf32, #tpu.memory_space<vmem>>, vector<8x128xf32>,
    %c8_136 = arith.constant 8 : index
    %c0_137 = arith.constant 0 : index
    %325 = vector.load %arg6[%c8_136, %c0_137] : memref<16x128xf32, #tpu.memory_space<vmem>>, vector<8x128xf32>
    tpu.vector_store %arg6[%c8_136, %c0_137], %320 {strides = array<i32>} : memref<16x128xf32, #tpu.memory_space<vmem>>, vector<8x128xf32>,
    %c6_i32 = arith.constant 6 : i32
    %326 = arith.index_cast %c6_i32 : i32 to index
    %c0_138 = arith.constant 0 : index
    %c0_139 = arith.constant 0 : index
    %327 = vector.load %arg2[%326, %c0_138, %c0_139] : memref<8x1x128xf32, #tpu.memory_space<vmem>>, vector<1x1x128xf32>
    %328 = vector.shape_cast %327 : vector<1x1x128xf32> to vector<1x128xf32>
    %c0_140 = arith.constant 0 : index
    %c0_141 = arith.constant 0 : index
    %329 = vector.load %arg5[%c0_140, %c0_141] : memref<16x128xf32, #tpu.memory_space<vmem>>, vector<8x128xf32>
    %c0_142 = arith.constant 0 : index
    %c0_143 = arith.constant 0 : index
    %330 = vector.load %arg6[%c0_142, %c0_143] : memref<16x128xf32, #tpu.memory_space<vmem>>, vector<8x128xf32>
    %331 = vector.broadcast %5 : vector<32x1xf32> to vector<32x128xf32>
    %332 = vector.broadcast %328 : vector<1x128xf32> to vector<32x128xf32>
    %333 = arith.mulf %331, %332 : vector<32x128xf32>
    %334 = vector.broadcast %6 : vector<32x1xf32> to vector<32x128xf32>
    %335 = arith.addf %333, %334 : vector<32x128xf32>
    %cst_144 = arith.constant dense<0.000000e+00> : vector<32x128xf32>
    %336 = tpu.matmul %3, %329, %cst_144 {dimension_numbers = #tpu.dot_dimension_numbers<[1], [0], [0], [1], [0, 0, 1, 1], [], []>, precision = #tpu.contract_precision<fp32>} : vector<32x8xf32>, vector<8x128xf32>, vector<32x128xf32> -> vector<32x128xf32>
    %337 = arith.addf %335, %336 : vector<32x128xf32>
    %338 = vector.extract_strided_slice %337 {offsets = [0, 0], sizes = [24, 128], strides = [1, 1]} : vector<32x128xf32> to vector<24x128xf32>
    %339 = arith.negf %338 : vector<24x128xf32>
    %340 = math.exp %339 : vector<24x128xf32>
    %cst_145 = arith.constant 1.000000e+00 : f32
    %341 = vector.broadcast %cst_145 : f32 to vector<24x128xf32>
    %342 = arith.addf %341, %340 : vector<24x128xf32>
    %343 = arith.divf %341, %342 : vector<24x128xf32>
    %344 = vector.extract_strided_slice %337 {offsets = [24, 0], sizes = [8, 128], strides = [1, 1]} : vector<32x128xf32> to vector<8x128xf32>
    %345 = math.tanh %344 : vector<8x128xf32>
    %346 = vector.extract_strided_slice %343 {offsets = [8, 0], sizes = [8, 128], strides = [1, 1]} : vector<24x128xf32> to vector<8x128xf32>
    %347 = arith.mulf %346, %330 : vector<8x128xf32>
    %348 = vector.extract_strided_slice %343 {offsets = [0, 0], sizes = [8, 128], strides = [1, 1]} : vector<24x128xf32> to vector<8x128xf32>
    %349 = arith.mulf %348, %345 : vector<8x128xf32>
    %350 = arith.addf %347, %349 : vector<8x128xf32>
    %351 = vector.extract_strided_slice %343 {offsets = [16, 0], sizes = [8, 128], strides = [1, 1]} : vector<24x128xf32> to vector<8x128xf32>
    %352 = math.tanh %350 : vector<8x128xf32>
    %353 = arith.mulf %351, %352 : vector<8x128xf32>
    %c0_146 = arith.constant 0 : index
    %c0_147 = arith.constant 0 : index
    %354 = vector.load %arg5[%c0_146, %c0_147] : memref<16x128xf32, #tpu.memory_space<vmem>>, vector<8x128xf32>
    tpu.vector_store %arg5[%c0_146, %c0_147], %353 {strides = array<i32>} : memref<16x128xf32, #tpu.memory_space<vmem>>, vector<8x128xf32>,
    %c0_148 = arith.constant 0 : index
    %c0_149 = arith.constant 0 : index
    %355 = vector.load %arg6[%c0_148, %c0_149] : memref<16x128xf32, #tpu.memory_space<vmem>>, vector<8x128xf32>
    tpu.vector_store %arg6[%c0_148, %c0_149], %350 {strides = array<i32>} : memref<16x128xf32, #tpu.memory_space<vmem>>, vector<8x128xf32>,
    %c0_150 = arith.constant 0 : index
    %c0_151 = arith.constant 0 : index
    %356 = vector.load %arg5[%c0_150, %c0_151] : memref<16x128xf32, #tpu.memory_space<vmem>>, vector<16x128xf32>
    %c8_152 = arith.constant 8 : index
    %c0_153 = arith.constant 0 : index
    %357 = vector.load %arg6[%c8_152, %c0_153] : memref<16x128xf32, #tpu.memory_space<vmem>>, vector<8x128xf32>
    %cst_154 = arith.constant dense<0.000000e+00> : vector<32x128xf32>
    %358 = tpu.matmul %4, %356, %cst_154 {dimension_numbers = #tpu.dot_dimension_numbers<[1], [0], [0], [1], [0, 0, 1, 1], [], []>, precision = #tpu.contract_precision<fp32>} : vector<32x16xf32>, vector<16x128xf32>, vector<32x128xf32> -> vector<32x128xf32>
    %359 = vector.broadcast %7 : vector<32x1xf32> to vector<32x128xf32>
    %360 = arith.addf %359, %358 : vector<32x128xf32>
    %361 = vector.extract_strided_slice %360 {offsets = [0, 0], sizes = [24, 128], strides = [1, 1]} : vector<32x128xf32> to vector<24x128xf32>
    %362 = arith.negf %361 : vector<24x128xf32>
    %363 = math.exp %362 : vector<24x128xf32>
    %cst_155 = arith.constant 1.000000e+00 : f32
    %364 = vector.broadcast %cst_155 : f32 to vector<24x128xf32>
    %365 = arith.addf %364, %363 : vector<24x128xf32>
    %366 = arith.divf %364, %365 : vector<24x128xf32>
    %367 = vector.extract_strided_slice %360 {offsets = [24, 0], sizes = [8, 128], strides = [1, 1]} : vector<32x128xf32> to vector<8x128xf32>
    %368 = math.tanh %367 : vector<8x128xf32>
    %369 = vector.extract_strided_slice %366 {offsets = [8, 0], sizes = [8, 128], strides = [1, 1]} : vector<24x128xf32> to vector<8x128xf32>
    %370 = arith.mulf %369, %357 : vector<8x128xf32>
    %371 = vector.extract_strided_slice %366 {offsets = [0, 0], sizes = [8, 128], strides = [1, 1]} : vector<24x128xf32> to vector<8x128xf32>
    %372 = arith.mulf %371, %368 : vector<8x128xf32>
    %373 = arith.addf %370, %372 : vector<8x128xf32>
    %374 = vector.extract_strided_slice %366 {offsets = [16, 0], sizes = [8, 128], strides = [1, 1]} : vector<24x128xf32> to vector<8x128xf32>
    %375 = math.tanh %373 : vector<8x128xf32>
    %376 = arith.mulf %374, %375 : vector<8x128xf32>
    %c8_156 = arith.constant 8 : index
    %c0_157 = arith.constant 0 : index
    %377 = vector.load %arg5[%c8_156, %c0_157] : memref<16x128xf32, #tpu.memory_space<vmem>>, vector<8x128xf32>
    tpu.vector_store %arg5[%c8_156, %c0_157], %376 {strides = array<i32>} : memref<16x128xf32, #tpu.memory_space<vmem>>, vector<8x128xf32>,
    %c8_158 = arith.constant 8 : index
    %c0_159 = arith.constant 0 : index
    %378 = vector.load %arg6[%c8_158, %c0_159] : memref<16x128xf32, #tpu.memory_space<vmem>>, vector<8x128xf32>
    tpu.vector_store %arg6[%c8_158, %c0_159], %373 {strides = array<i32>} : memref<16x128xf32, #tpu.memory_space<vmem>>, vector<8x128xf32>,
    %c7_i32 = arith.constant 7 : i32
    %379 = arith.index_cast %c7_i32 : i32 to index
    %c0_160 = arith.constant 0 : index
    %c0_161 = arith.constant 0 : index
    %380 = vector.load %arg2[%379, %c0_160, %c0_161] : memref<8x1x128xf32, #tpu.memory_space<vmem>>, vector<1x1x128xf32>
    %381 = vector.shape_cast %380 : vector<1x1x128xf32> to vector<1x128xf32>
    %c0_162 = arith.constant 0 : index
    %c0_163 = arith.constant 0 : index
    %382 = vector.load %arg5[%c0_162, %c0_163] : memref<16x128xf32, #tpu.memory_space<vmem>>, vector<8x128xf32>
    %c0_164 = arith.constant 0 : index
    %c0_165 = arith.constant 0 : index
    %383 = vector.load %arg6[%c0_164, %c0_165] : memref<16x128xf32, #tpu.memory_space<vmem>>, vector<8x128xf32>
    %384 = vector.broadcast %5 : vector<32x1xf32> to vector<32x128xf32>
    %385 = vector.broadcast %381 : vector<1x128xf32> to vector<32x128xf32>
    %386 = arith.mulf %384, %385 : vector<32x128xf32>
    %387 = vector.broadcast %6 : vector<32x1xf32> to vector<32x128xf32>
    %388 = arith.addf %386, %387 : vector<32x128xf32>
    %cst_166 = arith.constant dense<0.000000e+00> : vector<32x128xf32>
    %389 = tpu.matmul %3, %382, %cst_166 {dimension_numbers = #tpu.dot_dimension_numbers<[1], [0], [0], [1], [0, 0, 1, 1], [], []>, precision = #tpu.contract_precision<fp32>} : vector<32x8xf32>, vector<8x128xf32>, vector<32x128xf32> -> vector<32x128xf32>
    %390 = arith.addf %388, %389 : vector<32x128xf32>
    %391 = vector.extract_strided_slice %390 {offsets = [0, 0], sizes = [24, 128], strides = [1, 1]} : vector<32x128xf32> to vector<24x128xf32>
    %392 = arith.negf %391 : vector<24x128xf32>
    %393 = math.exp %392 : vector<24x128xf32>
    %cst_167 = arith.constant 1.000000e+00 : f32
    %394 = vector.broadcast %cst_167 : f32 to vector<24x128xf32>
    %395 = arith.addf %394, %393 : vector<24x128xf32>
    %396 = arith.divf %394, %395 : vector<24x128xf32>
    %397 = vector.extract_strided_slice %390 {offsets = [24, 0], sizes = [8, 128], strides = [1, 1]} : vector<32x128xf32> to vector<8x128xf32>
    %398 = math.tanh %397 : vector<8x128xf32>
    %399 = vector.extract_strided_slice %396 {offsets = [8, 0], sizes = [8, 128], strides = [1, 1]} : vector<24x128xf32> to vector<8x128xf32>
    %400 = arith.mulf %399, %383 : vector<8x128xf32>
    %401 = vector.extract_strided_slice %396 {offsets = [0, 0], sizes = [8, 128], strides = [1, 1]} : vector<24x128xf32> to vector<8x128xf32>
    %402 = arith.mulf %401, %398 : vector<8x128xf32>
    %403 = arith.addf %400, %402 : vector<8x128xf32>
    %404 = vector.extract_strided_slice %396 {offsets = [16, 0], sizes = [8, 128], strides = [1, 1]} : vector<24x128xf32> to vector<8x128xf32>
    %405 = math.tanh %403 : vector<8x128xf32>
    %406 = arith.mulf %404, %405 : vector<8x128xf32>
    %c0_168 = arith.constant 0 : index
    %c0_169 = arith.constant 0 : index
    %407 = vector.load %arg5[%c0_168, %c0_169] : memref<16x128xf32, #tpu.memory_space<vmem>>, vector<8x128xf32>
    tpu.vector_store %arg5[%c0_168, %c0_169], %406 {strides = array<i32>} : memref<16x128xf32, #tpu.memory_space<vmem>>, vector<8x128xf32>,
    %c0_170 = arith.constant 0 : index
    %c0_171 = arith.constant 0 : index
    %408 = vector.load %arg6[%c0_170, %c0_171] : memref<16x128xf32, #tpu.memory_space<vmem>>, vector<8x128xf32>
    tpu.vector_store %arg6[%c0_170, %c0_171], %403 {strides = array<i32>} : memref<16x128xf32, #tpu.memory_space<vmem>>, vector<8x128xf32>,
    %c0_172 = arith.constant 0 : index
    %c0_173 = arith.constant 0 : index
    %409 = vector.load %arg5[%c0_172, %c0_173] : memref<16x128xf32, #tpu.memory_space<vmem>>, vector<16x128xf32>
    %c8_174 = arith.constant 8 : index
    %c0_175 = arith.constant 0 : index
    %410 = vector.load %arg6[%c8_174, %c0_175] : memref<16x128xf32, #tpu.memory_space<vmem>>, vector<8x128xf32>
    %cst_176 = arith.constant dense<0.000000e+00> : vector<32x128xf32>
    %411 = tpu.matmul %4, %409, %cst_176 {dimension_numbers = #tpu.dot_dimension_numbers<[1], [0], [0], [1], [0, 0, 1, 1], [], []>, precision = #tpu.contract_precision<fp32>} : vector<32x16xf32>, vector<16x128xf32>, vector<32x128xf32> -> vector<32x128xf32>
    %412 = vector.broadcast %7 : vector<32x1xf32> to vector<32x128xf32>
    %413 = arith.addf %412, %411 : vector<32x128xf32>
    %414 = vector.extract_strided_slice %413 {offsets = [0, 0], sizes = [24, 128], strides = [1, 1]} : vector<32x128xf32> to vector<24x128xf32>
    %415 = arith.negf %414 : vector<24x128xf32>
    %416 = math.exp %415 : vector<24x128xf32>
    %cst_177 = arith.constant 1.000000e+00 : f32
    %417 = vector.broadcast %cst_177 : f32 to vector<24x128xf32>
    %418 = arith.addf %417, %416 : vector<24x128xf32>
    %419 = arith.divf %417, %418 : vector<24x128xf32>
    %420 = vector.extract_strided_slice %413 {offsets = [24, 0], sizes = [8, 128], strides = [1, 1]} : vector<32x128xf32> to vector<8x128xf32>
    %421 = math.tanh %420 : vector<8x128xf32>
    %422 = vector.extract_strided_slice %419 {offsets = [8, 0], sizes = [8, 128], strides = [1, 1]} : vector<24x128xf32> to vector<8x128xf32>
    %423 = arith.mulf %422, %410 : vector<8x128xf32>
    %424 = vector.extract_strided_slice %419 {offsets = [0, 0], sizes = [8, 128], strides = [1, 1]} : vector<24x128xf32> to vector<8x128xf32>
    %425 = arith.mulf %424, %421 : vector<8x128xf32>
    %426 = arith.addf %423, %425 : vector<8x128xf32>
    %427 = vector.extract_strided_slice %419 {offsets = [16, 0], sizes = [8, 128], strides = [1, 1]} : vector<24x128xf32> to vector<8x128xf32>
    %428 = math.tanh %426 : vector<8x128xf32>
    %429 = arith.mulf %427, %428 : vector<8x128xf32>
    %c8_178 = arith.constant 8 : index
    %c0_179 = arith.constant 0 : index
    %430 = vector.load %arg5[%c8_178, %c0_179] : memref<16x128xf32, #tpu.memory_space<vmem>>, vector<8x128xf32>
    tpu.vector_store %arg5[%c8_178, %c0_179], %429 {strides = array<i32>} : memref<16x128xf32, #tpu.memory_space<vmem>>, vector<8x128xf32>,
    %c8_180 = arith.constant 8 : index
    %c0_181 = arith.constant 0 : index
    %431 = vector.load %arg6[%c8_180, %c0_181] : memref<16x128xf32, #tpu.memory_space<vmem>>, vector<8x128xf32>
    tpu.vector_store %arg6[%c8_180, %c0_181], %426 {strides = array<i32>} : memref<16x128xf32, #tpu.memory_space<vmem>>, vector<8x128xf32>,
    %c8_i32 = arith.constant 8 : i32
    %c0_i32_182 = arith.constant 0 : i32
    %432 = arith.cmpi eq, %arg1, %c0_i32_182 : i32
    %433 = arith.extui %432 : i1 to i32
    %c0_i32_183 = arith.constant 0 : i32
    %434 = arith.cmpi ne, %433, %c0_i32_183 : i32
    scf.if %434 {
      %c0_184 = arith.constant 0 : index
      %c27 = arith.constant 27 : index
      %435 = vector.load %arg3[%c0_184, %c27] : memref<32x29xf32, #tpu.memory_space<vmem>>, vector<8x1xf32>
      %c0_185 = arith.constant 0 : index
      %c28 = arith.constant 28 : index
      %436 = vector.load %arg3[%c0_185, %c28] : memref<32x29xf32, #tpu.memory_space<vmem>>, vector<1x1xf32>
      %c8_186 = arith.constant 8 : index
      %c0_187 = arith.constant 0 : index
      %437 = vector.load %arg5[%c8_186, %c0_187] : memref<16x128xf32, #tpu.memory_space<vmem>>, vector<8x128xf32>
      %cst_188 = arith.constant 0.000000e+00 : f32
      %438 = vector.broadcast %cst_188 : f32 to vector<8x128xf32>
      %439 = arith.maximumf %437, %438 : vector<8x128xf32>
      %440 = vector.broadcast %435 : vector<8x1xf32> to vector<8x128xf32>
      %441 = arith.mulf %439, %440 : vector<8x128xf32>
      %cst_189 = arith.constant dense<0.000000e+00> : vector<128xf32>
      %442 = vector.multi_reduction <add>, %441, %cst_189 [0] : vector<8x128xf32> to vector<128xf32>
      %443 = vector.shape_cast %442 : vector<128xf32> to vector<1x128xf32>
      %444 = vector.broadcast %436 : vector<1x1xf32> to vector<1x128xf32>
      %445 = arith.addf %443, %444 : vector<1x128xf32>
      %cst_190 = arith.constant 0.000000e+00 : f32
      %446 = vector.broadcast %cst_190 : f32 to vector<1x128xf32>
      %447 = arith.maximumf %445, %446 : vector<1x128xf32>
      %c0_191 = arith.constant 0 : index
      %c0_192 = arith.constant 0 : index
      %448 = vector.load %arg4[%c0_191, %c0_192] : memref<1x128xf32, #tpu.memory_space<vmem>>, vector<1x128xf32>
      tpu.vector_store %arg4[%c0_191, %c0_192], %447 {strides = array<i32>} : memref<1x128xf32, #tpu.memory_space<vmem>>, vector<1x128xf32>,
    } else {
    }
    return
  }
  func.func @transform_0(%arg0: i32, %arg1: i32) -> (i32, i32, i32) {
    %c0_i32 = arith.constant 0 : i32
    %c0_i32_0 = arith.constant 0 : i32
    return %arg1, %c0_i32, %arg0 : i32, i32, i32
  }
  func.func @transform_1(%arg0: i32, %arg1: i32) -> (i32, i32) {
    %c0_i32 = arith.constant 0 : i32
    %c0_i32_0 = arith.constant 0 : i32
    %c0_i32_1 = arith.constant 0 : i32
    return %c0_i32, %c0_i32_0 : i32, i32
  }
  func.func @transform_2(%arg0: i32, %arg1: i32) -> (i32, i32) {
    %c0_i32 = arith.constant 0 : i32
    %c0_i32_0 = arith.constant 0 : i32
    return %c0_i32, %arg0 : i32, i32
  }
}

</mosaic_0001>

<bundles_post_ra>
// kernel: tpu_custom_call.1
= control target key start
LH: loop header
LB: loop body
LE: loop exit
PB: predicated region body
PF: predicated region fallthrough
CT: control target
= control target key end

     0   :  { %7 = vsyncpa [#allocation5], 0  ;;  %s6924_s0 = inlined_call_operand.hbm [shape: f32[8,1,128], index: 0, kind: input, shape index: {}]   ;;  %s6925_s1 = inlined_call_operand.hbm [shape: f32[32,29], index: 1, kind: input, shape index: {}]   ;;  %s6926_s2 = inlined_call_operand.hbm [shape: f32[1,128], index: 2, kind: output, shape index: {}]  }
   0x1   :  { %8 = vsyncpa [#allocation8], 0 }
   0x2   :  { %9 = vsyncpa [#allocation6], 0  ;;  %s14_s11 = sshll.u32 %s6924_s0, 4  ;;  %s5767_s12 = smov [#allocation4]   ;;  %s15_s11 = int_to_ptr.hbm [resolvable:$true] %s14_s11 }
   0x3   :  { %s16_s13 = sshll.u32 %s5767_s12, 4  ;;  %s27_s16 = sshll.u32 %s6925_s1, 4  ;;  %s17_s13 = int_to_ptr.vmem [resolvable:$true] %s16_s13  ;;  %s28_s16 = int_to_ptr.hbm [resolvable:$true] %s27_s16 }
   0x4   :  { %s5768_s17 = smov 16   ;;  %s5769_s18 = smov 1  }
   0x5   :  { %22 = dma.hbm_to_vmem [thread:$0]  %s15_s11, 128, %s17_s13, [#allocation5], %s5768_s17, %s5768_s17, %s5769_s18  }
   0x6   :  { %s5770_s19 = smov [#allocation7]   ;;  %s5771_s21 = smov 128  }
   0x7   :  { %s29_s20 = sshll.u32 %s5770_s19, 4  ;;  %s5772_s22 = smov 8   ;;  %s30_s20 = int_to_ptr.vmem [resolvable:$true] %s29_s20 }
   0x8   :  { %35 = dma.hbm_to_vmem [thread:$0]  %s28_s16, 512, %s30_s20, [#allocation8], %s5771_s21, %s5771_s21, %s5772_s22  }
   0x9   :  { %5761 = dma.done.wait [#allocation5], 128  }
   0xa   :  { %5762 = vsyncadd [#allocation5], 4294967168 }
   0xb   :  { %5763 = dma.done.wait [#allocation8], 512  }
   0xc   :  { %5764 = vsyncadd [#allocation8], 4294966784  ;;  %v5773_v0 = vmov 0.0   ;;  %vm106_vm0 = vcmask 64512   ;;  %v5802_v1 = vld [vmem:[#allocation7] sm:$0xff]  ;;  %v5804_v2 = vld [vmem:[#allocation7 + $0x8] sm:$0xff] }
   0xd   :  { %220 = vmatpush.msra.mxu2 %v5773_v0  ;;  %258 = vmatpush.msra.mxu3 %v5773_v0  ;;  %v107_v3 = vsel %vm106_vm0, %v5802_v1, 0  ;;  %v109_v4 = vsel %vm106_vm0, %v5804_v2, 0  ;;  %v5814_v7 = vld [vmem:[#allocation7 + $0x10] sm:$0xff]  ;;  %v5774_v11 = vmov 24   ;;  %v5775_v13 = vmov 25   ;;  %v5842_v18 = vld [vmem:[#allocation7 + $0x18] sm:$0xff] }
   0xe   :  { %131 = vmatpush.msra.mxu0 %v5773_v0  ;;  %185 = vmatpush.msra.mxu1 %v5773_v0  ;;  %v5810_v5 = vand.u32 4294901760, %v107_v3  ;;  %v5812_v6 = vand.u32 4294901760, %v109_v4  ;;  %v111_v10 = vsel %vm106_vm0, %v5814_v7, 0  ;;  %v113_v21 = vsel %vm106_vm0, %v5842_v18, 0  ;;  %s5776_s0 = smov 120   ;;  %s5780_s1 = smov [#allocation9]  }
   0xf   :  { %5416 = vset.pattern.permute.xlu0 %v5774_v11  ;;  %5418 = vset.pattern.permute.xlu2 %v5774_v11  ;;  %v5837_v16 = vand.u32 4294901760, %v111_v10  ;;  %v5861_v24 = vand.u32 4294901760, %v113_v21  ;;  %v5426_v39 = vld [vmem:[#allocation4 + $0x1] ss:$0 sm:$0xff]  ;;  %v5427_v40 = vld [vmem:[#allocation4 + $0x2] ss:$0 sm:$0xff] }
  0x10   :  { %302 = vmatpush.msrb.mxu0 %v5773_v0  ;;  %336 = vmatpush.msrb.mxu1 %v5773_v0  ;;  %v5817_v8 = vsub.f32 %v107_v3, %v5810_v5  ;;  %v5821_v9 = vsub.f32 %v109_v4, %v5812_v6  ;;  %v5428_v42 = vld [vmem:[#allocation4 + $0x3] ss:$0 sm:$0xff]  ;;  %v5429_v50 = vld [vmem:[#allocation4 + $0x4] ss:$0 sm:$0xff]  ;;  %v5430_v60 = vld [vmem:[#allocation4 + $0x5] ss:$0 sm:$0xff] }
  0x11   :  { %187 = vmatmul.f32.vlgmr.msra.gmra.mxu1 %v5810_v5  ;;  %61 = vperm.xlu0 %5416, %v5802_v1   ;;  %v5849_v20 = vsub.f32 %v111_v10, %v5837_v16  ;;  %v5870_v26 = vsub.f32 %v113_v21, %v5861_v24  ;;  %vm434_vm1 = vcmask 130048   ;;  %s5341_s23 = sshll.u32 %s5780_s1, 4  ;;  %s5343_s26 = sshll.u32 %s6926_s2, 4  ;;  %s5342_s23 = int_to_ptr.vmem [resolvable:$true] %s5341_s23  ;;  %s5344_s26 = int_to_ptr.hbm [resolvable:$true] %s5343_s26 }
  0x12   :  { %6949 = vst [vmem:[#allocation13_spill] sm:$0xff] %v5821_v9  ;;  %223 = vmatmul.f32.vlgmr.msra.gmra.mxu2 %v5817_v8  ;;  %v5827_v12 = vand.u32 4294901760, %v5817_v8  ;;  %5417 = vset.pattern.permute.xlu1 %v5775_v13  ;;  %v5835_v15 = vand.u32 4294901760, %v5821_v9 }
  0x13   :  { %71 = vperm.xlu2 %5418, %v5814_v7   ;;  %87 = vperm.xlu1 %5417, %v5802_v1   ;;  %6952 = vst [vmem:[#allocation16_spill] sm:$0xff] %v5849_v20  ;;  %v5859_v23 = vand.u32 4294901760, %v5849_v20  ;;  %v5878_v28 = vand.u32 4294901760, %v5870_v26 }
  0x14   :  { %6950 = vst [vmem:[#allocation14_spill] sm:$0xff] %v5827_v12  ;;  %262 = vmatmul.f32.vlgmr.msra.gmra.mxu3 %v5827_v12  ;;  %v135_v14 = vsub.f32 %v5817_v8, %v5827_v12  ;;  %v143_v19 = vsub.f32 %v5821_v9, %v5835_v15 }
  0x15   :  { %6951 = vst [vmem:[#allocation15_spill] sm:$0xff] %v5835_v15  ;;  %v151_v25 = vsub.f32 %v5849_v20, %v5859_v23  ;;  %v159_v29 = vsub.f32 %v5870_v26, %v5878_v28 }
  0x16   :  { %v5840_v17 = vand.u32 4294901760, %v135_v14  ;;  %v5856_v22 = vand.u32 4294901760, %v143_v19  ;;  %6953 = vst [vmem:[#allocation17_spill] sm:$0xff] %v5859_v23  ;;  %v5431_v14 = vld [vmem:[#allocation4 + $0x6] ss:$0 sm:$0xff] }
  0x17   :  { %6954 = vst [vmem:[#allocation18_spill] sm:$0xff] %v5870_v26  ;;  %v5875_v27 = vand.u32 4294901760, %v151_v25  ;;  %v5889_v30 = vand.u32 4294901760, %v159_v29 }
  0x18   :  { %137 = vmatmul.f32.vlgmr.msra.gmra.mxu0 %v5840_v17  ;;  %6955 = vst [vmem:[#allocation19_spill] sm:$0xff] %v5878_v28 }
  0x19   :  { %191 = vmatmul.f32.gmra.mxu1 %v5812_v6  ;;  %66 = vperm.xlu0 %5416, %v5804_v2  }
  0x1a   :  { %228 = vmatmul.f32.gmra.mxu2 %v5821_v9 }
  0x1b   :  { %5419 = vset.pattern.permute.xlu2 %v5775_v13  ;;  %91 = vperm.xlu1 %5417, %v5804_v2  }
  0x1c   :  { %268 = vmatmul.f32.gmra.mxu3 %v5835_v15  ;;  %95 = vperm.xlu2 %5419, %v5814_v7  }
  0x20   :  { %145 = vmatmul.f32.gmra.mxu0 %v5856_v22 }
  0x21   :  { %195 = vmatmul.f32.gmra.mxu1 %v5837_v16  ;;  %76 = vperm.xlu0 %5416, %v5842_v18  }
  0x22   :  { %233 = vmatmul.f32.gmra.mxu2 %v5849_v20 }
  0x23   :  { %99 = vperm.xlu1 %5417, %v5842_v18  }
  0x24   :  { %274 = vmatmul.f32.gmra.mxu3 %v5859_v23  ;;  %426 = vrot.lane.b32.xlu2 %v5802_v1, %s5776_s0 }
  0x28   :  { %153 = vmatmul.f32.gmra.mxu0 %v5875_v27 }
  0x29   :  { %199 = vmatmul.f32.gmra.mxu1 %v5861_v24  ;;  %428 = vrot.lane.b32.xlu0 %v5804_v2, %s5776_s0 }
  0x2a   :  { %238 = vmatmul.f32.gmra.mxu2 %v5870_v26 }
  0x2b   :  { %430 = vrot.lane.b32.xlu1 %v5814_v7, %s5776_s0 }
  0x2c   :  { %280 = vmatmul.f32.gmra.mxu3 %v5878_v28  ;;  %432 = vrot.lane.b32.xlu2 %v5842_v18, %s5776_s0 }
  0x30   :  { %161 = vmatmul.f32.gmra.mxu0 %v5889_v30 }
  0x31   :  { %338 = vmatmul.f32.vlgmr.msrb.gmra.mxu1 %v5810_v5 }
  0x38   :  { %304 = vmatmul.f32.vlgmr.msrb.gmra.mxu0 %v5810_v5 }
  0x39   :  { %342 = vmatmul.f32.gmra.mxu1 %v5812_v6 }
  0x40   :  { %308 = vmatmul.f32.gmra.mxu0 %v5812_v6 }
  0x41   :  { %346 = vmatmul.f32.gmra.mxu1 %v5837_v16 }
  0x48   :  { %312 = vmatmul.f32.gmra.mxu0 %v5837_v16 }
  0x49   :  { %350 = vmatmul.f32.gmra.mxu1 %v5861_v24 }
  0x50   :  { %316 = vmatmul.f32.gmra.mxu0 %v5861_v24 }
  0x6d   :  { %v5927_v51 = vpop.permute.xlu2 %71 }
  0x83   :  { %v5902_v31 = vpop.permute.xlu0 %61 }
  0x84   :  { %v787_v43 = vmul.f32 %v5426_v39, %v5902_v31  ;;  %v1434_v46 = vmul.f32 %v5427_v40, %v5902_v31  ;;  %v2081_v49 = vmul.f32 %v5428_v42, %v5902_v31  ;;  %v2728_v63 = vmul.f32 %v5429_v50, %v5902_v31 }
  0x85   :  { %v5904_v32 = vpop.permute.xlu1 %87  ;;  %v3375_v11 = vmul.f32 %v5430_v60, %v5902_v31 }
  0x86   :  { %v5930_v52 = vadd.f32 %v787_v43, %v5904_v32  ;;  %v5939_v55 = vadd.f32 %v1434_v46, %v5904_v32  ;;  %v5948_v58 = vadd.f32 %v2081_v49, %v5904_v32  ;;  %v5966_v21 = vadd.f32 %v2728_v63, %v5904_v32  ;;  %v5432_v46 = vld [vmem:[#allocation4 + $0x7] ss:$0 sm:$0xff]  ;;  %v5988_v63 = vpop.permute.xlu2 %95 }
  0x87   :  { %v5975_v43 = vadd.f32 %v3375_v11, %v5904_v32 }
  0x88   :  { %6956 = vst [vmem:[#allocation20_spill] sm:$0xff] %v5939_v55 }
  0x89   :  { %6959 = vst [vmem:[#allocation23_spill] sm:$0xff] %v5948_v58 }
  0x8a   :  { %6962 = vst [vmem:[#allocation26_spill] sm:$0xff] %v5966_v21 }
  0x8b   :  { %v5906_v33 = vpop.permute.xlu0 %66  ;;  %6965 = vst [vmem:[#allocation29_spill] sm:$0xff] %v5975_v43 }
  0x8c   :  { %v788_v44 = vmul.f32 %v5426_v39, %v5906_v33  ;;  %v1435_v47 = vmul.f32 %v5427_v40, %v5906_v33  ;;  %v2082_v59 = vmul.f32 %v5428_v42, %v5906_v33  ;;  %v2729_v0 = vmul.f32 %v5429_v50, %v5906_v33 }
  0x8d   :  { %v5910_v35 = vpop.permute.xlu1 %91  ;;  %v3376_v13 = vmul.f32 %v5430_v60, %v5906_v33 }
  0x8e   :  { %v5908_v34 = vpop.f32.mrf.mxu1  ;;  %v5933_v53 = vadd.f32 %v788_v44, %v5910_v35  ;;  %v5942_v56 = vadd.f32 %v1435_v47, %v5910_v35  ;;  %v5958_v10 = vadd.f32 %v2082_v59, %v5910_v35  ;;  %v5969_v25 = vadd.f32 %v2729_v0, %v5910_v35 }
  0x8f   :  { %v5978_v44 = vadd.f32 %v3376_v13, %v5910_v35  ;;  %v4022_v47 = vmul.f32 %v5431_v14, %v5902_v31  ;;  %v4670_v13 = vmul.f32 %v5432_v46, %v5906_v33 }
  0x90   :  { %6957 = vst [vmem:[#allocation21_spill] sm:$0xff] %v5942_v56 }
  0x91   :  { %6960 = vst [vmem:[#allocation24_spill] sm:$0xff] %v5958_v10  ;;  %v5991_v0 = vadd.f32 %v4022_v47, %v5904_v32  ;;  %v6007_v47 = vadd.f32 %v4670_v13, %v5910_v35 }
  0x92   :  { %6963 = vst [vmem:[#allocation27_spill] sm:$0xff] %v5969_v25 }
  0x93   :  { %v5916_v38 = vpop.permute.xlu0 %76  ;;  %6966 = vst [vmem:[#allocation30_spill] sm:$0xff] %v5978_v44  ;;  %v789_v44 = vmul.f32 %v5426_v39, %v5927_v51 }
  0x94   :  { %v790_v45 = vmul.f32 %v5426_v39, %v5916_v38  ;;  %v1437_v48 = vmul.f32 %v5427_v40, %v5916_v38  ;;  %v2084_v62 = vmul.f32 %v5428_v42, %v5916_v38  ;;  %v2731_v3 = vmul.f32 %v5429_v50, %v5916_v38  ;;  %6968 = vst [vmem:[#allocation32_spill] sm:$0xff] %v5991_v0  ;;  %v5425_v0 = vld [vmem:[#allocation4] ss:$0 sm:$0xff] }
  0x95   :  { %v5912_v36 = vpop.f32.mrf.mxu0  ;;  %v5918_v41 = vpop.permute.xlu1 %99  ;;  %v4025_v49 = vmul.f32 %v5431_v14, %v5916_v38  ;;  %6972 = vst [vmem:[#allocation36_spill] sm:$0xff] %v6007_v47 }
  0x96   :  { %v5914_v37 = vpop.f32.mrf.mxu1  ;;  %v5936_v54 = vadd.f32 %v790_v45, %v5918_v41  ;;  %v5945_v57 = vadd.f32 %v1437_v48, %v5918_v41  ;;  %v5963_v19 = vadd.f32 %v2084_v62, %v5918_v41  ;;  %v5972_v29 = vadd.f32 %v2731_v3, %v5918_v41  ;;  %v224_v39 = vpop.f32.mrf.mxu2 }
  0x97   :  { %v3378_v45 = vmul.f32 %v5430_v60, %v5916_v38  ;;  %v4023_v48 = vmul.f32 %v5431_v14, %v5906_v33  ;;  %v4669_v62 = vmul.f32 %v5432_v46, %v5902_v31  ;;  %v5997_v11 = vadd.f32 %v4025_v49, %v5918_v41  ;;  %v263_v47 = vpop.f32.mrf.mxu3 }
  0x98   :  { %6958 = vst [vmem:[#allocation22_spill] sm:$0xff] %v5945_v57  ;;  %v2083_v49 = vmul.f32 %v5428_v42, %v5927_v51  ;;  %v189_v42 = vadd.f32 %v5908_v34, %v5912_v36  ;;  %v82_v34 = vmul.f32 %v5425_v0, %v5902_v31 }
  0x99   :  { %6961 = vst [vmem:[#allocation25_spill] sm:$0xff] %v5963_v19  ;;  %v5985_v59 = vadd.f32 %v3378_v45, %v5918_v41  ;;  %v5994_v3 = vadd.f32 %v4023_v48, %v5910_v35  ;;  %v6002_v45 = vadd.f32 %v4669_v62, %v5904_v32  ;;  %v6010_v48 = vadd.f32 %v789_v44, %v5988_v63 }
  0x9a   :  { %6964 = vst [vmem:[#allocation28_spill] sm:$0xff] %v5972_v29  ;;  %v1436_v29 = vmul.f32 %v5427_v40, %v5927_v51  ;;  %v2730_v40 = vmul.f32 %v5429_v50, %v5927_v51  ;;  %v3377_v44 = vmul.f32 %v5430_v60, %v5927_v51  ;;  %v4671_v50 = vmul.f32 %v5432_v46, %v5927_v51 }
  0x9b   :  { %6967 = vst [vmem:[#allocation31_spill] sm:$0xff] %v5985_v59  ;;  %v4672_v59 = vmul.f32 %v5432_v46, %v5916_v38  ;;  %v102_v19 = vadd.f32 %v5904_v32, %v82_v34 }
  0x9c   :  { %6969 = vst [vmem:[#allocation33_spill] sm:$0xff] %v5994_v3  ;;  %v6017_v62 = vadd.f32 %v1436_v29, %v5988_v63  ;;  %v6024_v13 = vadd.f32 %v2730_v40, %v5988_v63  ;;  %v4024_v29 = vmul.f32 %v5431_v14, %v5927_v51  ;;  %v6038_v60 = vadd.f32 %v4671_v50, %v5988_v63 }
  0x9d   :  { %v146_v61 = vpop.f32.mrf.mxu0  ;;  %6970 = vst [vmem:[#allocation34_spill] sm:$0xff] %v5997_v11  ;;  %v6014_v11 = vadd.f32 %v4672_v59, %v5918_v41  ;;  %v6030_v59 = vadd.f32 %v3377_v44, %v5988_v63 }
  0x9e   :  { %v5955_v4 = vpop.f32.mrf.mxu1  ;;  %6971 = vst [vmem:[#allocation35_spill] sm:$0xff] %v6002_v45  ;;  %v6020_v45 = vadd.f32 %v2083_v49, %v5988_v63  ;;  %v6034_v49 = vadd.f32 %v4024_v29, %v5988_v63  ;;  %v229_v25 = vpop.f32.mrf.mxu2  ;;  %v193_v44 = vadd.f32 %v5914_v37, %v146_v61 }
  0x9f   :  { %6973 = vst [vmem:[#allocation37_spill] sm:$0xff] %v6014_v11 }
  0xa0   :  { %6974 = vst [vmem:[#allocation38_spill] sm:$0xff] %v6017_v62  ;;  %v230_v29 = vadd.f32 %v229_v25, %v193_v44 }
  0xa1   :  { %6975 = vst [vmem:[#allocation39_spill] sm:$0xff] %v6020_v45 }
  0xa2   :  { %6976 = vst [vmem:[#allocation40_spill] sm:$0xff] %v6024_v13  ;;  %v225_v13 = vadd.f32 %v224_v39, %v189_v42 }
  0xa3   :  { %6977 = vst [vmem:[#allocation41_spill] sm:$0xff] %v6030_v59  ;;  %v269_v59 = vpop.f32.mrf.mxu3 }
  0xa4   :  { %6978 = vst [vmem:[#allocation42_spill] sm:$0xff] %v6034_v49  ;;  %v264_v36 = vadd.f32 %v263_v47, %v225_v13  ;;  %v270_v39 = vadd.f32 %v269_v59, %v230_v29  ;;  %v84_v59 = vmul.f32 %v5425_v0, %v5927_v51 }
  0xa5   :  { %v154_v43 = vpop.f32.mrf.mxu0  ;;  %6979 = vst [vmem:[#allocation43_spill] sm:$0xff] %v6038_v60  ;;  %v83_v60 = vmul.f32 %v5425_v0, %v5906_v33 }
  0xa6   :  { %v200_v3 = vpop.f32.mrf.mxu1  ;;  %v234_v10 = vpop.f32.mrf.mxu2  ;;  %v197_v42 = vadd.f32 %v5955_v4, %v154_v43 }
  0xa7   :  { %v103_v13 = vadd.f32 %v5910_v35, %v83_v60 }
  0xa8   :  { %v235_v61 = vadd.f32 %v234_v10, %v197_v42  ;;  %v104_v10 = vadd.f32 %v5988_v63, %v84_v59 }
  0xab   :  { %v275_v37 = vpop.f32.mrf.mxu3 }
  0xad   :  { %v162_v11 = vpop.f32.mrf.mxu0 }
  0xae   :  { %v339_v40 = vpop.f32.mrf.mxu1  ;;  %v239_v4 = vpop.f32.mrf.mxu2 }
  0xb3   :  { %v281_v35 = vpop.f32.mrf.mxu3 }
  0xb5   :  { %v305_v14 = vpop.f32.mrf.mxu0 }
  0xb6   :  { %v306_v21 = vadd.f32 %v305_v14, %v264_v36  ;;  %v343_v45 = vpop.f32.mrf.mxu1 }
  0xb8   :  { %v340_v49 = vadd.f32 %v339_v40, %v306_v21  ;;  %v276_v40 = vadd.f32 %v275_v37, %v235_v61 }
  0xba   :  { %v354_v46 = vadd.f32 %v340_v49, %v102_v19  ;;  %v201_v19 = vadd.f32 %v200_v3, %v162_v11  ;;  %v85_v3 = vmul.f32 %v5425_v0, %v5916_v38 }
  0xbc   :  { %v5354_v50 = vmul.f32 -1.442695, %v354_v46  ;;  %v240_v44 = vadd.f32 %v239_v4, %v201_v19  ;;  %v105_v37 = vadd.f32 %v5918_v41, %v85_v3  ;;  %v429_v3 = vpop.permute.xlu0 %428 }
  0xbd   :  { %v309_v31 = vpop.f32.mrf.mxu0 }
  0xbe   :  { %5433 = vpow2.f32 %v5354_v50  ;;  %v310_v47 = vadd.f32 %v309_v31, %v270_v39  ;;  %v347_v25 = vpop.f32.mrf.mxu1  ;;  %v282_v29 = vadd.f32 %v281_v35, %v240_v44 }
  0xc0   :  { %v344_v36 = vadd.f32 %v343_v45, %v310_v47 }
  0xc2   :  { %v355_v32 = vadd.f32 %v344_v36, %v103_v13 }
  0xc4   :  { %v5434_v21 = vpop.eup %5433  ;;  %v5355_v49 = vmul.f32 -1.442695, %v355_v32 }
  0xc5   :  { %v367_v43 = vadd.f32 1.0, %v5434_v21  ;;  %v313_v34 = vpop.f32.mrf.mxu0  ;;  %v427_v21 = vpop.permute.xlu2 %426 }
  0xc6   :  { %5435 = vpow2.f32 %v5355_v49  ;;  %v314_v33 = vadd.f32 %v313_v34, %v276_v40  ;;  %v351_v42 = vpop.f32.mrf.mxu1  ;;  %v435_v19 = vsel %vm434_vm1, %v427_v21, 0 }
  0xc7   :  { %5437 = vrcp.f32 %v367_v43  ;;  %vm375_vm3 = vweird.f32 %v367_v43  ;;  %v381_v59 = vand.u32 2147483648, %v367_v43  ;;  %v379_v4 = vand.u32 2147483647, %v367_v43 }
  0xc8   :  { %v348_v14 = vadd.f32 %v347_v25, %v314_v33  ;;  %v6055_v44 = vand.u32 4294901760, %v435_v19 }
  0xc9   :  { %vm380_vm8 = vcmp.eq.f32.partialorder %v379_v4, 8.507059e+37 }
  0xca   :  { %v356_v45 = vadd.f32 %v348_v14, %v104_v10 }
  0xcc   :  { %v5436_v60 = vpop.eup %5435  ;;  %v5356_v46 = vmul.f32 -1.442695, %v356_v45 }
  0xcd   :  { %v5438_v11 = vpop.eup %5437  ;;  %v368_v39 = vadd.f32 1.0, %v5436_v60  ;;  %v317_v51 = vpop.f32.mrf.mxu0 }
  0xce   :  { %v371_v50 = vmul.f32 %v5438_v11, %v367_v43  ;;  %5439 = vpow2.f32 %v5356_v46  ;;  %v318_v31 = vadd.f32 %v317_v51, %v282_v29  ;;  %vm376_vm2 = vweird.f32 %v5438_v11 }
  0xcf   :  { %5441 = vrcp.f32 %v368_v39  ;;  %v396_v49 = vand.u32 2147483648, %v368_v39  ;;  %v394_v34 = vand.u32 2147483647, %v368_v39  ;;  %vm6051_vm5 = vmor %vm375_vm3, %vm376_vm2  ;;  %vm390_vm6 = vweird.f32 %v368_v39 }
  0xd0   :  { %v372_v47 = vsub.f32 1.0, %v371_v50  ;;  %v352_v63 = vadd.f32 %v351_v42, %v318_v31  ;;  %v382_v29 = vor.u32 1.1754944e-38, %v381_v59  ;;  %v6060_v50 = vsub.f32 %v435_v19, %v6055_v44 }
  0xd1   :  { %v397_v60 = vor.u32 1.1754944e-38, %v396_v49  ;;  %vm395_vm9 = vcmp.eq.f32.partialorder %v394_v34, 8.507059e+37 }
  0xd2   :  { %v357_v61 = vadd.f32 %v352_v63, %v105_v37  ;;  %v373_v36 = vmul.f32 %v5438_v11, %v372_v47 }
  0xd4   :  { %v5440_v13 = vpop.eup %5439  ;;  %5443 = vtanh.f32 %v357_v61  ;;  %v374_v40 = vadd.f32 %v5438_v11, %v373_v36  ;;  %v6066_v61 = vand.u32 4294901760, %v6060_v50 }
  0xd5   :  { %v5442_v32 = vpop.eup %5441  ;;  %v369_v25 = vadd.f32 1.0, %v5440_v13 }
  0xd6   :  { %v386_v38 = vmul.f32 %v5442_v32, %v368_v39  ;;  %vm391_vm4 = vweird.f32 %v5442_v32  ;;  %v378_v14 = vsel %vm6051_vm5, %v5438_v11, %v374_v40  ;;  %v437_v11 = vsel %vm434_vm1, %v429_v3, 0 }
  0xd7   :  { %5445 = vrcp.f32 %v369_v25  ;;  %vm392_vm7 = vmor %vm390_vm6, %vm391_vm4  ;;  %v383_v51 = vsel %vm380_vm8, %v382_v29, %v378_v14  ;;  %v411_v36 = vand.u32 2147483648, %v369_v25  ;;  %vm405_vm11 = vweird.f32 %v369_v25 }
  0xd8   :  { %v387_v0 = vsub.f32 1.0, %v386_v38  ;;  %v409_v21 = vand.u32 2147483647, %v369_v25  ;;  %v431_v38 = vpop.permute.xlu1 %430  ;;  %v464_v49 = vsub.f32 %v6060_v50, %v6066_v61 }
  0xd9   :  { %v412_v40 = vor.u32 1.1754944e-38, %v411_v36  ;;  %v439_v59 = vsel %vm434_vm1, %v431_v38, 0  ;;  %v5777_v38 = vmov 26  }
  0xda   :  { %v388_v41 = vmul.f32 %v5442_v32, %v387_v0  ;;  %v5444_v10 = vpop.eup %5443  ;;  %vm410_vm13 = vcmp.eq.f32.partialorder %v409_v21, 8.507059e+37  ;;  %5420 = vset.pattern.permute.xlu0 %v5777_v38  ;;  %5421 = vset.pattern.permute.xlu1 %v5777_v38 }
  0xdb   :  { %v417_v47 = vmul.f32 %v5444_v10, %v383_v51  ;;  %v6082_v10 = vand.u32 4294901760, %v439_v59  ;;  %696 = vperm.xlu0 %5420, %v5802_v1   ;;  %700 = vperm.xlu1 %5421, %v5804_v2  }
  0xdc   :  { %v389_v35 = vadd.f32 %v5442_v32, %v388_v41  ;;  %5422 = vset.pattern.permute.xlu2 %v5777_v38 }
  0xdd   :  { %v5446_v45 = vpop.eup %5445  ;;  %704 = vperm.xlu2 %5422, %v5814_v7  }
  0xde   :  { %v401_v46 = vmul.f32 %v5446_v45, %v369_v25  ;;  %v393_v43 = vsel %vm392_vm7, %v5442_v32, %v389_v35  ;;  %vm406_vm10 = vweird.f32 %v5446_v45  ;;  %v6069_v32 = vand.u32 4294901760, %v437_v11  ;;  %v433_v35 = vpop.permute.xlu2 %432 }
  0xdf   :  { %v398_v42 = vsel %vm395_vm9, %v397_v60, %v393_v43  ;;  %vm407_vm12 = vmor %vm405_vm11, %vm406_vm10  ;;  %v6080_v25 = vand.u32 4294901760, %v464_v49  ;;  %v6086_v60 = vsub.f32 %v439_v59, %v6082_v10  ;;  %v441_v43 = vsel %vm434_vm1, %v433_v35, 0 }
  0xe0   :  { %v402_v31 = vsub.f32 1.0, %v401_v46  ;;  %v416_v39 = vmul.f32 0.0, %v398_v42  ;;  %v6072_v19 = vsub.f32 %v437_v11, %v6069_v32 }
  0xe1   :  { %v6094_v51 = vand.u32 4294901760, %v6086_v60 }
  0xe2   :  { %v403_v37 = vmul.f32 %v5446_v45, %v402_v31  ;;  %v6063_v63 = vadd.f32 %v417_v47, %v416_v39  ;;  %v6078_v33 = vand.u32 4294901760, %v6072_v19  ;;  %v6098_v31 = vand.u32 4294901760, %v441_v43 }
  0xe3   :  { %v480_v11 = vsub.f32 %v6086_v60, %v6094_v51  ;;  %708 = vperm.xlu1 %5421, %v5842_v18  }
  0xe4   :  { %v404_v13 = vadd.f32 %v5446_v45, %v403_v37  ;;  %5447 = vtanh.f32 %v6063_v63  ;;  %v472_v29 = vsub.f32 %v6072_v19, %v6078_v33  ;;  %v6103_v47 = vsub.f32 %v441_v43, %v6098_v31 }
  0xe6   :  { %v408_v0 = vsel %vm407_vm12, %v5446_v45, %v404_v13  ;;  %v6096_v42 = vand.u32 4294901760, %v472_v29  ;;  %v6110_v37 = vand.u32 4294901760, %v6103_v47  ;;  %v6112_v13 = vand.u32 4294901760, %v480_v11 }
  0xe7   :  { %v413_v4 = vsel %vm410_vm13, %v412_v40, %v408_v0 }
  0xe8   :  { %v488_v36 = vsub.f32 %v6103_v47, %v6110_v37 }
  0xea   :  { %v5448_v41 = vpop.eup %5447  ;;  %v6120_v21 = vand.u32 4294901760, %v488_v36 }
  0xeb   :  { %v420_v34 = vmul.f32 %v5448_v41, %v413_v4 }
  0xed   :  { %v459_v14 = vand.u32 4294901760, %v420_v34 }
  0xef   :  { %460 = vmatpush.msrb.mxu2 %v459_v14  ;;  %595 = vmatpush.msra.mxu1 %v459_v14  ;;  %v515_v45 = vsub.f32 %v420_v34, %v459_v14 }
  0xf0   :  { %466 = vmatmul.f32.vlgmr.msrb.gmra.mxu2 %v6080_v25  ;;  %599 = vmatmul.f32.vlgmr.msra.gmra.mxu1 %v6066_v61 }
  0xf1   :  { %556 = vmatpush.msra.mxu0 %v515_v45  ;;  %v516_v46 = vand.u32 4294901760, %v515_v45 }
  0xf2   :  { %559 = vmatmul.f32.vlgmr.msra.gmra.mxu0 %v6060_v50 }
  0xf3   :  { %811 = vmatpush.msrb.mxu0 %v459_v14  ;;  %642 = vmatpush.msra.mxu2 %v516_v46  ;;  %v517_v3 = vsub.f32 %v515_v45, %v516_v46 }
  0xf5   :  { %982 = vmatpush.msra.mxu0 %v516_v46  ;;  %900 = vmatpush.msrb.mxu2 %v515_v45  ;;  %v518_v39 = vand.u32 4294901760, %v517_v3 }
  0xf7   :  { %519 = vmatpush.msrb.mxu3 %v518_v39  ;;  %865 = vmatpush.msrb.mxu1 %v518_v39 }
  0xf8   :  { %474 = vmatmul.f32.gmra.mxu2 %v6096_v42  ;;  %521 = vmatmul.f32.vlgmr.msrb.gmra.mxu3 %v6055_v44 }
  0xf9   :  { %677 = vmatpush.msra.mxu3 %v459_v14  ;;  %1016 = vmatpush.msra.mxu1 %v459_v14 }
  0xfa   :  { %605 = vmatmul.f32.gmra.mxu1 %v6078_v33  ;;  %564 = vmatmul.f32.gmra.mxu0 %v6072_v19 }
  0xfb   :  { %938 = vmatpush.msrb.mxu3 %v459_v14 }
 0x100   :  { %482 = vmatmul.f32.gmra.mxu2 %v6112_v13  ;;  %525 = vmatmul.f32.gmra.mxu3 %v6069_v32 }
 0x102   :  { %611 = vmatmul.f32.gmra.mxu1 %v6094_v51  ;;  %569 = vmatmul.f32.gmra.mxu0 %v6086_v60 }
 0x108   :  { %490 = vmatmul.f32.gmra.mxu2 %v6120_v21  ;;  %529 = vmatmul.f32.gmra.mxu3 %v6082_v10 }
 0x10a   :  { %617 = vmatmul.f32.gmra.mxu1 %v6110_v37  ;;  %574 = vmatmul.f32.gmra.mxu0 %v6103_v47 }
 0x110   :  { %533 = vmatmul.f32.gmra.mxu3 %v6098_v31  ;;  %644 = vmatmul.f32.vlgmr.msra.gmra.mxu2 %v6055_v44 }
 0x112   :  { %867 = vmatmul.f32.vlgmr.msrb.gmra.mxu1 %v5810_v5  ;;  %817 = vmatmul.f32.vlgmr.msrb.gmra.mxu0 %v5840_v17 }
 0x118   :  { %648 = vmatmul.f32.gmra.mxu2 %v6069_v32  ;;  %679 = vmatmul.f32.vlgmr.msra.gmra.mxu3 %v6055_v44 }
 0x11a   :  { %871 = vmatmul.f32.gmra.mxu1 %v5812_v6  ;;  %825 = vmatmul.f32.gmra.mxu0 %v5856_v22 }
 0x120   :  { %652 = vmatmul.f32.gmra.mxu2 %v6082_v10  ;;  %683 = vmatmul.f32.gmra.mxu3 %v6069_v32 }
 0x122   :  { %875 = vmatmul.f32.gmra.mxu1 %v5837_v16  ;;  %833 = vmatmul.f32.gmra.mxu0 %v5875_v27 }
 0x128   :  { %656 = vmatmul.f32.gmra.mxu2 %v6098_v31  ;;  %687 = vmatmul.f32.gmra.mxu3 %v6082_v10 }
 0x12a   :  { %879 = vmatmul.f32.gmra.mxu1 %v5861_v24  ;;  %841 = vmatmul.f32.gmra.mxu0 %v5889_v30 }
 0x130   :  { %691 = vmatmul.f32.gmra.mxu3 %v6098_v31  ;;  %903 = vmatmul.f32.vlgmr.msrb.gmra.mxu2 %v5817_v8 }
 0x132   :  { %1018 = vmatmul.f32.vlgmr.msra.gmra.mxu1 %v5810_v5  ;;  %984 = vmatmul.f32.vlgmr.msra.gmra.mxu0 %v5810_v5 }
 0x138   :  { %908 = vmatmul.f32.gmra.mxu2 %v5821_v9  ;;  %942 = vmatmul.f32.vlgmr.msrb.gmra.mxu3 %v5827_v12 }
 0x13a   :  { %1022 = vmatmul.f32.gmra.mxu1 %v5812_v6  ;;  %988 = vmatmul.f32.gmra.mxu0 %v5812_v6 }
 0x140   :  { %913 = vmatmul.f32.gmra.mxu2 %v5849_v20  ;;  %948 = vmatmul.f32.gmra.mxu3 %v5835_v15 }
 0x142   :  { %1026 = vmatmul.f32.gmra.mxu1 %v5837_v16  ;;  %992 = vmatmul.f32.gmra.mxu0 %v5837_v16 }
 0x148   :  { %918 = vmatmul.f32.gmra.mxu2 %v5870_v26  ;;  %954 = vmatmul.f32.gmra.mxu3 %v5859_v23 }
 0x14a   :  { %1030 = vmatmul.f32.gmra.mxu1 %v5861_v24  ;;  %996 = vmatmul.f32.gmra.mxu0 %v5861_v24 }
 0x14d   :  { %v6165_v56 = vpop.permute.xlu0 %696 }
 0x14e   :  { %6982 = vst [vmem:[#allocation44_spill] sm:$0xff] %v6165_v56 }
 0x150   :  { %960 = vmatmul.f32.gmra.mxu3 %v5878_v28 }
 0x16d   :  { %v600_v1 = vpop.f32.mrf.mxu1 }
 0x16f   :  { %v560_v2 = vpop.f32.mrf.mxu0 }
 0x173   :  { %v467_v7 = vpop.f32.mrf.mxu2 }
 0x177   :  { %v606_v18 = vpop.f32.mrf.mxu1  ;;  %v565_v0 = vpop.f32.mrf.mxu0 }
 0x17b   :  { %v475_v40 = vpop.f32.mrf.mxu2  ;;  %v522_v49 = vpop.f32.mrf.mxu3 }
 0x17c   :  { %v523_v46 = vadd.f32 %v522_v49, %v467_v7 }
 0x17e   :  { %v561_v36 = vadd.f32 %v560_v2, %v523_v46  ;;  %v6172_v2 = vpop.permute.xlu1 %700 }
 0x17f   :  { %v612_v59 = vpop.f32.mrf.mxu1  ;;  %v570_v41 = vpop.f32.mrf.mxu0  ;;  %6983 = vst [vmem:[#allocation45_spill] sm:$0xff] %v6172_v2 }
 0x180   :  { %v601_v38 = vadd.f32 %v600_v1, %v561_v36 }
 0x183   :  { %v483_v4 = vpop.f32.mrf.mxu2  ;;  %v526_v34 = vpop.f32.mrf.mxu3 }
 0x184   :  { %v527_v58 = vadd.f32 %v526_v34, %v475_v40 }
 0x186   :  { %v566_v26 = vadd.f32 %v565_v0, %v527_v58 }
 0x187   :  { %v575_v14 = vpop.f32.mrf.mxu0  ;;  %v618_v35 = vpop.f32.mrf.mxu1 }
 0x188   :  { %v607_v49 = vadd.f32 %v606_v18, %v566_v26 }
 0x18b   :  { %v491_v45 = vpop.f32.mrf.mxu2  ;;  %v530_v29 = vpop.f32.mrf.mxu3 }
 0x18c   :  { %v531_v20 = vadd.f32 %v530_v29, %v483_v4 }
 0x18e   :  { %v571_v46 = vadd.f32 %v570_v41, %v531_v20 }
 0x18f   :  { %v818_v43 = vpop.f32.mrf.mxu0  ;;  %v868_v3 = vpop.f32.mrf.mxu1 }
 0x193   :  { %v534_v39 = vpop.f32.mrf.mxu3  ;;  %v645_v11 = vpop.f32.mrf.mxu2 }
 0x194   :  { %v646_v62 = vadd.f32 %v645_v11, %v601_v38 }
 0x197   :  { %v6163_v57 = vpop.f32.mrf.mxu0  ;;  %v6167_v55 = vpop.f32.mrf.mxu1 }
 0x19b   :  { %v649_v28 = vpop.f32.mrf.mxu2  ;;  %v680_v23 = vpop.f32.mrf.mxu3 }
 0x19c   :  { %v681_v15 = vadd.f32 %v680_v23, %v646_v62  ;;  %v650_v1 = vadd.f32 %v649_v28, %v607_v49  ;;  %v613_v62 = vadd.f32 %v612_v59, %v571_v46  ;;  %v6179_v28 = vpop.permute.xlu2 %704 }
 0x19d   :  { %6984 = vst [vmem:[#allocation46_spill] sm:$0xff] %v6179_v28 }
 0x19e   :  { %v711_v7 = vadd.f32 %v6165_v56, %v681_v15  ;;  %v535_v15 = vadd.f32 %v534_v39, %v491_v45 }
 0x19f   :  { %v6170_v9 = vpop.f32.mrf.mxu0  ;;  %v6174_v36 = vpop.f32.mrf.mxu1 }
 0x1a0   :  { %v5357_v12 = vmul.f32 -1.442695, %v711_v7  ;;  %v576_v4 = vadd.f32 %v575_v14, %v535_v15 }
 0x1a2   :  { %5449 = vpow2.f32 %v5357_v12  ;;  %v619_v45 = vadd.f32 %v618_v35, %v576_v4 }
 0x1a3   :  { %v653_v40 = vpop.f32.mrf.mxu2  ;;  %v684_v34 = vpop.f32.mrf.mxu3 }
 0x1a4   :  { %v685_v11 = vadd.f32 %v684_v34, %v650_v1  ;;  %v654_v0 = vadd.f32 %v653_v40, %v613_v62 }
 0x1a6   :  { %v712_v58 = vadd.f32 %v6172_v2, %v685_v11 }
 0x1a7   :  { %v6181_v12 = vpop.f32.mrf.mxu0  ;;  %v6185_v7 = vpop.f32.mrf.mxu1 }
 0x1a8   :  { %v5450_v23 = vpop.eup %5449  ;;  %v5358_v26 = vmul.f32 -1.442695, %v712_v58 }
 0x1a9   :  { %v6177_v18 = vadd.f32 1.0, %v5450_v23  ;;  %v6188_v23 = vpop.permute.xlu1 %708 }
 0x1aa   :  { %5451 = vpow2.f32 %v5358_v26  ;;  %6985 = vst [vmem:[#allocation47_spill] sm:$0xff] %v6188_v23 }
 0x1ab   :  { %5453 = vrcp.f32 %v6177_v18  ;;  %v657_v20 = vpop.f32.mrf.mxu2  ;;  %v688_v41 = vpop.f32.mrf.mxu3  ;;  %vm732_vm0 = vweird.f32 %v6177_v18 }
 0x1ac   :  { %v689_v29 = vadd.f32 %v688_v41, %v654_v0  ;;  %v658_v40 = vadd.f32 %v657_v20, %v619_v45  ;;  %v869_v0 = vadd.f32 %v868_v3, %v818_v43 }
 0x1ae   :  { %v713_v38 = vadd.f32 %v6179_v28, %v689_v29 }
 0x1af   :  { %v985_v14 = vpop.f32.mrf.mxu0  ;;  %v1019_v15 = vpop.f32.mrf.mxu1 }
 0x1b0   :  { %v5452_v59 = vpop.eup %5451  ;;  %v5359_v39 = vmul.f32 -1.442695, %v713_v38 }
 0x1b1   :  { %v5454_v49 = vpop.eup %5453  ;;  %v725_v1 = vadd.f32 1.0, %v5452_v59 }
 0x1b2   :  { %5455 = vpow2.f32 %v5359_v39  ;;  %v728_v34 = vmul.f32 %v5454_v49, %v6177_v18  ;;  %vm733_vm14 = vweird.f32 %v5454_v49 }
 0x1b3   :  { %5457 = vrcp.f32 %v725_v1  ;;  %v692_v46 = vpop.f32.mrf.mxu3  ;;  %v904_v11 = vpop.f32.mrf.mxu2  ;;  %v751_v43 = vand.u32 2147483647, %v725_v1  ;;  %v753_v3 = vand.u32 2147483648, %v725_v1  ;;  %vm6199_vm1 = vmor %vm732_vm0, %vm733_vm14  ;;  %vm747_vm2 = vweird.f32 %v725_v1 }
 0x1b4   :  { %v693_v58 = vadd.f32 %v692_v46, %v658_v40  ;;  %v729_v62 = vsub.f32 1.0, %v728_v34  ;;  %v905_v29 = vadd.f32 %v904_v11, %v869_v0  ;;  %v738_v40 = vand.u32 2147483648, %v6177_v18 }
 0x1b5   :  { %v736_v11 = vand.u32 2147483647, %v6177_v18  ;;  %vm752_vm4 = vcmp.eq.f32.partialorder %v751_v43, 8.507059e+37 }
 0x1b6   :  { %v714_v35 = vadd.f32 %v6188_v23, %v693_v58  ;;  %v730_v20 = vmul.f32 %v5454_v49, %v729_v62  ;;  %v873_v62 = vadd.f32 %v6167_v55, %v6163_v57 }
 0x1b7   :  { %vm737_vm5 = vcmp.eq.f32.partialorder %v736_v11, 8.507059e+37 }
 0x1b8   :  { %v5456_v26 = vpop.eup %5455  ;;  %v731_v46 = vadd.f32 %v5454_v49, %v730_v20 }
 0x1b9   :  { %v5458_v41 = vpop.eup %5457  ;;  %v6191_v4 = vadd.f32 1.0, %v5456_v26  ;;  %v989_v26 = vpop.f32.mrf.mxu0 }
 0x1ba   :  { %v743_v38 = vmul.f32 %v5458_v41, %v725_v1  ;;  %vm748_vm15 = vweird.f32 %v5458_v41 }
 0x1bb   :  { %5459 = vrcp.f32 %v6191_v4  ;;  %v909_v59 = vpop.f32.mrf.mxu2  ;;  %v943_v45 = vpop.f32.mrf.mxu3  ;;  %vm749_vm3 = vmor %vm747_vm2, %vm748_vm15  ;;  %vm762_vm7 = vweird.f32 %v6191_v4 }
 0x1bc   :  { %5461 = vtanh.f32 %v714_v35  ;;  %v944_v39 = vadd.f32 %v943_v45, %v905_v29  ;;  %v744_v34 = vsub.f32 1.0, %v743_v38  ;;  %v1023_v38 = vpop.f32.mrf.mxu1  ;;  %v739_v45 = vor.u32 1.1754944e-38, %v738_v40 }
 0x1be   :  { %v986_v58 = vadd.f32 %v985_v14, %v944_v39  ;;  %v745_v23 = vmul.f32 %v5458_v41, %v744_v34  ;;  %v735_v14 = vsel %vm6199_vm1, %v5454_v49, %v731_v46  ;;  %v754_v39 = vor.u32 1.1754944e-38, %v753_v3 }
 0x1bf   :  { %v910_v34 = vadd.f32 %v909_v59, %v873_v62  ;;  %v740_v2 = vsel %vm737_vm5, %v739_v45, %v735_v14  ;;  %v768_v62 = vand.u32 2147483648, %v6191_v4 }
 0x1c0   :  { %v1020_v0 = vadd.f32 %v1019_v15, %v986_v58  ;;  %v746_v20 = vadd.f32 %v5458_v41, %v745_v23 }
 0x1c1   :  { %v5460_v29 = vpop.eup %5459  ;;  %v993_v11 = vpop.f32.mrf.mxu0  ;;  %v769_v45 = vor.u32 1.1754944e-38, %v768_v62 }
 0x1c2   :  { %v5462_v18 = vpop.eup %5461  ;;  %v1034_v55 = vadd.f32 %v1020_v0, %v5930_v52  ;;  %v750_v57 = vsel %vm749_vm3, %v5458_v41, %v746_v20  ;;  %v758_v15 = vmul.f32 %v5460_v29, %v6191_v4  ;;  %v877_v52 = vadd.f32 %v6174_v36, %v6170_v9 }
 0x1c3   :  { %v949_v58 = vpop.f32.mrf.mxu3  ;;  %v755_v23 = vsel %vm752_vm4, %v754_v39, %v750_v57  ;;  %v914_v35 = vpop.f32.mrf.mxu2  ;;  %v774_v40 = vmul.f32 %v5462_v18, %v740_v2  ;;  %vm763_vm6 = vweird.f32 %v5460_v29 }
 0x1c4   :  { %v5360_v1 = vmul.f32 -1.442695, %v1034_v55  ;;  %v950_v28 = vadd.f32 %v949_v58, %v910_v34  ;;  %v759_v56 = vsub.f32 1.0, %v758_v15  ;;  %v773_v49 = vmul.f32 0.0, %v755_v23  ;;  %vm764_vm8 = vmor %vm762_vm7, %vm763_vm6 }
 0x1c5   :  { %v915_v0 = vadd.f32 %v914_v35, %v877_v52  ;;  %v881_v55 = vadd.f32 %v6185_v7, %v6181_v12 }
 0x1c6   :  { %5463 = vpow2.f32 %v5360_v1  ;;  %v990_v46 = vadd.f32 %v989_v26, %v950_v28  ;;  %v760_v43 = vmul.f32 %v5460_v29, %v759_v56  ;;  %v6207_v3 = vadd.f32 %v774_v40, %v773_v49  ;;  %v1027_v28 = vpop.f32.mrf.mxu1 }
 0x1c7   :  { %v766_v56 = vand.u32 2147483647, %v6191_v4 }
 0x1c8   :  { %v1024_v41 = vadd.f32 %v1023_v38, %v990_v46  ;;  %v761_v59 = vadd.f32 %v5460_v29, %v760_v43  ;;  %5465 = vtanh.f32 %v6207_v3 }
 0x1c9   :  { %vm767_vm9 = vcmp.eq.f32.partialorder %v766_v56, 8.507059e+37  ;;  %v997_v1 = vpop.f32.mrf.mxu0 }
 0x1ca   :  { %v1035_v20 = vadd.f32 %v1024_v41, %v5933_v53  ;;  %v765_v38 = vsel %vm764_vm8, %v5460_v29, %v761_v59 }
 0x1cb   :  { %v955_v2 = vpop.f32.mrf.mxu3  ;;  %v919_v34 = vpop.f32.mrf.mxu2  ;;  %v770_v53 = vsel %vm767_vm9, %v769_v45, %v765_v38 }
 0x1cc   :  { %v5464_v26 = vpop.eup %5463  ;;  %v5361_v9 = vmul.f32 -1.442695, %v1035_v20  ;;  %v956_v36 = vadd.f32 %v955_v2, %v915_v0  ;;  %v920_v15 = vadd.f32 %v919_v34, %v881_v55 }
 0x1cd   :  { %v1047_v14 = vadd.f32 1.0, %v5464_v26 }
 0x1ce   :  { %5467 = vpow2.f32 %v5361_v9  ;;  %v994_v39 = vadd.f32 %v993_v11, %v956_v36  ;;  %v5466_v18 = vpop.eup %5465  ;;  %v1031_v43 = vpop.f32.mrf.mxu1 }
 0x1cf   :  { %5469 = vrcp.f32 %v1047_v14  ;;  %v777_v57 = vmul.f32 %v5466_v18, %v770_v53  ;;  %vm1055_vm11 = vweird.f32 %v1047_v14  ;;  %v1059_v38 = vand.u32 2147483647, %v1047_v14 }
 0x1d0   :  { %v1028_v4 = vadd.f32 %v1027_v28, %v994_v39  ;;  %v1061_v28 = vand.u32 2147483648, %v1047_v14 }
 0x1d1   :  { %v6219_v23 = vand.u32 4294901760, %v777_v57  ;;  %vm1060_vm13 = vcmp.eq.f32.partialorder %v1059_v38, 8.507059e+37  ;;  %v6992_v38 = vld [vmem:[#allocation18_spill] sm:$0xff] }
 0x1d2   :  { %v1036_v58 = vadd.f32 %v1028_v4, %v6010_v48 }
 0x1d3   :  { %v961_v29 = vpop.f32.mrf.mxu3  ;;  %1121 = vmatpush.msra.mxu2 %v6219_v23  ;;  %1256 = vmatpush.msrb.mxu1 %v6219_v23  ;;  %v6224_v46 = vsub.f32 %v777_v57, %v6219_v23 }
 0x1d4   :  { %v5468_v35 = vpop.eup %5467  ;;  %v5362_v49 = vmul.f32 -1.442695, %v1036_v58  ;;  %v962_v40 = vadd.f32 %v961_v29, %v920_v15 }
 0x1d5   :  { %v5470_v12 = vpop.eup %5469  ;;  %v1048_v7 = vadd.f32 1.0, %v5468_v35  ;;  %1216 = vmatpush.msrb.mxu0 %v6224_v46  ;;  %v1173_v11 = vand.u32 4294901760, %v6224_v46 }
 0x1d6   :  { %v1051_v52 = vmul.f32 %v5470_v12, %v1047_v14  ;;  %5471 = vpow2.f32 %v5362_v49  ;;  %v998_v48 = vadd.f32 %v997_v1, %v962_v40  ;;  %vm1056_vm10 = vweird.f32 %v5470_v12 }
 0x1d7   :  { %5473 = vrcp.f32 %v1048_v7  ;;  %v1174_v20 = vsub.f32 %v6224_v46, %v1173_v11  ;;  %vm1057_vm12 = vmor %vm1055_vm11, %vm1056_vm10  ;;  %v1076_v34 = vand.u32 2147483648, %v1048_v7  ;;  %v1074_v57 = vand.u32 2147483647, %v1048_v7 }
 0x1d8   :  { %v1052_v41 = vsub.f32 1.0, %v1051_v52  ;;  %v1032_v59 = vadd.f32 %v1031_v43, %v998_v48  ;;  %vm1070_vm15 = vweird.f32 %v1048_v7 }
 0x1d9   :  { %v1175_v26 = vand.u32 4294901760, %v1174_v20  ;;  %v1077_v14 = vor.u32 1.1754944e-38, %v1076_v34  ;;  %vm1075_vm1 = vcmp.eq.f32.partialorder %v1074_v57, 8.507059e+37 }
 0x1da   :  { %v1037_v62 = vadd.f32 %v1032_v59, %v5936_v54  ;;  %v1053_v0 = vmul.f32 %v5470_v12, %v1052_v41  ;;  %v1062_v54 = vor.u32 1.1754944e-38, %v1061_v28 }
 0x1db   :  { %1176 = vmatpush.msra.mxu3 %v1175_v26 }
 0x1dc   :  { %v5472_v56 = vpop.eup %5471  ;;  %v1054_v2 = vadd.f32 %v5470_v12, %v1053_v0  ;;  %5475 = vtanh.f32 %v1037_v62 }
 0x1dd   :  { %v5474_v9 = vpop.eup %5473  ;;  %v1049_v36 = vadd.f32 1.0, %v5472_v56 }
 0x1de   :  { %v1066_v45 = vmul.f32 %v5474_v9, %v1048_v7  ;;  %v1058_v39 = vsel %vm1057_vm12, %v5470_v12, %v1054_v2  ;;  %vm1071_vm14 = vweird.f32 %v5474_v9 }
 0x1df   :  { %5477 = vrcp.f32 %v1049_v36  ;;  %v1063_v4 = vsel %vm1060_vm13, %v1062_v54, %v1058_v39  ;;  %vm1072_vm0 = vmor %vm1070_vm15, %vm1071_vm14  ;;  %v1091_v48 = vand.u32 2147483648, %v1049_v36  ;;  %vm1085_vm3 = vweird.f32 %v1049_v36  ;;  %v6994_v39 = vld [vmem:[#allocation19_spill] sm:$0xff] }
 0x1e0   :  { %v1067_v18 = vsub.f32 1.0, %v1066_v45  ;;  %v1089_v7 = vand.u32 2147483647, %v1049_v36  ;;  %v6993_v45 = vld [vmem:[#allocation17_spill] sm:$0xff] }
 0x1e1   :  { %v1092_v59 = vor.u32 1.1754944e-38, %v1091_v48 }
 0x1e2   :  { %v5476_v53 = vpop.eup %5475  ;;  %v1068_v55 = vmul.f32 %v5474_v9, %v1067_v18  ;;  %vm1090_vm5 = vcmp.eq.f32.partialorder %v1089_v7, 8.507059e+37 }
 0x1e3   :  { %v1097_v15 = vmul.f32 %v5476_v53, %v1063_v4 }
 0x1e4   :  { %v1069_v58 = vadd.f32 %v5474_v9, %v1068_v55 }
 0x1e5   :  { %v5478_v29 = vpop.eup %5477 }
 0x1e6   :  { %v1081_v1 = vmul.f32 %v5478_v29, %v1049_v36  ;;  %v1073_v35 = vsel %vm1072_vm0, %v5474_v9, %v1069_v58  ;;  %vm1086_vm2 = vweird.f32 %v5478_v29  ;;  %v6990_v9 = vld [vmem:[#allocation16_spill] sm:$0xff]  ;;  %v6991_v36 = vld [vmem:[#allocation15_spill] sm:$0xff] }
 0x1e7   :  { %v1078_v49 = vsel %vm1075_vm1, %v1077_v14, %v1073_v35  ;;  %vm1087_vm4 = vmor %vm1085_vm3, %vm1086_vm2 }
 0x1e8   :  { %v1082_v40 = vsub.f32 1.0, %v1081_v1  ;;  %v1096_v46 = vmul.f32 %v1078_v49, %v6063_v63 }
 0x1ea   :  { %v1083_v12 = vmul.f32 %v5478_v29, %v1082_v40  ;;  %v6231_v43 = vadd.f32 %v1097_v15, %v1096_v46 }
 0x1ec   :  { %v1084_v52 = vadd.f32 %v5478_v29, %v1083_v12  ;;  %5479 = vtanh.f32 %v6231_v43 }
 0x1ee   :  { %v1088_v41 = vsel %vm1087_vm4, %v5478_v29, %v1084_v52 }
 0x1ef   :  { %v1093_v0 = vsel %vm1090_vm5, %v1092_v59, %v1088_v41 }
 0x1f2   :  { %v5480_v62 = vpop.eup %5479 }
 0x1f3   :  { %v1100_v20 = vmul.f32 %v5480_v62, %v1093_v0 }
 0x1f5   :  { %v1122_v56 = vand.u32 4294901760, %v1100_v20 }
 0x1f7   :  { %1123 = vmatpush.msra.mxu2 %v1122_v56  ;;  %1258 = vmatpush.msrb.mxu1 %v1122_v56  ;;  %v1178_v63 = vsub.f32 %v1100_v20, %v1122_v56 }
 0x1f8   :  { %1129 = vmatmul.f32.vlgmr.msra.gmra.mxu2 %v6080_v25  ;;  %1262 = vmatmul.f32.vlgmr.msrb.gmra.mxu1 %v6066_v61 }
 0x1f9   :  { %1301 = vmatpush.msrb.mxu2 %v1173_v11  ;;  %1219 = vmatpush.msrb.mxu0 %v1178_v63  ;;  %v1179_v2 = vand.u32 4294901760, %v1178_v63  ;;  %v6989_v11 = vld [vmem:[#allocation14_spill] sm:$0xff] }
 0x1fa   :  { %1222 = vmatmul.f32.vlgmr.msrb.gmra.mxu0 %v6060_v50 }
 0x1fb   :  { %1458 = vmatpush.msra.mxu0 %v1122_v56  ;;  %1305 = vmatpush.msrb.mxu2 %v1179_v2  ;;  %v1180_v28 = vsub.f32 %v1178_v63, %v1179_v2 }
 0x1fd   :  { %1629 = vmatpush.msrb.mxu0 %v1179_v2  ;;  %1547 = vmatpush.msra.mxu2 %v1178_v63  ;;  %v1181_v26 = vand.u32 4294901760, %v1180_v28 }
 0x1ff   :  { %1182 = vmatpush.msra.mxu3 %v1181_v26  ;;  %1512 = vmatpush.msra.mxu1 %v1181_v26 }
 0x200   :  { %1137 = vmatmul.f32.gmra.mxu2 %v6096_v42  ;;  %1184 = vmatmul.f32.vlgmr.msra.gmra.mxu3 %v6055_v44 }
 0x201   :  { %1268 = vmatmul.f32.gmra.mxu1 %v6078_v33  ;;  %1338 = vmatpush.msrb.mxu3 %v6219_v23  ;;  %v6988_v23 = vld [vmem:[#allocation13_spill] sm:$0xff] }
 0x202   :  { %1663 = vmatpush.msrb.mxu1 %v1122_v56  ;;  %1227 = vmatmul.f32.gmra.mxu0 %v6072_v19 }
 0x203   :  { %1340 = vmatpush.msrb.mxu3 %v1122_v56 }
 0x205   :  { %1585 = vmatpush.msra.mxu3 %v1122_v56 }
 0x208   :  { %1145 = vmatmul.f32.gmra.mxu2 %v6112_v13  ;;  %1188 = vmatmul.f32.gmra.mxu3 %v6069_v32 }
 0x209   :  { %1274 = vmatmul.f32.gmra.mxu1 %v6094_v51 }
 0x20a   :  { %1232 = vmatmul.f32.gmra.mxu0 %v6086_v60 }
 0x210   :  { %1153 = vmatmul.f32.gmra.mxu2 %v6120_v21  ;;  %1192 = vmatmul.f32.gmra.mxu3 %v6082_v10 }
 0x211   :  { %1280 = vmatmul.f32.gmra.mxu1 %v6110_v37 }
 0x212   :  { %1237 = vmatmul.f32.gmra.mxu0 %v6103_v47 }
 0x218   :  { %1196 = vmatmul.f32.gmra.mxu3 %v6098_v31  ;;  %1307 = vmatmul.f32.vlgmr.msrb.gmra.mxu2 %v6055_v44 }
 0x219   :  { %1514 = vmatmul.f32.vlgmr.msra.gmra.mxu1 %v5810_v5 }
 0x21a   :  { %1464 = vmatmul.f32.vlgmr.msra.gmra.mxu0 %v5840_v17 }
 0x220   :  { %1311 = vmatmul.f32.gmra.mxu2 %v6069_v32  ;;  %1342 = vmatmul.f32.vlgmr.msrb.gmra.mxu3 %v6055_v44 }
 0x221   :  { %1518 = vmatmul.f32.gmra.mxu1 %v5812_v6 }
 0x222   :  { %1472 = vmatmul.f32.gmra.mxu0 %v5856_v22 }
 0x228   :  { %1315 = vmatmul.f32.gmra.mxu2 %v6082_v10  ;;  %1346 = vmatmul.f32.gmra.mxu3 %v6069_v32 }
 0x229   :  { %1522 = vmatmul.f32.gmra.mxu1 %v5837_v16 }
 0x22a   :  { %1480 = vmatmul.f32.gmra.mxu0 %v5875_v27 }
 0x230   :  { %1319 = vmatmul.f32.gmra.mxu2 %v6098_v31  ;;  %1350 = vmatmul.f32.gmra.mxu3 %v6082_v10 }
 0x231   :  { %1526 = vmatmul.f32.gmra.mxu1 %v5861_v24 }
 0x232   :  { %1488 = vmatmul.f32.gmra.mxu0 %v5889_v30 }
 0x238   :  { %1354 = vmatmul.f32.gmra.mxu3 %v6098_v31  ;;  %1550 = vmatmul.f32.vlgmr.msra.gmra.mxu2 %v5817_v8 }
 0x239   :  { %1665 = vmatmul.f32.vlgmr.msrb.gmra.mxu1 %v5810_v5 }
 0x23a   :  { %1631 = vmatmul.f32.vlgmr.msrb.gmra.mxu0 %v5810_v5 }
 0x240   :  { %1555 = vmatmul.f32.gmra.mxu2 %v6988_v23  ;;  %1589 = vmatmul.f32.vlgmr.msra.gmra.mxu3 %v6989_v11 }
 0x241   :  { %1669 = vmatmul.f32.gmra.mxu1 %v5812_v6 }
 0x242   :  { %1635 = vmatmul.f32.gmra.mxu0 %v5812_v6 }
 0x248   :  { %1560 = vmatmul.f32.gmra.mxu2 %v6990_v9  ;;  %1595 = vmatmul.f32.gmra.mxu3 %v6991_v36 }
 0x249   :  { %1673 = vmatmul.f32.gmra.mxu1 %v5837_v16 }
 0x24a   :  { %1639 = vmatmul.f32.gmra.mxu0 %v5837_v16 }
 0x250   :  { %1565 = vmatmul.f32.gmra.mxu2 %v6992_v38  ;;  %1601 = vmatmul.f32.gmra.mxu3 %v6993_v45 }
 0x251   :  { %1677 = vmatmul.f32.gmra.mxu1 %v5861_v24 }
 0x252   :  { %1643 = vmatmul.f32.gmra.mxu0 %v5861_v24 }
 0x258   :  { %1607 = vmatmul.f32.gmra.mxu3 %v6994_v39  ;;  %v6995_v39 = vld [vmem:[#allocation44_spill] sm:$0xff] }
 0x275   :  { %v1263_v18 = vpop.f32.mrf.mxu1 }
 0x277   :  { %v1223_v54 = vpop.f32.mrf.mxu0 }
 0x27b   :  { %v1130_v34 = vpop.f32.mrf.mxu2 }
 0x27e   :  { %v1269_v53 = vpop.f32.mrf.mxu1 }
 0x27f   :  { %v1228_v55 = vpop.f32.mrf.mxu0 }
 0x283   :  { %v1138_v4 = vpop.f32.mrf.mxu2  ;;  %v1185_v57 = vpop.f32.mrf.mxu3 }
 0x284   :  { %v1186_v12 = vadd.f32 %v1185_v57, %v1130_v34 }
 0x286   :  { %v1275_v15 = vpop.f32.mrf.mxu1  ;;  %v1224_v41 = vadd.f32 %v1223_v54, %v1186_v12 }
 0x287   :  { %v1233_v58 = vpop.f32.mrf.mxu0 }
 0x288   :  { %v1264_v0 = vadd.f32 %v1263_v18, %v1224_v41 }
 0x28b   :  { %v1146_v29 = vpop.f32.mrf.mxu2  ;;  %v1189_v14 = vpop.f32.mrf.mxu3 }
 0x28c   :  { %v1190_v62 = vadd.f32 %v1189_v14, %v1138_v4 }
 0x28e   :  { %v1281_v35 = vpop.f32.mrf.mxu1  ;;  %v1229_v28 = vadd.f32 %v1228_v55, %v1190_v62 }
 0x28f   :  { %v1238_v1 = vpop.f32.mrf.mxu0 }
 0x290   :  { %v1270_v36 = vadd.f32 %v1269_v53, %v1229_v28 }
 0x293   :  { %v1154_v49 = vpop.f32.mrf.mxu2  ;;  %v1193_v40 = vpop.f32.mrf.mxu3 }
 0x294   :  { %v1194_v38 = vadd.f32 %v1193_v40, %v1146_v29 }
 0x296   :  { %v1515_v52 = vpop.f32.mrf.mxu1  ;;  %v1234_v4 = vadd.f32 %v1233_v58, %v1194_v38  ;;  %v6997_v38 = vld [vmem:[#allocation46_spill] sm:$0xff] }
 0x297   :  { %v1465_v46 = vpop.f32.mrf.mxu0 }
 0x298   :  { %v1276_v62 = vadd.f32 %v1275_v15, %v1234_v4 }
 0x29b   :  { %v1197_v48 = vpop.f32.mrf.mxu3  ;;  %v1308_v7 = vpop.f32.mrf.mxu2 }
 0x29c   :  { %v1309_v20 = vadd.f32 %v1308_v7, %v1264_v0  ;;  %v6996_v7 = vld [vmem:[#allocation45_spill] sm:$0xff]  ;;  %v1198_v55 = vadd.f32 %v1197_v48, %v1154_v49 }
 0x29e   :  { %v6285_v56 = vpop.f32.mrf.mxu1  ;;  %v1239_v40 = vadd.f32 %v1238_v1, %v1198_v55  ;;  %v6998_v1 = vld [vmem:[#allocation47_spill] sm:$0xff] }
 0x29f   :  { %v6283_v59 = vpop.f32.mrf.mxu0 }
 0x2a3   :  { %v1312_v63 = vpop.f32.mrf.mxu2  ;;  %v1343_v2 = vpop.f32.mrf.mxu3 }
 0x2a4   :  { %v1344_v26 = vadd.f32 %v1343_v2, %v1309_v20  ;;  %v1313_v9 = vadd.f32 %v1312_v63, %v1270_v36 }
 0x2a6   :  { %v1358_v45 = vadd.f32 %v1344_v26, %v6995_v39  ;;  %v6290_v14 = vpop.f32.mrf.mxu1  ;;  %v1282_v26 = vadd.f32 %v1281_v35, %v1239_v40 }
 0x2a7   :  { %v6288_v57 = vpop.f32.mrf.mxu0 }
 0x2a8   :  { %v5363_v34 = vmul.f32 -1.442695, %v1358_v45 }
 0x2aa   :  { %5481 = vpow2.f32 %v5363_v34 }
 0x2ab   :  { %v1316_v54 = vpop.f32.mrf.mxu2  ;;  %v1347_v12 = vpop.f32.mrf.mxu3 }
 0x2ac   :  { %v1348_v18 = vadd.f32 %v1347_v12, %v1313_v9  ;;  %v1317_v29 = vadd.f32 %v1316_v54, %v1276_v62 }
 0x2ae   :  { %v1359_v41 = vadd.f32 %v1348_v18, %v6996_v7  ;;  %v6296_v58 = vpop.f32.mrf.mxu1 }
 0x2af   :  { %v6293_v45 = vpop.f32.mrf.mxu0 }
 0x2b0   :  { %v5482_v0 = vpop.eup %5481  ;;  %v5364_v20 = vmul.f32 -1.442695, %v1359_v41 }
 0x2b1   :  { %v1371_v2 = vadd.f32 1.0, %v5482_v0 }
 0x2b2   :  { %5483 = vpow2.f32 %v5364_v20 }
 0x2b3   :  { %5485 = vrcp.f32 %v1371_v2  ;;  %v1320_v36 = vpop.f32.mrf.mxu2  ;;  %v1351_v53 = vpop.f32.mrf.mxu3  ;;  %vm1379_vm7 = vweird.f32 %v1371_v2 }
 0x2b4   :  { %v1352_v63 = vadd.f32 %v1351_v53, %v1317_v29  ;;  %v1321_v12 = vadd.f32 %v1320_v36, %v1282_v26  ;;  %v1516_v29 = vadd.f32 %v1515_v52, %v1465_v46 }
 0x2b6   :  { %v1360_v9 = vadd.f32 %v1352_v63, %v6997_v38  ;;  %v1666_v62 = vpop.f32.mrf.mxu1  ;;  %v7001_v38 = vld [vmem:[#allocation20_spill] sm:$0xff] }
 0x2b7   :  { %v1632_v0 = vpop.f32.mrf.mxu0 }
 0x2b8   :  { %v5484_v28 = vpop.eup %5483  ;;  %v5365_v34 = vmul.f32 -1.442695, %v1360_v9 }
 0x2b9   :  { %v5486_v49 = vpop.eup %5485  ;;  %v1372_v15 = vadd.f32 1.0, %v5484_v28 }
 0x2ba   :  { %v1375_v48 = vmul.f32 %v5486_v49, %v1371_v2  ;;  %5487 = vpow2.f32 %v5365_v34  ;;  %vm1380_vm6 = vweird.f32 %v5486_v49 }
 0x2bb   :  { %5489 = vrcp.f32 %v1372_v15  ;;  %v1355_v54 = vpop.f32.mrf.mxu3  ;;  %v1551_v4 = vpop.f32.mrf.mxu2  ;;  %v1398_v52 = vand.u32 2147483647, %v1372_v15  ;;  %vm6302_vm9 = vmor %vm1379_vm7, %vm1380_vm6  ;;  %vm1394_vm10 = vweird.f32 %v1372_v15 }
 0x2bc   :  { %v1376_v18 = vsub.f32 1.0, %v1375_v48  ;;  %v1356_v41 = vadd.f32 %v1355_v54, %v1321_v12  ;;  %v1552_v9 = vadd.f32 %v1551_v4, %v1516_v29  ;;  %v1400_v12 = vand.u32 2147483648, %v1372_v15 }
 0x2bd   :  { %v1383_v54 = vand.u32 2147483647, %v1371_v2  ;;  %vm1399_vm13 = vcmp.eq.f32.partialorder %v1398_v52, 8.507059e+37 }
 0x2be   :  { %v1361_v55 = vadd.f32 %v1356_v41, %v6998_v1  ;;  %v1377_v53 = vmul.f32 %v5486_v49, %v1376_v18  ;;  %v1385_v41 = vand.u32 2147483648, %v1371_v2  ;;  %v1520_v2 = vadd.f32 %v6285_v56, %v6283_v59 }
 0x2bf   :  { %v1636_v4 = vpop.f32.mrf.mxu0  ;;  %vm1384_vm12 = vcmp.eq.f32.partialorder %v1383_v54, 8.507059e+37 }
 0x2c0   :  { %v5488_v20 = vpop.eup %5487  ;;  %5491 = vtanh.f32 %v1361_v55  ;;  %v1378_v34 = vadd.f32 %v5486_v49, %v1377_v53 }
 0x2c1   :  { %v5490_v63 = vpop.eup %5489  ;;  %v6299_v35 = vadd.f32 1.0, %v5488_v20 }
 0x2c2   :  { %v1390_v40 = vmul.f32 %v5490_v63, %v1372_v15  ;;  %vm1395_vm8 = vweird.f32 %v5490_v63  ;;  %v1382_v29 = vsel %vm6302_vm9, %v5486_v49, %v1378_v34 }
 0x2c3   :  { %5493 = vrcp.f32 %v6299_v35  ;;  %v1556_v36 = vpop.f32.mrf.mxu2  ;;  %v1590_v28 = vpop.f32.mrf.mxu3  ;;  %vm1396_vm11 = vmor %vm1394_vm10, %vm1395_vm8  ;;  %vm1409_vm15 = vweird.f32 %v6299_v35 }
 0x2c4   :  { %v1391_v26 = vsub.f32 1.0, %v1390_v40  ;;  %v1591_v48 = vadd.f32 %v1590_v28, %v1552_v9  ;;  %v1401_v28 = vor.u32 1.1754944e-38, %v1400_v12  ;;  %v1557_v49 = vadd.f32 %v1556_v36, %v1520_v2 }
 0x2c6   :  { %v1392_v46 = vmul.f32 %v5490_v63, %v1391_v26  ;;  %v1633_v18 = vadd.f32 %v1632_v0, %v1591_v48  ;;  %v5492_v55 = vpop.eup %5491  ;;  %v1386_v0 = vor.u32 1.1754944e-38, %v1385_v41  ;;  %v1670_v26 = vpop.f32.mrf.mxu1 }
 0x2c8   :  { %v1393_v53 = vadd.f32 %v5490_v63, %v1392_v46  ;;  %v1667_v40 = vadd.f32 %v1666_v62, %v1633_v18  ;;  %v1387_v7 = vsel %vm1384_vm12, %v1386_v0, %v1382_v29 }
 0x2c9   :  { %v5494_v9 = vpop.eup %5493  ;;  %v1421_v12 = vmul.f32 %v5492_v55, %v1387_v7  ;;  %v1413_v7 = vand.u32 2147483647, %v6299_v35  ;;  %v7002_v55 = vld [vmem:[#allocation21_spill] sm:$0xff] }
 0x2ca   :  { %v1405_v48 = vmul.f32 %v5494_v9, %v6299_v35  ;;  %v1397_v1 = vsel %vm1396_vm11, %v5490_v63, %v1393_v53  ;;  %v1681_v15 = vadd.f32 %v1667_v40, %v7001_v38  ;;  %vm1410_vm14 = vweird.f32 %v5494_v9 }
 0x2cb   :  { %v1402_v20 = vsel %vm1399_vm13, %v1401_v28, %v1397_v1  ;;  %v1596_v34 = vpop.f32.mrf.mxu3  ;;  %v1561_v39 = vpop.f32.mrf.mxu2  ;;  %v1524_v38 = vadd.f32 %v6290_v14, %v6288_v57  ;;  %v1415_v63 = vand.u32 2147483648, %v6299_v35  ;;  %vm1411_vm0 = vmor %vm1409_vm15, %vm1410_vm14  ;;  %vm1414_vm1 = vcmp.eq.f32.partialorder %v1413_v7, 8.507059e+37 }
 0x2cc   :  { %v1406_v62 = vsub.f32 1.0, %v1405_v48  ;;  %v1420_v46 = vmul.f32 %v1402_v20, %v6207_v3  ;;  %v5366_v18 = vmul.f32 -1.442695, %v1681_v15  ;;  %v1597_v59 = vadd.f32 %v1596_v34, %v1557_v49  ;;  %v1640_v3 = vpop.f32.mrf.mxu0 }
 0x2cd   :  { %v1562_v52 = vadd.f32 %v1561_v39, %v1524_v38  ;;  %v1416_v14 = vor.u32 1.1754944e-38, %v1415_v63  ;;  %v1528_v39 = vadd.f32 %v6296_v58, %v6293_v45 }
 0x2ce   :  { %v6313_v56 = vadd.f32 %v1421_v12, %v1420_v46  ;;  %5495 = vpow2.f32 %v5366_v18  ;;  %v1407_v54 = vmul.f32 %v5494_v9, %v1406_v62  ;;  %v1637_v41 = vadd.f32 %v1636_v4, %v1597_v59  ;;  %v1674_v53 = vpop.f32.mrf.mxu1  ;;  %v7003_v62 = vld [vmem:[#allocation38_spill] sm:$0xff] }
 0x2d0   :  { %5497 = vtanh.f32 %v6313_v56  ;;  %v1408_v1 = vadd.f32 %v5494_v9, %v1407_v54  ;;  %v1671_v36 = vadd.f32 %v1670_v26, %v1637_v41 }
 0x2d2   :  { %v1682_v29 = vadd.f32 %v1671_v36, %v7002_v55  ;;  %v1412_v40 = vsel %vm1411_vm0, %v5494_v9, %v1408_v1 }
 0x2d3   :  { %v1602_v4 = vpop.f32.mrf.mxu3  ;;  %v1417_v15 = vsel %vm1414_vm1, %v1416_v14, %v1412_v40  ;;  %v1566_v20 = vpop.f32.mrf.mxu2 }
 0x2d4   :  { %v5496_v28 = vpop.eup %5495  ;;  %v1603_v57 = vadd.f32 %v1602_v4, %v1562_v52  ;;  %v5367_v0 = vmul.f32 -1.442695, %v1682_v29  ;;  %v1567_v9 = vadd.f32 %v1566_v20, %v1528_v39  ;;  %v1644_v18 = vpop.f32.mrf.mxu0  ;;  %v7004_v29 = vld [vmem:[#allocation22_spill] sm:$0xff] }
 0x2d5   :  { %v1694_v2 = vadd.f32 1.0, %v5496_v28 }
 0x2d6   :  { %v5498_v48 = vpop.eup %5497  ;;  %v1641_v26 = vadd.f32 %v1640_v3, %v1603_v57  ;;  %v1678_v45 = vpop.f32.mrf.mxu1 }
 0x2d7   :  { %5499 = vrcp.f32 %v1694_v2  ;;  %v1424_v49 = vmul.f32 %v5498_v48, %v1417_v15  ;;  %v1708_v14 = vand.u32 2147483648, %v1694_v2  ;;  %vm1702_vm3 = vweird.f32 %v1694_v2 }
 0x2d8   :  { %5501 = vpow2.f32 %v5367_v0  ;;  %v1675_v35 = vadd.f32 %v1674_v53, %v1641_v26  ;;  %v1706_v48 = vand.u32 2147483647, %v1694_v2 }
 0x2d9   :  { %v6324_v34 = vand.u32 4294901760, %v1424_v49 }
 0x2da   :  { %v1683_v46 = vadd.f32 %v1675_v35, %v7003_v62  ;;  %vm1707_vm5 = vcmp.eq.f32.partialorder %v1706_v48, 8.507059e+37 }
 0x2db   :  { %v1608_v12 = vpop.f32.mrf.mxu3  ;;  %1768 = vmatpush.msrb.mxu2 %v6324_v34  ;;  %1903 = vmatpush.msra.mxu1 %v6324_v34  ;;  %v6330_v59 = vsub.f32 %v1424_v49, %v6324_v34  ;;  %v1709_v49 = vor.u32 1.1754944e-38, %v1708_v14 }
 0x2dc   :  { %v5368_v54 = vmul.f32 -1.442695, %v1683_v46  ;;  %v1609_v41 = vadd.f32 %v1608_v12, %v1567_v9 }
 0x2dd   :  { %v5500_v38 = vpop.eup %5499  ;;  %1863 = vmatpush.msra.mxu0 %v6330_v59  ;;  %v1820_v58 = vand.u32 4294901760, %v6330_v59 }
 0x2de   :  { %v5502_v1 = vpop.eup %5501  ;;  %v1698_v63 = vmul.f32 %v5500_v38, %v1694_v2  ;;  %5503 = vpow2.f32 %v5368_v54  ;;  %v1645_v36 = vadd.f32 %v1644_v18, %v1609_v41  ;;  %vm1703_vm2 = vweird.f32 %v5500_v38 }
 0x2df   :  { %v1695_v3 = vadd.f32 1.0, %v5502_v1  ;;  %v1821_v7 = vsub.f32 %v6330_v59, %v1820_v58  ;;  %vm1704_vm4 = vmor %vm1702_vm3, %vm1703_vm2  ;;  %v7006_v59 = vld [vmem:[#allocation15_spill] sm:$0xff] }
 0x2e0   :  { %v1699_v52 = vsub.f32 1.0, %v1698_v63  ;;  %v1679_v55 = vadd.f32 %v1678_v45, %v1645_v36 }
 0x2e1   :  { %5505 = vrcp.f32 %v1695_v3  ;;  %v1822_v40 = vand.u32 4294901760, %v1821_v7  ;;  %v1723_v62 = vand.u32 2147483648, %v1695_v3  ;;  %v1721_v18 = vand.u32 2147483647, %v1695_v3 }
 0x2e2   :  { %v1684_v4 = vadd.f32 %v1679_v55, %v7004_v29  ;;  %v1700_v53 = vmul.f32 %v5500_v38, %v1699_v52  ;;  %vm1717_vm7 = vweird.f32 %v1695_v3 }
 0x2e3   :  { %1823 = vmatpush.msrb.mxu3 %v1822_v40  ;;  %v1724_v2 = vor.u32 1.1754944e-38, %v1723_v62  ;;  %vm1722_vm9 = vcmp.eq.f32.partialorder %v1721_v18, 8.507059e+37 }
 0x2e4   :  { %v5504_v28 = vpop.eup %5503  ;;  %v1701_v57 = vadd.f32 %v5500_v38, %v1700_v53  ;;  %5507 = vtanh.f32 %v1684_v4 }
 0x2e5   :  { %v1696_v0 = vadd.f32 1.0, %v5504_v28 }
 0x2e6   :  { %v1705_v15 = vsel %vm1704_vm4, %v5500_v38, %v1701_v57 }
 0x2e7   :  { %v5506_v26 = vpop.eup %5505  ;;  %5509 = vrcp.f32 %v1696_v0  ;;  %v1710_v9 = vsel %vm1707_vm5, %v1709_v49, %v1705_v15  ;;  %v1738_v29 = vand.u32 2147483648, %v1696_v0  ;;  %vm1732_vm11 = vweird.f32 %v1696_v0  ;;  %v7008_v15 = vld [vmem:[#allocation17_spill] sm:$0xff] }
 0x2e8   :  { %v1713_v20 = vmul.f32 %v5506_v26, %v1695_v3  ;;  %vm1718_vm6 = vweird.f32 %v5506_v26  ;;  %v1736_v3 = vand.u32 2147483647, %v1696_v0 }
 0x2e9   :  { %vm1719_vm8 = vmor %vm1717_vm7, %vm1718_vm6  ;;  %v1739_v53 = vor.u32 1.1754944e-38, %v1738_v29 }
 0x2ea   :  { %v5508_v39 = vpop.eup %5507  ;;  %v1714_v35 = vsub.f32 1.0, %v1713_v20  ;;  %vm1737_vm13 = vcmp.eq.f32.partialorder %v1736_v3, 8.507059e+37  ;;  %v7009_v20 = vld [vmem:[#allocation19_spill] sm:$0xff] }
 0x2eb   :  { %v1744_v46 = vmul.f32 %v5508_v39, %v1710_v9 }
 0x2ec   :  { %v1715_v12 = vmul.f32 %v5506_v26, %v1714_v35 }
 0x2ed   :  { %v5510_v54 = vpop.eup %5509 }
 0x2ee   :  { %v1728_v41 = vmul.f32 %v5510_v54, %v1696_v0  ;;  %v1716_v45 = vadd.f32 %v5506_v26, %v1715_v12  ;;  %vm1733_vm10 = vweird.f32 %v5510_v54 }
 0x2ef   :  { %vm1734_vm12 = vmor %vm1732_vm11, %vm1733_vm10 }
 0x2f0   :  { %v1729_v1 = vsub.f32 1.0, %v1728_v41  ;;  %v1720_v63 = vsel %vm1719_vm8, %v5506_v26, %v1716_v45 }
 0x2f1   :  { %v1725_v38 = vsel %vm1722_vm9, %v1724_v2, %v1720_v63 }
 0x2f2   :  { %v1730_v36 = vmul.f32 %v5510_v54, %v1729_v1  ;;  %v1743_v7 = vmul.f32 %v1725_v38, %v6231_v43 }
 0x2f4   :  { %v6339_v52 = vadd.f32 %v1744_v46, %v1743_v7  ;;  %v1731_v55 = vadd.f32 %v5510_v54, %v1730_v36 }
 0x2f6   :  { %5511 = vtanh.f32 %v6339_v52  ;;  %v1735_v4 = vsel %vm1734_vm12, %v5510_v54, %v1731_v55 }
 0x2f7   :  { %v1740_v28 = vsel %vm1737_vm13, %v1739_v53, %v1735_v4 }
 0x2fc   :  { %v5512_v40 = vpop.eup %5511 }
 0x2fd   :  { %v1747_v57 = vmul.f32 %v5512_v40, %v1740_v28 }
 0x2ff   :  { %v1769_v14 = vand.u32 4294901760, %v1747_v57 }
 0x301   :  { %1770 = vmatpush.msrb.mxu2 %v1769_v14  ;;  %1905 = vmatpush.msra.mxu1 %v1769_v14  ;;  %v1825_v43 = vsub.f32 %v1747_v57, %v1769_v14 }
 0x302   :  { %1776 = vmatmul.f32.vlgmr.msrb.gmra.mxu2 %v6080_v25  ;;  %1909 = vmatmul.f32.vlgmr.msra.gmra.mxu1 %v6066_v61 }
 0x303   :  { %1948 = vmatpush.msra.mxu2 %v1820_v58  ;;  %1866 = vmatpush.msra.mxu0 %v1825_v43  ;;  %v1826_v0 = vand.u32 4294901760, %v1825_v43  ;;  %v7007_v58 = vld [vmem:[#allocation18_spill] sm:$0xff] }
 0x304   :  { %1869 = vmatmul.f32.vlgmr.msra.gmra.mxu0 %v6060_v50 }
 0x305   :  { %2105 = vmatpush.msrb.mxu0 %v1769_v14  ;;  %1952 = vmatpush.msra.mxu2 %v1826_v0  ;;  %v1827_v48 = vsub.f32 %v1825_v43, %v1826_v0 }
 0x307   :  { %2276 = vmatpush.msra.mxu0 %v1826_v0  ;;  %2194 = vmatpush.msrb.mxu2 %v1825_v43  ;;  %v1828_v26 = vand.u32 4294901760, %v1827_v48 }
 0x309   :  { %1829 = vmatpush.msrb.mxu3 %v1828_v26  ;;  %2159 = vmatpush.msrb.mxu1 %v1828_v26 }
 0x30a   :  { %1784 = vmatmul.f32.gmra.mxu2 %v6096_v42  ;;  %1831 = vmatmul.f32.vlgmr.msrb.gmra.mxu3 %v6055_v44 }
 0x30b   :  { %1915 = vmatmul.f32.gmra.mxu1 %v6078_v33  ;;  %1985 = vmatpush.msra.mxu3 %v6324_v34  ;;  %v7005_v34 = vld [vmem:[#allocation16_spill] sm:$0xff] }
 0x30c   :  { %2310 = vmatpush.msra.mxu1 %v1769_v14  ;;  %1874 = vmatmul.f32.gmra.mxu0 %v6072_v19 }
 0x30d   :  { %1987 = vmatpush.msra.mxu3 %v1769_v14 }
 0x30f   :  { %2232 = vmatpush.msrb.mxu3 %v1769_v14 }
 0x312   :  { %1792 = vmatmul.f32.gmra.mxu2 %v6112_v13  ;;  %1835 = vmatmul.f32.gmra.mxu3 %v6069_v32 }
 0x313   :  { %1921 = vmatmul.f32.gmra.mxu1 %v6094_v51 }
 0x314   :  { %1879 = vmatmul.f32.gmra.mxu0 %v6086_v60 }
 0x31a   :  { %1800 = vmatmul.f32.gmra.mxu2 %v6120_v21  ;;  %1839 = vmatmul.f32.gmra.mxu3 %v6082_v10 }
 0x31b   :  { %1927 = vmatmul.f32.gmra.mxu1 %v6110_v37 }
 0x31c   :  { %1884 = vmatmul.f32.gmra.mxu0 %v6103_v47 }
 0x322   :  { %1843 = vmatmul.f32.gmra.mxu3 %v6098_v31  ;;  %1954 = vmatmul.f32.vlgmr.msra.gmra.mxu2 %v6055_v44 }
 0x323   :  { %2161 = vmatmul.f32.vlgmr.msrb.gmra.mxu1 %v5810_v5 }
 0x324   :  { %2111 = vmatmul.f32.vlgmr.msrb.gmra.mxu0 %v5840_v17 }
 0x32a   :  { %1958 = vmatmul.f32.gmra.mxu2 %v6069_v32  ;;  %1989 = vmatmul.f32.vlgmr.msra.gmra.mxu3 %v6055_v44 }
 0x32b   :  { %2165 = vmatmul.f32.gmra.mxu1 %v5812_v6 }
 0x32c   :  { %2119 = vmatmul.f32.gmra.mxu0 %v5856_v22 }
 0x332   :  { %1962 = vmatmul.f32.gmra.mxu2 %v6082_v10  ;;  %1993 = vmatmul.f32.gmra.mxu3 %v6069_v32 }
 0x333   :  { %2169 = vmatmul.f32.gmra.mxu1 %v5837_v16 }
 0x334   :  { %2127 = vmatmul.f32.gmra.mxu0 %v5875_v27 }
 0x33a   :  { %1966 = vmatmul.f32.gmra.mxu2 %v6098_v31  ;;  %1997 = vmatmul.f32.gmra.mxu3 %v6082_v10 }
 0x33b   :  { %2173 = vmatmul.f32.gmra.mxu1 %v5861_v24 }
 0x33c   :  { %2135 = vmatmul.f32.gmra.mxu0 %v5889_v30 }
 0x342   :  { %2001 = vmatmul.f32.gmra.mxu3 %v6098_v31  ;;  %2197 = vmatmul.f32.vlgmr.msrb.gmra.mxu2 %v5817_v8 }
 0x343   :  { %2312 = vmatmul.f32.vlgmr.msra.gmra.mxu1 %v5810_v5 }
 0x344   :  { %2278 = vmatmul.f32.vlgmr.msra.gmra.mxu0 %v5810_v5 }
 0x34a   :  { %2202 = vmatmul.f32.gmra.mxu2 %v6988_v23  ;;  %2236 = vmatmul.f32.vlgmr.msrb.gmra.mxu3 %v6989_v11 }
 0x34b   :  { %2316 = vmatmul.f32.gmra.mxu1 %v5812_v6 }
 0x34c   :  { %2282 = vmatmul.f32.gmra.mxu0 %v5812_v6 }
 0x352   :  { %2207 = vmatmul.f32.gmra.mxu2 %v7005_v34  ;;  %2242 = vmatmul.f32.gmra.mxu3 %v7006_v59 }
 0x353   :  { %2320 = vmatmul.f32.gmra.mxu1 %v5837_v16 }
 0x354   :  { %2286 = vmatmul.f32.gmra.mxu0 %v5837_v16 }
 0x35a   :  { %2212 = vmatmul.f32.gmra.mxu2 %v7007_v58  ;;  %2248 = vmatmul.f32.gmra.mxu3 %v7008_v15 }
 0x35b   :  { %2324 = vmatmul.f32.gmra.mxu1 %v5861_v24 }
 0x35c   :  { %2290 = vmatmul.f32.gmra.mxu0 %v5861_v24 }
 0x362   :  { %2254 = vmatmul.f32.gmra.mxu3 %v7009_v20  ;;  %v7010_v20 = vld [vmem:[#allocation44_spill] sm:$0xff] }
 0x37f   :  { %v1910_v49 = vpop.f32.mrf.mxu1 }
 0x381   :  { %v1870_v39 = vpop.f32.mrf.mxu0 }
 0x385   :  { %v1777_v35 = vpop.f32.mrf.mxu2 }
 0x388   :  { %v1916_v9 = vpop.f32.mrf.mxu1 }
 0x389   :  { %v1875_v62 = vpop.f32.mrf.mxu0 }
 0x38d   :  { %v1785_v46 = vpop.f32.mrf.mxu2  ;;  %v1832_v12 = vpop.f32.mrf.mxu3 }
 0x38e   :  { %v1833_v7 = vadd.f32 %v1832_v12, %v1777_v35 }
 0x390   :  { %v1922_v18 = vpop.f32.mrf.mxu1  ;;  %v1871_v4 = vadd.f32 %v1870_v39, %v1833_v7 }
 0x391   :  { %v1880_v54 = vpop.f32.mrf.mxu0 }
 0x392   :  { %v1911_v28 = vadd.f32 %v1910_v49, %v1871_v4 }
 0x395   :  { %v1793_v41 = vpop.f32.mrf.mxu2  ;;  %v1836_v45 = vpop.f32.mrf.mxu3 }
 0x396   :  { %v1837_v40 = vadd.f32 %v1836_v45, %v1785_v46 }
 0x398   :  { %v1928_v1 = vpop.f32.mrf.mxu1  ;;  %v1876_v48 = vadd.f32 %v1875_v62, %v1837_v40 }
 0x399   :  { %v1885_v2 = vpop.f32.mrf.mxu0 }
 0x39a   :  { %v1917_v59 = vadd.f32 %v1916_v9, %v1876_v48 }
 0x39d   :  { %v1801_v63 = vpop.f32.mrf.mxu2  ;;  %v1840_v38 = vpop.f32.mrf.mxu3 }
 0x39e   :  { %v1841_v58 = vadd.f32 %v1840_v38, %v1793_v41 }
 0x3a0   :  { %v2162_v55 = vpop.f32.mrf.mxu1  ;;  %v1881_v46 = vadd.f32 %v1880_v54, %v1841_v58  ;;  %v7012_v58 = vld [vmem:[#allocation46_spill] sm:$0xff] }
 0x3a1   :  { %v2112_v36 = vpop.f32.mrf.mxu0 }
 0x3a2   :  { %v1923_v40 = vadd.f32 %v1922_v18, %v1881_v46 }
 0x3a5   :  { %v1844_v29 = vpop.f32.mrf.mxu3  ;;  %v1955_v3 = vpop.f32.mrf.mxu2 }
 0x3a6   :  { %v1956_v57 = vadd.f32 %v1955_v3, %v1911_v28  ;;  %v7011_v3 = vld [vmem:[#allocation45_spill] sm:$0xff]  ;;  %v1845_v62 = vadd.f32 %v1844_v29, %v1801_v63 }
 0x3a8   :  { %v6395_v14 = vpop.f32.mrf.mxu1  ;;  %v1886_v38 = vadd.f32 %v1885_v2, %v1845_v62  ;;  %v7013_v2 = vld [vmem:[#allocation47_spill] sm:$0xff] }
 0x3a9   :  { %v6393_v53 = vpop.f32.mrf.mxu0 }
 0x3ad   :  { %v1959_v43 = vpop.f32.mrf.mxu2  ;;  %v1990_v0 = vpop.f32.mrf.mxu3 }
 0x3ae   :  { %v1991_v26 = vadd.f32 %v1990_v0, %v1956_v57  ;;  %v1960_v34 = vadd.f32 %v1959_v43, %v1917_v59 }
 0x3b0   :  { %v2005_v15 = vadd.f32 %v1991_v26, %v7010_v20  ;;  %v6400_v45 = vpop.f32.mrf.mxu1  ;;  %v1929_v26 = vadd.f32 %v1928_v1, %v1886_v38 }
 0x3b1   :  { %v6398_v12 = vpop.f32.mrf.mxu0 }
 0x3b2   :  { %v5369_v35 = vmul.f32 -1.442695, %v2005_v15 }
 0x3b4   :  { %5513 = vpow2.f32 %v5369_v35 }
 0x3b5   :  { %v1963_v39 = vpop.f32.mrf.mxu2  ;;  %v1994_v7 = vpop.f32.mrf.mxu3 }
 0x3b6   :  { %v1995_v49 = vadd.f32 %v1994_v7, %v1960_v34  ;;  %v1964_v41 = vadd.f32 %v1963_v39, %v1923_v40 }
 0x3b8   :  { %v2006_v4 = vadd.f32 %v1995_v49, %v7011_v3  ;;  %v6406_v54 = vpop.f32.mrf.mxu1 }
 0x3b9   :  { %v6403_v15 = vpop.f32.mrf.mxu0 }
 0x3ba   :  { %v5514_v28 = vpop.eup %5513  ;;  %v5370_v57 = vmul.f32 -1.442695, %v2006_v4 }
 0x3bb   :  { %v2018_v0 = vadd.f32 1.0, %v5514_v28 }
 0x3bc   :  { %5515 = vpow2.f32 %v5370_v57 }
 0x3bd   :  { %5517 = vrcp.f32 %v2018_v0  ;;  %v1967_v59 = vpop.f32.mrf.mxu2  ;;  %v1998_v9 = vpop.f32.mrf.mxu3  ;;  %vm2026_vm15 = vweird.f32 %v2018_v0 }
 0x3be   :  { %v1999_v43 = vadd.f32 %v1998_v9, %v1964_v41  ;;  %v1968_v7 = vadd.f32 %v1967_v59, %v1929_v26  ;;  %v2163_v41 = vadd.f32 %v2162_v55, %v2112_v36 }
 0x3c0   :  { %v2007_v34 = vadd.f32 %v1999_v43, %v7012_v58  ;;  %v2313_v40 = vpop.f32.mrf.mxu1  ;;  %v7016_v58 = vld [vmem:[#allocation23_spill] sm:$0xff] }
 0x3c1   :  { %v2279_v28 = vpop.f32.mrf.mxu0 }
 0x3c2   :  { %v5516_v48 = vpop.eup %5515  ;;  %v5371_v35 = vmul.f32 -1.442695, %v2007_v34 }
 0x3c3   :  { %v5518_v63 = vpop.eup %5517  ;;  %v2019_v18 = vadd.f32 1.0, %v5516_v48 }
 0x3c4   :  { %v2022_v29 = vmul.f32 %v5518_v63, %v2018_v0  ;;  %5519 = vpow2.f32 %v5371_v35  ;;  %vm2027_vm14 = vweird.f32 %v5518_v63 }
 0x3c5   :  { %5521 = vrcp.f32 %v2019_v18  ;;  %v2002_v39 = vpop.f32.mrf.mxu3  ;;  %v2198_v46 = vpop.f32.mrf.mxu2  ;;  %v2045_v55 = vand.u32 2147483647, %v2019_v18  ;;  %vm6412_vm1 = vmor %vm2026_vm15, %vm2027_vm14  ;;  %vm2041_vm2 = vweird.f32 %v2019_v18 }
 0x3c6   :  { %v2023_v49 = vsub.f32 1.0, %v2022_v29  ;;  %v2003_v4 = vadd.f32 %v2002_v39, %v1968_v7  ;;  %v2199_v34 = vadd.f32 %v2198_v46, %v2163_v41  ;;  %v2047_v7 = vand.u32 2147483648, %v2019_v18 }
 0x3c7   :  { %v2030_v39 = vand.u32 2147483647, %v2018_v0  ;;  %vm2046_vm5 = vcmp.eq.f32.partialorder %v2045_v55, 8.507059e+37 }
 0x3c8   :  { %v2008_v62 = vadd.f32 %v2003_v4, %v7013_v2  ;;  %v2024_v9 = vmul.f32 %v5518_v63, %v2023_v49  ;;  %v2032_v4 = vand.u32 2147483648, %v2018_v0  ;;  %v2167_v0 = vadd.f32 %v6395_v14, %v6393_v53 }
 0x3c9   :  { %v2283_v46 = vpop.f32.mrf.mxu0  ;;  %vm2031_vm4 = vcmp.eq.f32.partialorder %v2030_v39, 8.507059e+37 }
 0x3ca   :  { %v5520_v57 = vpop.eup %5519  ;;  %5523 = vtanh.f32 %v2008_v62  ;;  %v2025_v35 = vadd.f32 %v5518_v63, %v2024_v9 }
 0x3cb   :  { %v5522_v43 = vpop.eup %5521  ;;  %v6409_v1 = vadd.f32 1.0, %v5520_v57 }
 0x3cc   :  { %v2037_v38 = vmul.f32 %v5522_v43, %v2019_v18  ;;  %vm2042_vm0 = vweird.f32 %v5522_v43  ;;  %v2029_v41 = vsel %vm6412_vm1, %v5518_v63, %v2025_v35 }
 0x3cd   :  { %5525 = vrcp.f32 %v6409_v1  ;;  %v2203_v59 = vpop.f32.mrf.mxu2  ;;  %v2237_v48 = vpop.f32.mrf.mxu3  ;;  %vm2043_vm3 = vmor %vm2041_vm2, %vm2042_vm0  ;;  %vm2056_vm7 = vweird.f32 %v6409_v1 }
 0x3ce   :  { %v2038_v26 = vsub.f32 1.0, %v2037_v38  ;;  %v2238_v29 = vadd.f32 %v2237_v48, %v2199_v34  ;;  %v2048_v48 = vor.u32 1.1754944e-38, %v2047_v7  ;;  %v2204_v63 = vadd.f32 %v2203_v59, %v2167_v0 }
 0x3d0   :  { %v2039_v36 = vmul.f32 %v5522_v43, %v2038_v26  ;;  %v2280_v49 = vadd.f32 %v2279_v28, %v2238_v29  ;;  %v5524_v62 = vpop.eup %5523  ;;  %v2033_v28 = vor.u32 1.1754944e-38, %v2032_v4  ;;  %v2317_v26 = vpop.f32.mrf.mxu1 }
 0x3d2   :  { %v2040_v9 = vadd.f32 %v5522_v43, %v2039_v36  ;;  %v2314_v38 = vadd.f32 %v2313_v40, %v2280_v49  ;;  %v2034_v3 = vsel %vm2031_vm4, %v2033_v28, %v2029_v41 }
 0x3d3   :  { %v5526_v34 = vpop.eup %5525  ;;  %v2068_v7 = vmul.f32 %v5524_v62, %v2034_v3  ;;  %v2060_v3 = vand.u32 2147483647, %v6409_v1  ;;  %v7017_v62 = vld [vmem:[#allocation24_spill] sm:$0xff] }
 0x3d4   :  { %v2052_v29 = vmul.f32 %v5526_v34, %v6409_v1  ;;  %v2044_v2 = vsel %vm2043_vm3, %v5522_v43, %v2040_v9  ;;  %v2328_v18 = vadd.f32 %v2314_v38, %v7016_v58  ;;  %vm2057_vm6 = vweird.f32 %v5526_v34 }
 0x3d5   :  { %v2049_v57 = vsel %vm2046_vm5, %v2048_v48, %v2044_v2  ;;  %v2243_v35 = vpop.f32.mrf.mxu3  ;;  %v2208_v20 = vpop.f32.mrf.mxu2  ;;  %v2171_v58 = vadd.f32 %v6400_v45, %v6398_v12  ;;  %v2062_v43 = vand.u32 2147483648, %v6409_v1  ;;  %vm2058_vm8 = vmor %vm2056_vm7, %vm2057_vm6  ;;  %vm2061_vm9 = vcmp.eq.f32.partialorder %v2060_v3, 8.507059e+37 }
 0x3d6   :  { %v2053_v40 = vsub.f32 1.0, %v2052_v29  ;;  %v2067_v36 = vmul.f32 %v2049_v57, %v6313_v56  ;;  %v5372_v49 = vmul.f32 -1.442695, %v2328_v18  ;;  %v2244_v53 = vadd.f32 %v2243_v35, %v2204_v63  ;;  %v2287_v56 = vpop.f32.mrf.mxu0 }
 0x3d7   :  { %v2209_v55 = vadd.f32 %v2208_v20, %v2171_v58  ;;  %v2063_v45 = vor.u32 1.1754944e-38, %v2062_v43  ;;  %v2175_v20 = vadd.f32 %v6406_v54, %v6403_v15 }
 0x3d8   :  { %v6423_v14 = vadd.f32 %v2068_v7, %v2067_v36  ;;  %5527 = vpow2.f32 %v5372_v49  ;;  %v2054_v39 = vmul.f32 %v5526_v34, %v2053_v40  ;;  %v2284_v4 = vadd.f32 %v2283_v46, %v2244_v53  ;;  %v2321_v9 = vpop.f32.mrf.mxu1  ;;  %v7018_v40 = vld [vmem:[#allocation39_spill] sm:$0xff] }
 0x3da   :  { %5529 = vtanh.f32 %v6423_v14  ;;  %v2055_v2 = vadd.f32 %v5526_v34, %v2054_v39  ;;  %v2318_v59 = vadd.f32 %v2317_v26, %v2284_v4 }
 0x3dc   :  { %v2329_v41 = vadd.f32 %v2318_v59, %v7017_v62  ;;  %v2059_v38 = vsel %vm2058_vm8, %v5526_v34, %v2055_v2 }
 0x3dd   :  { %v2249_v46 = vpop.f32.mrf.mxu3  ;;  %v2064_v18 = vsel %vm2061_vm9, %v2063_v45, %v2059_v38  ;;  %v2213_v57 = vpop.f32.mrf.mxu2 }
 0x3de   :  { %v5528_v48 = vpop.eup %5527  ;;  %v2250_v12 = vadd.f32 %v2249_v46, %v2209_v55  ;;  %v5373_v28 = vmul.f32 -1.442695, %v2329_v41  ;;  %v2214_v34 = vadd.f32 %v2213_v57, %v2175_v20  ;;  %v2291_v49 = vpop.f32.mrf.mxu0  ;;  %v7019_v41 = vld [vmem:[#allocation25_spill] sm:$0xff] }
 0x3df   :  { %v2341_v0 = vadd.f32 1.0, %v5528_v48 }
 0x3e0   :  { %v5530_v29 = vpop.eup %5529  ;;  %v2288_v26 = vadd.f32 %v2287_v56, %v2250_v12  ;;  %v2325_v15 = vpop.f32.mrf.mxu1 }
 0x3e1   :  { %5531 = vrcp.f32 %v2341_v0  ;;  %v2071_v63 = vmul.f32 %v5530_v29, %v2064_v18  ;;  %v2355_v45 = vand.u32 2147483648, %v2341_v0  ;;  %vm2349_vm11 = vweird.f32 %v2341_v0 }
 0x3e2   :  { %5533 = vpow2.f32 %v5373_v28  ;;  %v2322_v1 = vadd.f32 %v2321_v9, %v2288_v26  ;;  %v2353_v29 = vand.u32 2147483647, %v2341_v0 }
 0x3e3   :  { %v6434_v35 = vand.u32 4294901760, %v2071_v63 }
 0x3e4   :  { %v2330_v36 = vadd.f32 %v2322_v1, %v7018_v40  ;;  %vm2354_vm13 = vcmp.eq.f32.partialorder %v2353_v29, 8.507059e+37 }
 0x3e5   :  { %v2255_v7 = vpop.f32.mrf.mxu3  ;;  %2415 = vmatpush.msra.mxu2 %v6434_v35  ;;  %2550 = vmatpush.msrb.mxu1 %v6434_v35  ;;  %v6440_v53 = vsub.f32 %v2071_v63, %v6434_v35  ;;  %v2356_v63 = vor.u32 1.1754944e-38, %v2355_v45 }
 0x3e6   :  { %v5374_v39 = vmul.f32 -1.442695, %v2330_v36  ;;  %v2256_v4 = vadd.f32 %v2255_v7, %v2214_v34 }
 0x3e7   :  { %v5532_v58 = vpop.eup %5531  ;;  %2510 = vmatpush.msrb.mxu0 %v6440_v53  ;;  %v2467_v54 = vand.u32 4294901760, %v6440_v53 }
 0x3e8   :  { %v5534_v2 = vpop.eup %5533  ;;  %v2345_v43 = vmul.f32 %v5532_v58, %v2341_v0  ;;  %5535 = vpow2.f32 %v5374_v39  ;;  %v2292_v59 = vadd.f32 %v2291_v49, %v2256_v4  ;;  %vm2350_vm10 = vweird.f32 %v5532_v58 }
 0x3e9   :  { %v2342_v56 = vadd.f32 1.0, %v5534_v2  ;;  %v2468_v3 = vsub.f32 %v6440_v53, %v2467_v54  ;;  %vm2351_vm12 = vmor %vm2349_vm11, %vm2350_vm10  ;;  %v7021_v53 = vld [vmem:[#allocation15_spill] sm:$0xff] }
 0x3ea   :  { %v2346_v55 = vsub.f32 1.0, %v2345_v43  ;;  %v2326_v62 = vadd.f32 %v2325_v15, %v2292_v59 }
 0x3eb   :  { %5537 = vrcp.f32 %v2342_v56  ;;  %v2469_v38 = vand.u32 4294901760, %v2468_v3  ;;  %v2370_v40 = vand.u32 2147483648, %v2342_v56  ;;  %v2368_v49 = vand.u32 2147483647, %v2342_v56 }
 0x3ec   :  { %v2331_v46 = vadd.f32 %v2326_v62, %v7019_v41  ;;  %v2347_v9 = vmul.f32 %v5532_v58, %v2346_v55  ;;  %vm2364_vm15 = vweird.f32 %v2342_v56 }
 0x3ed   :  { %2470 = vmatpush.msra.mxu3 %v2469_v38  ;;  %v2371_v0 = vor.u32 1.1754944e-38, %v2370_v40  ;;  %vm2369_vm1 = vcmp.eq.f32.partialorder %v2368_v49, 8.507059e+37 }
 0x3ee   :  { %v5536_v48 = vpop.eup %5535  ;;  %v2348_v12 = vadd.f32 %v5532_v58, %v2347_v9  ;;  %5539 = vtanh.f32 %v2331_v46 }
 0x3ef   :  { %v2343_v28 = vadd.f32 1.0, %v5536_v48 }
 0x3f0   :  { %v2352_v18 = vsel %vm2351_vm12, %v5532_v58, %v2348_v12 }
 0x3f1   :  { %v5538_v26 = vpop.eup %5537  ;;  %5541 = vrcp.f32 %v2343_v28  ;;  %v2357_v34 = vsel %vm2354_vm13, %v2356_v63, %v2352_v18  ;;  %v2385_v41 = vand.u32 2147483648, %v2343_v28  ;;  %vm2379_vm3 = vweird.f32 %v2343_v28  ;;  %v7023_v18 = vld [vmem:[#allocation17_spill] sm:$0xff] }
 0x3f2   :  { %v2360_v57 = vmul.f32 %v5538_v26, %v2342_v56  ;;  %vm2365_vm14 = vweird.f32 %v5538_v26  ;;  %v2383_v56 = vand.u32 2147483647, %v2343_v28 }
 0x3f3   :  { %vm2366_vm0 = vmor %vm2364_vm15, %vm2365_vm14  ;;  %v2386_v9 = vor.u32 1.1754944e-38, %v2385_v41 }
 0x3f4   :  { %v5540_v20 = vpop.eup %5539  ;;  %v2361_v1 = vsub.f32 1.0, %v2360_v57  ;;  %vm2384_vm5 = vcmp.eq.f32.partialorder %v2383_v56, 8.507059e+37  ;;  %v7024_v57 = vld [vmem:[#allocation19_spill] sm:$0xff] }
 0x3f5   :  { %v2391_v36 = vmul.f32 %v5540_v20, %v2357_v34 }
 0x3f6   :  { %v2362_v7 = vmul.f32 %v5538_v26, %v2361_v1 }
 0x3f7   :  { %v5542_v39 = vpop.eup %5541 }
 0x3f8   :  { %v2375_v4 = vmul.f32 %v5542_v39, %v2343_v28  ;;  %v2363_v15 = vadd.f32 %v5538_v26, %v2362_v7  ;;  %vm2380_vm2 = vweird.f32 %v5542_v39 }
 0x3f9   :  { %vm2381_vm4 = vmor %vm2379_vm3, %vm2380_vm2 }
 0x3fa   :  { %v2376_v2 = vsub.f32 1.0, %v2375_v4  ;;  %v2367_v43 = vsel %vm2366_vm0, %v5538_v26, %v2363_v15 }
 0x3fb   :  { %v2372_v58 = vsel %vm2369_vm1, %v2371_v0, %v2367_v43 }
 0x3fc   :  { %v2377_v59 = vmul.f32 %v5542_v39, %v2376_v2  ;;  %v2390_v3 = vmul.f32 %v2372_v58, %v6339_v52 }
 0x3fe   :  { %v6449_v55 = vadd.f32 %v2391_v36, %v2390_v3  ;;  %v2378_v62 = vadd.f32 %v5542_v39, %v2377_v59 }
 0x400   :  { %5543 = vtanh.f32 %v6449_v55  ;;  %v2382_v46 = vsel %vm2381_vm4, %v5542_v39, %v2378_v62 }
 0x401   :  { %v2387_v48 = vsel %vm2384_vm5, %v2386_v9, %v2382_v46 }
 0x406   :  { %v5544_v38 = vpop.eup %5543 }
 0x407   :  { %v2394_v12 = vmul.f32 %v5544_v38, %v2387_v48 }
 0x409   :  { %v2416_v45 = vand.u32 4294901760, %v2394_v12 }
 0x40b   :  { %2417 = vmatpush.msra.mxu2 %v2416_v45  ;;  %2552 = vmatpush.msrb.mxu1 %v2416_v45  ;;  %v2472_v52 = vsub.f32 %v2394_v12, %v2416_v45 }
 0x40c   :  { %2423 = vmatmul.f32.vlgmr.msra.gmra.mxu2 %v6080_v25  ;;  %2556 = vmatmul.f32.vlgmr.msrb.gmra.mxu1 %v6066_v61 }
 0x40d   :  { %2595 = vmatpush.msrb.mxu2 %v2467_v54  ;;  %2513 = vmatpush.msrb.mxu0 %v2472_v52  ;;  %v2473_v28 = vand.u32 4294901760, %v2472_v52  ;;  %v7022_v54 = vld [vmem:[#allocation18_spill] sm:$0xff] }
 0x40e   :  { %2516 = vmatmul.f32.vlgmr.msrb.gmra.mxu0 %v6060_v50 }
 0x40f   :  { %2752 = vmatpush.msra.mxu0 %v2416_v45  ;;  %2599 = vmatpush.msrb.mxu2 %v2473_v28  ;;  %v2474_v29 = vsub.f32 %v2472_v52, %v2473_v28 }
 0x411   :  { %2923 = vmatpush.msrb.mxu0 %v2473_v28  ;;  %2841 = vmatpush.msra.mxu2 %v2472_v52  ;;  %v2475_v26 = vand.u32 4294901760, %v2474_v29 }
 0x413   :  { %2476 = vmatpush.msra.mxu3 %v2475_v26  ;;  %2806 = vmatpush.msra.mxu1 %v2475_v26 }
 0x414   :  { %2431 = vmatmul.f32.gmra.mxu2 %v6096_v42  ;;  %2478 = vmatmul.f32.vlgmr.msra.gmra.mxu3 %v6055_v44 }
 0x415   :  { %2562 = vmatmul.f32.gmra.mxu1 %v6078_v33  ;;  %2632 = vmatpush.msrb.mxu3 %v6434_v35  ;;  %v7020_v35 = vld [vmem:[#allocation16_spill] sm:$0xff] }
 0x416   :  { %2957 = vmatpush.msrb.mxu1 %v2416_v45  ;;  %2521 = vmatmul.f32.gmra.mxu0 %v6072_v19 }
 0x417   :  { %2634 = vmatpush.msrb.mxu3 %v2416_v45 }
 0x419   :  { %2879 = vmatpush.msra.mxu3 %v2416_v45 }
 0x41c   :  { %2439 = vmatmul.f32.gmra.mxu2 %v6112_v13  ;;  %2482 = vmatmul.f32.gmra.mxu3 %v6069_v32 }
 0x41d   :  { %2568 = vmatmul.f32.gmra.mxu1 %v6094_v51 }
 0x41e   :  { %2526 = vmatmul.f32.gmra.mxu0 %v6086_v60 }
 0x424   :  { %2447 = vmatmul.f32.gmra.mxu2 %v6120_v21  ;;  %2486 = vmatmul.f32.gmra.mxu3 %v6082_v10 }
 0x425   :  { %2574 = vmatmul.f32.gmra.mxu1 %v6110_v37 }
 0x426   :  { %2531 = vmatmul.f32.gmra.mxu0 %v6103_v47 }
 0x42c   :  { %2490 = vmatmul.f32.gmra.mxu3 %v6098_v31  ;;  %2601 = vmatmul.f32.vlgmr.msrb.gmra.mxu2 %v6055_v44 }
 0x42d   :  { %2808 = vmatmul.f32.vlgmr.msra.gmra.mxu1 %v5810_v5 }
 0x42e   :  { %2758 = vmatmul.f32.vlgmr.msra.gmra.mxu0 %v5840_v17 }
 0x434   :  { %2605 = vmatmul.f32.gmra.mxu2 %v6069_v32  ;;  %2636 = vmatmul.f32.vlgmr.msrb.gmra.mxu3 %v6055_v44 }
 0x435   :  { %2812 = vmatmul.f32.gmra.mxu1 %v5812_v6 }
 0x436   :  { %2766 = vmatmul.f32.gmra.mxu0 %v5856_v22 }
 0x43c   :  { %2609 = vmatmul.f32.gmra.mxu2 %v6082_v10  ;;  %2640 = vmatmul.f32.gmra.mxu3 %v6069_v32 }
 0x43d   :  { %2816 = vmatmul.f32.gmra.mxu1 %v5837_v16 }
 0x43e   :  { %2774 = vmatmul.f32.gmra.mxu0 %v5875_v27 }
 0x444   :  { %2613 = vmatmul.f32.gmra.mxu2 %v6098_v31  ;;  %2644 = vmatmul.f32.gmra.mxu3 %v6082_v10 }
 0x445   :  { %2820 = vmatmul.f32.gmra.mxu1 %v5861_v24 }
 0x446   :  { %2782 = vmatmul.f32.gmra.mxu0 %v5889_v30 }
 0x44c   :  { %2648 = vmatmul.f32.gmra.mxu3 %v6098_v31  ;;  %2844 = vmatmul.f32.vlgmr.msra.gmra.mxu2 %v5817_v8 }
 0x44d   :  { %2959 = vmatmul.f32.vlgmr.msrb.gmra.mxu1 %v5810_v5 }
 0x44e   :  { %2925 = vmatmul.f32.vlgmr.msrb.gmra.mxu0 %v5810_v5 }
 0x454   :  { %2849 = vmatmul.f32.gmra.mxu2 %v6988_v23  ;;  %2883 = vmatmul.f32.vlgmr.msra.gmra.mxu3 %v6989_v11 }
 0x455   :  { %2963 = vmatmul.f32.gmra.mxu1 %v5812_v6 }
 0x456   :  { %2929 = vmatmul.f32.gmra.mxu0 %v5812_v6 }
 0x45c   :  { %2854 = vmatmul.f32.gmra.mxu2 %v7020_v35  ;;  %2889 = vmatmul.f32.gmra.mxu3 %v7021_v53 }
 0x45d   :  { %2967 = vmatmul.f32.gmra.mxu1 %v5837_v16 }
 0x45e   :  { %2933 = vmatmul.f32.gmra.mxu0 %v5837_v16 }
 0x464   :  { %2859 = vmatmul.f32.gmra.mxu2 %v7022_v54  ;;  %2895 = vmatmul.f32.gmra.mxu3 %v7023_v18 }
 0x465   :  { %2971 = vmatmul.f32.gmra.mxu1 %v5861_v24 }
 0x466   :  { %2937 = vmatmul.f32.gmra.mxu0 %v5861_v24 }
 0x46c   :  { %2901 = vmatmul.f32.gmra.mxu3 %v7024_v57  ;;  %v7025_v57 = vld [vmem:[#allocation44_spill] sm:$0xff] }
 0x489   :  { %v2557_v63 = vpop.f32.mrf.mxu1 }
 0x48b   :  { %v2517_v20 = vpop.f32.mrf.mxu0 }
 0x48f   :  { %v2424_v1 = vpop.f32.mrf.mxu2 }
 0x492   :  { %v2563_v34 = vpop.f32.mrf.mxu1 }
 0x493   :  { %v2522_v40 = vpop.f32.mrf.mxu0 }
 0x497   :  { %v2432_v36 = vpop.f32.mrf.mxu2  ;;  %v2479_v7 = vpop.f32.mrf.mxu3 }
 0x498   :  { %v2480_v3 = vadd.f32 %v2479_v7, %v2424_v1 }
 0x49a   :  { %v2569_v49 = vpop.f32.mrf.mxu1  ;;  %v2518_v46 = vadd.f32 %v2517_v20, %v2480_v3 }
 0x49b   :  { %v2527_v39 = vpop.f32.mrf.mxu0 }
 0x49c   :  { %v2558_v48 = vadd.f32 %v2557_v63, %v2518_v46 }
 0x49f   :  { %v2440_v4 = vpop.f32.mrf.mxu2  ;;  %v2483_v15 = vpop.f32.mrf.mxu3 }
 0x4a0   :  { %v2484_v38 = vadd.f32 %v2483_v15, %v2432_v36 }
 0x4a2   :  { %v2575_v2 = vpop.f32.mrf.mxu1  ;;  %v2523_v29 = vadd.f32 %v2522_v40, %v2484_v38 }
 0x4a3   :  { %v2532_v0 = vpop.f32.mrf.mxu0 }
 0x4a4   :  { %v2564_v53 = vadd.f32 %v2563_v34, %v2523_v29 }
 0x4a7   :  { %v2448_v43 = vpop.f32.mrf.mxu2  ;;  %v2487_v58 = vpop.f32.mrf.mxu3 }
 0x4a8   :  { %v2488_v54 = vadd.f32 %v2487_v58, %v2440_v4 }
 0x4aa   :  { %v2809_v62 = vpop.f32.mrf.mxu1  ;;  %v2528_v36 = vadd.f32 %v2527_v39, %v2488_v54  ;;  %v7027_v54 = vld [vmem:[#allocation46_spill] sm:$0xff] }
 0x4ab   :  { %v2759_v59 = vpop.f32.mrf.mxu0 }
 0x4ac   :  { %v2570_v38 = vadd.f32 %v2569_v49, %v2528_v36 }
 0x4af   :  { %v2491_v41 = vpop.f32.mrf.mxu3  ;;  %v2602_v56 = vpop.f32.mrf.mxu2 }
 0x4b0   :  { %v2603_v12 = vadd.f32 %v2602_v56, %v2558_v48  ;;  %v7026_v56 = vld [vmem:[#allocation45_spill] sm:$0xff]  ;;  %v2492_v40 = vadd.f32 %v2491_v41, %v2448_v43 }
 0x4b2   :  { %v6505_v45 = vpop.f32.mrf.mxu1  ;;  %v2533_v58 = vadd.f32 %v2532_v0, %v2492_v40  ;;  %v7028_v0 = vld [vmem:[#allocation47_spill] sm:$0xff] }
 0x4b3   :  { %v6503_v9 = vpop.f32.mrf.mxu0 }
 0x4b7   :  { %v2606_v52 = vpop.f32.mrf.mxu2  ;;  %v2637_v28 = vpop.f32.mrf.mxu3 }
 0x4b8   :  { %v2638_v26 = vadd.f32 %v2637_v28, %v2603_v12  ;;  %v2607_v35 = vadd.f32 %v2606_v52, %v2564_v53 }
 0x4ba   :  { %v2652_v18 = vadd.f32 %v2638_v26, %v7025_v57  ;;  %v6510_v15 = vpop.f32.mrf.mxu1  ;;  %v2576_v26 = vadd.f32 %v2575_v2, %v2533_v58 }
 0x4bb   :  { %v6508_v7 = vpop.f32.mrf.mxu0 }
 0x4bc   :  { %v5375_v1 = vmul.f32 -1.442695, %v2652_v18 }
 0x4be   :  { %5545 = vpow2.f32 %v5375_v1 }
 0x4bf   :  { %v2610_v20 = vpop.f32.mrf.mxu2  ;;  %v2641_v3 = vpop.f32.mrf.mxu3 }
 0x4c0   :  { %v2642_v63 = vadd.f32 %v2641_v3, %v2607_v35  ;;  %v2611_v4 = vadd.f32 %v2610_v20, %v2570_v38 }
 0x4c2   :  { %v2653_v46 = vadd.f32 %v2642_v63, %v7026_v56  ;;  %v6516_v39 = vpop.f32.mrf.mxu1 }
 0x4c3   :  { %v6513_v18 = vpop.f32.mrf.mxu0 }
 0x4c4   :  { %v5546_v48 = vpop.eup %5545  ;;  %v5376_v12 = vmul.f32 -1.442695, %v2653_v46 }
 0x4c5   :  { %v2665_v28 = vadd.f32 1.0, %v5546_v48 }
 0x4c6   :  { %5547 = vpow2.f32 %v5376_v12 }
 0x4c7   :  { %5549 = vrcp.f32 %v2665_v28  ;;  %v2614_v53 = vpop.f32.mrf.mxu2  ;;  %v2645_v34 = vpop.f32.mrf.mxu3  ;;  %vm2673_vm7 = vweird.f32 %v2665_v28 }
 0x4c8   :  { %v2646_v52 = vadd.f32 %v2645_v34, %v2611_v4  ;;  %v2615_v3 = vadd.f32 %v2614_v53, %v2576_v26  ;;  %v2810_v4 = vadd.f32 %v2809_v62, %v2759_v59 }
 0x4ca   :  { %v2654_v35 = vadd.f32 %v2646_v52, %v7027_v54  ;;  %v2960_v38 = vpop.f32.mrf.mxu1  ;;  %v7031_v54 = vld [vmem:[#allocation26_spill] sm:$0xff] }
 0x4cb   :  { %v2926_v48 = vpop.f32.mrf.mxu0 }
 0x4cc   :  { %v5548_v29 = vpop.eup %5547  ;;  %v5377_v1 = vmul.f32 -1.442695, %v2654_v35 }
 0x4cd   :  { %v5550_v43 = vpop.eup %5549  ;;  %v2666_v49 = vadd.f32 1.0, %v5548_v29 }
 0x4ce   :  { %v2669_v41 = vmul.f32 %v5550_v43, %v2665_v28  ;;  %5551 = vpow2.f32 %v5377_v1  ;;  %vm2674_vm6 = vweird.f32 %v5550_v43 }
 0x4cf   :  { %5553 = vrcp.f32 %v2666_v49  ;;  %v2649_v20 = vpop.f32.mrf.mxu3  ;;  %v2845_v36 = vpop.f32.mrf.mxu2  ;;  %v2692_v62 = vand.u32 2147483647, %v2666_v49  ;;  %vm6522_vm9 = vmor %vm2673_vm7, %vm2674_vm6  ;;  %vm2688_vm10 = vweird.f32 %v2666_v49 }
 0x4d0   :  { %v2670_v63 = vsub.f32 1.0, %v2669_v41  ;;  %v2650_v46 = vadd.f32 %v2649_v20, %v2615_v3  ;;  %v2846_v35 = vadd.f32 %v2845_v36, %v2810_v4  ;;  %v2694_v3 = vand.u32 2147483648, %v2666_v49 }
 0x4d1   :  { %v2677_v20 = vand.u32 2147483647, %v2665_v28  ;;  %vm2693_vm13 = vcmp.eq.f32.partialorder %v2692_v62, 8.507059e+37 }
 0x4d2   :  { %v2655_v40 = vadd.f32 %v2650_v46, %v7028_v0  ;;  %v2671_v34 = vmul.f32 %v5550_v43, %v2670_v63  ;;  %v2679_v46 = vand.u32 2147483648, %v2665_v28  ;;  %v2814_v28 = vadd.f32 %v6505_v45, %v6503_v9 }
 0x4d3   :  { %v2930_v36 = vpop.f32.mrf.mxu0  ;;  %vm2678_vm12 = vcmp.eq.f32.partialorder %v2677_v20, 8.507059e+37 }
 0x4d4   :  { %v5552_v12 = vpop.eup %5551  ;;  %5555 = vtanh.f32 %v2655_v40  ;;  %v2672_v1 = vadd.f32 %v5550_v43, %v2671_v34 }
 0x4d5   :  { %v5554_v52 = vpop.eup %5553  ;;  %v6519_v2 = vadd.f32 1.0, %v5552_v12 }
 0x4d6   :  { %v2684_v58 = vmul.f32 %v5554_v52, %v2666_v49  ;;  %vm2689_vm8 = vweird.f32 %v5554_v52  ;;  %v2676_v4 = vsel %vm6522_vm9, %v5550_v43, %v2672_v1 }
 0x4d7   :  { %5557 = vrcp.f32 %v6519_v2  ;;  %v2850_v53 = vpop.f32.mrf.mxu2  ;;  %v2884_v29 = vpop.f32.mrf.mxu3  ;;  %vm2690_vm11 = vmor %vm2688_vm10, %vm2689_vm8  ;;  %vm2703_vm15 = vweird.f32 %v6519_v2 }
 0x4d8   :  { %v2685_v26 = vsub.f32 1.0, %v2684_v58  ;;  %v2885_v41 = vadd.f32 %v2884_v29, %v2846_v35  ;;  %v2695_v29 = vor.u32 1.1754944e-38, %v2694_v3  ;;  %v2851_v43 = vadd.f32 %v2850_v53, %v2814_v28 }
 0x4da   :  { %v2686_v59 = vmul.f32 %v5554_v52, %v2685_v26  ;;  %v2927_v63 = vadd.f32 %v2926_v48, %v2885_v41  ;;  %v5556_v40 = vpop.eup %5555  ;;  %v2680_v48 = vor.u32 1.1754944e-38, %v2679_v46  ;;  %v2964_v26 = vpop.f32.mrf.mxu1 }
 0x4dc   :  { %v2687_v34 = vadd.f32 %v5554_v52, %v2686_v59  ;;  %v2961_v58 = vadd.f32 %v2960_v38, %v2927_v63  ;;  %v2681_v56 = vsel %vm2678_vm12, %v2680_v48, %v2676_v4 }
 0x4dd   :  { %v5558_v35 = vpop.eup %5557  ;;  %v2715_v3 = vmul.f32 %v5556_v40, %v2681_v56  ;;  %v2707_v56 = vand.u32 2147483647, %v6519_v2  ;;  %v7032_v40 = vld [vmem:[#allocation27_spill] sm:$0xff] }
 0x4de   :  { %v2699_v41 = vmul.f32 %v5558_v35, %v6519_v2  ;;  %v2691_v0 = vsel %vm2690_vm11, %v5554_v52, %v2687_v34  ;;  %v2975_v49 = vadd.f32 %v2961_v58, %v7031_v54  ;;  %vm2704_vm14 = vweird.f32 %v5558_v35 }
 0x4df   :  { %v2696_v12 = vsel %vm2693_vm13, %v2695_v29, %v2691_v0  ;;  %v2890_v1 = vpop.f32.mrf.mxu3  ;;  %v2855_v57 = vpop.f32.mrf.mxu2  ;;  %v2818_v54 = vadd.f32 %v6510_v15, %v6508_v7  ;;  %v2709_v52 = vand.u32 2147483648, %v6519_v2  ;;  %vm2705_vm0 = vmor %vm2703_vm15, %vm2704_vm14  ;;  %vm2708_vm1 = vcmp.eq.f32.partialorder %v2707_v56, 8.507059e+37 }
 0x4e0   :  { %v2700_v38 = vsub.f32 1.0, %v2699_v41  ;;  %v2714_v59 = vmul.f32 %v2696_v12, %v6423_v14  ;;  %v5378_v63 = vmul.f32 -1.442695, %v2975_v49  ;;  %v2891_v9 = vadd.f32 %v2890_v1, %v2851_v43  ;;  %v2934_v14 = vpop.f32.mrf.mxu0 }
 0x4e1   :  { %v2856_v62 = vadd.f32 %v2855_v57, %v2818_v54  ;;  %v2710_v15 = vor.u32 1.1754944e-38, %v2709_v52  ;;  %v2822_v57 = vadd.f32 %v6516_v39, %v6513_v18 }
 0x4e2   :  { %v6533_v45 = vadd.f32 %v2715_v3, %v2714_v59  ;;  %5559 = vpow2.f32 %v5378_v63  ;;  %v2701_v20 = vmul.f32 %v5558_v35, %v2700_v38  ;;  %v2931_v46 = vadd.f32 %v2930_v36, %v2891_v9  ;;  %v2968_v34 = vpop.f32.mrf.mxu1  ;;  %v7033_v38 = vld [vmem:[#allocation40_spill] sm:$0xff] }
 0x4e4   :  { %5561 = vtanh.f32 %v6533_v45  ;;  %v2702_v0 = vadd.f32 %v5558_v35, %v2701_v20  ;;  %v2965_v53 = vadd.f32 %v2964_v26, %v2931_v46 }
 0x4e6   :  { %v2976_v4 = vadd.f32 %v2965_v53, %v7032_v40  ;;  %v2706_v58 = vsel %vm2705_vm0, %v5558_v35, %v2702_v0 }
 0x4e7   :  { %v2896_v36 = vpop.f32.mrf.mxu3  ;;  %v2711_v49 = vsel %vm2708_vm1, %v2710_v15, %v2706_v58  ;;  %v2860_v12 = vpop.f32.mrf.mxu2 }
 0x4e8   :  { %v5560_v29 = vpop.eup %5559  ;;  %v2897_v7 = vadd.f32 %v2896_v36, %v2856_v62  ;;  %v5379_v48 = vmul.f32 -1.442695, %v2976_v4  ;;  %v2861_v35 = vadd.f32 %v2860_v12, %v2822_v57  ;;  %v2938_v63 = vpop.f32.mrf.mxu0  ;;  %v7034_v4 = vld [vmem:[#allocation28_spill] sm:$0xff] }
 0x4e9   :  { %v2988_v28 = vadd.f32 1.0, %v5560_v29 }
 0x4ea   :  { %v5562_v41 = vpop.eup %5561  ;;  %v2935_v26 = vadd.f32 %v2934_v14, %v2897_v7  ;;  %v2972_v18 = vpop.f32.mrf.mxu1 }
 0x4eb   :  { %5563 = vrcp.f32 %v2988_v28  ;;  %v2718_v43 = vmul.f32 %v5562_v41, %v2711_v49  ;;  %v3002_v15 = vand.u32 2147483648, %v2988_v28  ;;  %vm2996_vm3 = vweird.f32 %v2988_v28 }
 0x4ec   :  { %5565 = vpow2.f32 %v5379_v48  ;;  %v2969_v2 = vadd.f32 %v2968_v34, %v2935_v26  ;;  %v3000_v41 = vand.u32 2147483647, %v2988_v28 }
 0x4ed   :  { %v6544_v1 = vand.u32 4294901760, %v2718_v43 }
 0x4ee   :  { %v2977_v59 = vadd.f32 %v2969_v2, %v7033_v38  ;;  %vm3001_vm5 = vcmp.eq.f32.partialorder %v3000_v41, 8.507059e+37 }
 0x4ef   :  { %v2902_v3 = vpop.f32.mrf.mxu3  ;;  %3062 = vmatpush.msrb.mxu2 %v6544_v1  ;;  %3197 = vmatpush.msra.mxu1 %v6544_v1  ;;  %v6550_v9 = vsub.f32 %v2718_v43, %v6544_v1  ;;  %v3003_v43 = vor.u32 1.1754944e-38, %v3002_v15 }
 0x4f0   :  { %v5380_v20 = vmul.f32 -1.442695, %v2977_v59  ;;  %v2903_v46 = vadd.f32 %v2902_v3, %v2861_v35 }
 0x4f1   :  { %v5564_v54 = vpop.eup %5563  ;;  %3157 = vmatpush.msra.mxu0 %v6550_v9  ;;  %v3114_v39 = vand.u32 4294901760, %v6550_v9 }
 0x4f2   :  { %v5566_v0 = vpop.eup %5565  ;;  %v2992_v52 = vmul.f32 %v5564_v54, %v2988_v28  ;;  %5567 = vpow2.f32 %v5380_v20  ;;  %v2939_v53 = vadd.f32 %v2938_v63, %v2903_v46  ;;  %vm2997_vm2 = vweird.f32 %v5564_v54 }
 0x4f3   :  { %v2989_v14 = vadd.f32 1.0, %v5566_v0  ;;  %v3115_v56 = vsub.f32 %v6550_v9, %v3114_v39  ;;  %vm2998_vm4 = vmor %vm2996_vm3, %vm2997_vm2  ;;  %v7036_v9 = vld [vmem:[#allocation15_spill] sm:$0xff] }
 0x4f4   :  { %v2993_v62 = vsub.f32 1.0, %v2992_v52  ;;  %v2973_v40 = vadd.f32 %v2972_v18, %v2939_v53 }
 0x4f5   :  { %5569 = vrcp.f32 %v2989_v14  ;;  %v3116_v58 = vand.u32 4294901760, %v3115_v56  ;;  %v3017_v38 = vand.u32 2147483648, %v2989_v14  ;;  %v3015_v63 = vand.u32 2147483647, %v2989_v14 }
 0x4f6   :  { %v2978_v36 = vadd.f32 %v2973_v40, %v7034_v4  ;;  %v2994_v34 = vmul.f32 %v5564_v54, %v2993_v62  ;;  %vm3011_vm7 = vweird.f32 %v2989_v14 }
 0x4f7   :  { %3117 = vmatpush.msrb.mxu3 %v3116_v58  ;;  %v3018_v28 = vor.u32 1.1754944e-38, %v3017_v38  ;;  %vm3016_vm9 = vcmp.eq.f32.partialorder %v3015_v63, 8.507059e+37 }
 0x4f8   :  { %v5568_v29 = vpop.eup %5567  ;;  %v2995_v7 = vadd.f32 %v5564_v54, %v2994_v34  ;;  %5571 = vtanh.f32 %v2978_v36 }
 0x4f9   :  { %v2990_v48 = vadd.f32 1.0, %v5568_v29 }
 0x4fa   :  { %v2999_v49 = vsel %vm2998_vm4, %v5564_v54, %v2995_v7 }
 0x4fb   :  { %v5570_v26 = vpop.eup %5569  ;;  %5573 = vrcp.f32 %v2990_v48  ;;  %v3004_v35 = vsel %vm3001_vm5, %v3003_v43, %v2999_v49  ;;  %v3032_v4 = vand.u32 2147483648, %v2990_v48  ;;  %vm3026_vm11 = vweird.f32 %v2990_v48  ;;  %v7038_v49 = vld [vmem:[#allocation17_spill] sm:$0xff] }
 0x4fc   :  { %v3007_v12 = vmul.f32 %v5570_v26, %v2989_v14  ;;  %vm3012_vm6 = vweird.f32 %v5570_v26  ;;  %v3030_v14 = vand.u32 2147483647, %v2990_v48 }
 0x4fd   :  { %vm3013_vm8 = vmor %vm3011_vm7, %vm3012_vm6  ;;  %v3033_v34 = vor.u32 1.1754944e-38, %v3032_v4 }
 0x4fe   :  { %v5572_v57 = vpop.eup %5571  ;;  %v3008_v2 = vsub.f32 1.0, %v3007_v12  ;;  %vm3031_vm13 = vcmp.eq.f32.partialorder %v3030_v14, 8.507059e+37  ;;  %v7039_v12 = vld [vmem:[#allocation19_spill] sm:$0xff] }
 0x4ff   :  { %v3038_v59 = vmul.f32 %v5572_v57, %v3004_v35 }
 0x500   :  { %v3009_v3 = vmul.f32 %v5570_v26, %v3008_v2 }
 0x501   :  { %v5574_v20 = vpop.eup %5573 }
 0x502   :  { %v3022_v46 = vmul.f32 %v5574_v20, %v2990_v48  ;;  %v3010_v18 = vadd.f32 %v5570_v26, %v3009_v3  ;;  %vm3027_vm10 = vweird.f32 %v5574_v20 }
 0x503   :  { %vm3028_vm12 = vmor %vm3026_vm11, %vm3027_vm10 }
 0x504   :  { %v3023_v0 = vsub.f32 1.0, %v3022_v46  ;;  %v3014_v52 = vsel %vm3013_vm8, %v5570_v26, %v3010_v18 }
 0x505   :  { %v3019_v54 = vsel %vm3016_vm9, %v3018_v28, %v3014_v52 }
 0x506   :  { %v3024_v53 = vmul.f32 %v5574_v20, %v3023_v0  ;;  %v3037_v56 = vmul.f32 %v3019_v54, %v6449_v55 }
 0x508   :  { %v6559_v62 = vadd.f32 %v3038_v59, %v3037_v56  ;;  %v3025_v40 = vadd.f32 %v5574_v20, %v3024_v53 }
 0x50a   :  { %5575 = vtanh.f32 %v6559_v62  ;;  %v3029_v36 = vsel %vm3028_vm12, %v5574_v20, %v3025_v40 }
 0x50b   :  { %v3034_v29 = vsel %vm3031_vm13, %v3033_v34, %v3029_v36 }
 0x510   :  { %v5576_v58 = vpop.eup %5575 }
 0x511   :  { %v3041_v7 = vmul.f32 %v5576_v58, %v3034_v29 }
 0x513   :  { %v3063_v15 = vand.u32 4294901760, %v3041_v7 }
 0x515   :  { %3064 = vmatpush.msrb.mxu2 %v3063_v15  ;;  %3199 = vmatpush.msra.mxu1 %v3063_v15  ;;  %v3119_v55 = vsub.f32 %v3041_v7, %v3063_v15 }
 0x516   :  { %3070 = vmatmul.f32.vlgmr.msrb.gmra.mxu2 %v6080_v25  ;;  %3203 = vmatmul.f32.vlgmr.msra.gmra.mxu1 %v6066_v61 }
 0x517   :  { %3242 = vmatpush.msra.mxu2 %v3114_v39  ;;  %3160 = vmatpush.msra.mxu0 %v3119_v55  ;;  %v3120_v48 = vand.u32 4294901760, %v3119_v55  ;;  %v7037_v39 = vld [vmem:[#allocation18_spill] sm:$0xff] }
 0x518   :  { %3163 = vmatmul.f32.vlgmr.msra.gmra.mxu0 %v6060_v50 }
 0x519   :  { %3399 = vmatpush.msrb.mxu0 %v3063_v15  ;;  %3246 = vmatpush.msra.mxu2 %v3120_v48  ;;  %v3121_v41 = vsub.f32 %v3119_v55, %v3120_v48 }
 0x51b   :  { %3570 = vmatpush.msra.mxu0 %v3120_v48  ;;  %3488 = vmatpush.msrb.mxu2 %v3119_v55  ;;  %v3122_v26 = vand.u32 4294901760, %v3121_v41 }
 0x51d   :  { %3123 = vmatpush.msrb.mxu3 %v3122_v26  ;;  %3453 = vmatpush.msrb.mxu1 %v3122_v26 }
 0x51e   :  { %3078 = vmatmul.f32.gmra.mxu2 %v6096_v42  ;;  %3125 = vmatmul.f32.vlgmr.msrb.gmra.mxu3 %v6055_v44 }
 0x51f   :  { %3209 = vmatmul.f32.gmra.mxu1 %v6078_v33  ;;  %3279 = vmatpush.msra.mxu3 %v6544_v1  ;;  %v7035_v1 = vld [vmem:[#allocation16_spill] sm:$0xff] }
 0x520   :  { %3604 = vmatpush.msra.mxu1 %v3063_v15  ;;  %3168 = vmatmul.f32.gmra.mxu0 %v6072_v19 }
 0x521   :  { %3281 = vmatpush.msra.mxu3 %v3063_v15 }
 0x523   :  { %3526 = vmatpush.msrb.mxu3 %v3063_v15 }
 0x526   :  { %3086 = vmatmul.f32.gmra.mxu2 %v6112_v13  ;;  %3129 = vmatmul.f32.gmra.mxu3 %v6069_v32 }
 0x527   :  { %3215 = vmatmul.f32.gmra.mxu1 %v6094_v51 }
 0x528   :  { %3173 = vmatmul.f32.gmra.mxu0 %v6086_v60 }
 0x52e   :  { %3094 = vmatmul.f32.gmra.mxu2 %v6120_v21  ;;  %3133 = vmatmul.f32.gmra.mxu3 %v6082_v10 }
 0x52f   :  { %3221 = vmatmul.f32.gmra.mxu1 %v6110_v37 }
 0x530   :  { %3178 = vmatmul.f32.gmra.mxu0 %v6103_v47 }
 0x536   :  { %3137 = vmatmul.f32.gmra.mxu3 %v6098_v31  ;;  %3248 = vmatmul.f32.vlgmr.msra.gmra.mxu2 %v6055_v44 }
 0x537   :  { %3455 = vmatmul.f32.vlgmr.msrb.gmra.mxu1 %v5810_v5 }
 0x538   :  { %3405 = vmatmul.f32.vlgmr.msrb.gmra.mxu0 %v5840_v17 }
 0x53e   :  { %3252 = vmatmul.f32.gmra.mxu2 %v6069_v32  ;;  %3283 = vmatmul.f32.vlgmr.msra.gmra.mxu3 %v6055_v44 }
 0x53f   :  { %3459 = vmatmul.f32.gmra.mxu1 %v5812_v6 }
 0x540   :  { %3413 = vmatmul.f32.gmra.mxu0 %v5856_v22 }
 0x546   :  { %3256 = vmatmul.f32.gmra.mxu2 %v6082_v10  ;;  %3287 = vmatmul.f32.gmra.mxu3 %v6069_v32 }
 0x547   :  { %3463 = vmatmul.f32.gmra.mxu1 %v5837_v16 }
 0x548   :  { %3421 = vmatmul.f32.gmra.mxu0 %v5875_v27 }
 0x54e   :  { %3260 = vmatmul.f32.gmra.mxu2 %v6098_v31  ;;  %3291 = vmatmul.f32.gmra.mxu3 %v6082_v10 }
 0x54f   :  { %3467 = vmatmul.f32.gmra.mxu1 %v5861_v24 }
 0x550   :  { %3429 = vmatmul.f32.gmra.mxu0 %v5889_v30 }
 0x556   :  { %3295 = vmatmul.f32.gmra.mxu3 %v6098_v31  ;;  %3491 = vmatmul.f32.vlgmr.msrb.gmra.mxu2 %v5817_v8 }
 0x557   :  { %3606 = vmatmul.f32.vlgmr.msra.gmra.mxu1 %v5810_v5 }
 0x558   :  { %3572 = vmatmul.f32.vlgmr.msra.gmra.mxu0 %v5810_v5 }
 0x55e   :  { %3496 = vmatmul.f32.gmra.mxu2 %v6988_v23  ;;  %3530 = vmatmul.f32.vlgmr.msrb.gmra.mxu3 %v6989_v11 }
 0x55f   :  { %3610 = vmatmul.f32.gmra.mxu1 %v5812_v6 }
 0x560   :  { %3576 = vmatmul.f32.gmra.mxu0 %v5812_v6 }
 0x566   :  { %3501 = vmatmul.f32.gmra.mxu2 %v7035_v1  ;;  %3536 = vmatmul.f32.gmra.mxu3 %v7036_v9 }
 0x567   :  { %3614 = vmatmul.f32.gmra.mxu1 %v5837_v16 }
 0x568   :  { %3580 = vmatmul.f32.gmra.mxu0 %v5837_v16 }
 0x56e   :  { %3506 = vmatmul.f32.gmra.mxu2 %v7037_v39  ;;  %3542 = vmatmul.f32.gmra.mxu3 %v7038_v49 }
 0x56f   :  { %3618 = vmatmul.f32.gmra.mxu1 %v5861_v24 }
 0x570   :  { %3584 = vmatmul.f32.gmra.mxu0 %v5861_v24 }
 0x576   :  { %3548 = vmatmul.f32.gmra.mxu3 %v7039_v12  ;;  %v7040_v12 = vld [vmem:[#allocation44_spill] sm:$0xff] }
 0x593   :  { %v3204_v43 = vpop.f32.mrf.mxu1 }
 0x595   :  { %v3164_v57 = vpop.f32.mrf.mxu0 }
 0x599   :  { %v3071_v2 = vpop.f32.mrf.mxu2 }
 0x59c   :  { %v3210_v35 = vpop.f32.mrf.mxu1 }
 0x59d   :  { %v3169_v38 = vpop.f32.mrf.mxu0 }
 0x5a1   :  { %v3079_v59 = vpop.f32.mrf.mxu2  ;;  %v3126_v3 = vpop.f32.mrf.mxu3 }
 0x5a2   :  { %v3127_v56 = vadd.f32 %v3126_v3, %v3071_v2 }
 0x5a4   :  { %v3216_v63 = vpop.f32.mrf.mxu1  ;;  %v3165_v36 = vadd.f32 %v3164_v57, %v3127_v56 }
 0x5a5   :  { %v3174_v20 = vpop.f32.mrf.mxu0 }
 0x5a6   :  { %v3205_v29 = vadd.f32 %v3204_v43, %v3165_v36 }
 0x5a9   :  { %v3087_v46 = vpop.f32.mrf.mxu2  ;;  %v3130_v18 = vpop.f32.mrf.mxu3 }
 0x5aa   :  { %v3131_v58 = vadd.f32 %v3130_v18, %v3079_v59 }
 0x5ac   :  { %v3222_v0 = vpop.f32.mrf.mxu1  ;;  %v3170_v41 = vadd.f32 %v3169_v38, %v3131_v58 }
 0x5ad   :  { %v3179_v28 = vpop.f32.mrf.mxu0 }
 0x5ae   :  { %v3211_v9 = vadd.f32 %v3210_v35, %v3170_v41 }
 0x5b1   :  { %v3095_v52 = vpop.f32.mrf.mxu2  ;;  %v3134_v54 = vpop.f32.mrf.mxu3 }
 0x5b2   :  { %v3135_v39 = vadd.f32 %v3134_v54, %v3087_v46 }
 0x5b4   :  { %v3456_v40 = vpop.f32.mrf.mxu1  ;;  %v3175_v59 = vadd.f32 %v3174_v20, %v3135_v39  ;;  %v7042_v39 = vld [vmem:[#allocation46_spill] sm:$0xff] }
 0x5b5   :  { %v3406_v53 = vpop.f32.mrf.mxu0 }
 0x5b6   :  { %v3217_v58 = vadd.f32 %v3216_v63, %v3175_v59 }
 0x5b9   :  { %v3138_v4 = vpop.f32.mrf.mxu3  ;;  %v3249_v14 = vpop.f32.mrf.mxu2 }
 0x5ba   :  { %v3250_v7 = vadd.f32 %v3249_v14, %v3205_v29  ;;  %v7041_v14 = vld [vmem:[#allocation45_spill] sm:$0xff]  ;;  %v3139_v38 = vadd.f32 %v3138_v4, %v3095_v52 }
 0x5bc   :  { %v6615_v15 = vpop.f32.mrf.mxu1  ;;  %v3180_v54 = vadd.f32 %v3179_v28, %v3139_v38  ;;  %v7043_v28 = vld [vmem:[#allocation47_spill] sm:$0xff] }
 0x5bd   :  { %v6613_v34 = vpop.f32.mrf.mxu0 }
 0x5c1   :  { %v3253_v55 = vpop.f32.mrf.mxu2  ;;  %v3284_v48 = vpop.f32.mrf.mxu3 }
 0x5c2   :  { %v3285_v26 = vadd.f32 %v3284_v48, %v3250_v7  ;;  %v3254_v1 = vadd.f32 %v3253_v55, %v3211_v9 }
 0x5c4   :  { %v3299_v49 = vadd.f32 %v3285_v26, %v7040_v12  ;;  %v6620_v18 = vpop.f32.mrf.mxu1  ;;  %v3223_v26 = vadd.f32 %v3222_v0, %v3180_v54 }
 0x5c5   :  { %v6618_v3 = vpop.f32.mrf.mxu0 }
 0x5c6   :  { %v5381_v2 = vmul.f32 -1.442695, %v3299_v49 }
 0x5c8   :  { %5577 = vpow2.f32 %v5381_v2 }
 0x5c9   :  { %v3257_v57 = vpop.f32.mrf.mxu2  ;;  %v3288_v56 = vpop.f32.mrf.mxu3 }
 0x5ca   :  { %v3289_v43 = vadd.f32 %v3288_v56, %v3254_v1  ;;  %v3258_v46 = vadd.f32 %v3257_v57, %v3217_v58 }
 0x5cc   :  { %v3300_v36 = vadd.f32 %v3289_v43, %v7041_v14  ;;  %v6626_v20 = vpop.f32.mrf.mxu1 }
 0x5cd   :  { %v6623_v49 = vpop.f32.mrf.mxu0 }
 0x5ce   :  { %v5578_v29 = vpop.eup %5577  ;;  %v5382_v7 = vmul.f32 -1.442695, %v3300_v36 }
 0x5cf   :  { %v3312_v48 = vadd.f32 1.0, %v5578_v29 }
 0x5d0   :  { %5579 = vpow2.f32 %v5382_v7 }
 0x5d1   :  { %5581 = vrcp.f32 %v3312_v48  ;;  %v3261_v9 = vpop.f32.mrf.mxu2  ;;  %v3292_v35 = vpop.f32.mrf.mxu3  ;;  %vm3320_vm15 = vweird.f32 %v3312_v48 }
 0x5d2   :  { %v3293_v55 = vadd.f32 %v3292_v35, %v3258_v46  ;;  %v3262_v56 = vadd.f32 %v3261_v9, %v3223_v26  ;;  %v3457_v46 = vadd.f32 %v3456_v40, %v3406_v53 }
 0x5d4   :  { %v3301_v1 = vadd.f32 %v3293_v55, %v7042_v39  ;;  %v3607_v58 = vpop.f32.mrf.mxu1  ;;  %v7046_v39 = vld [vmem:[#allocation29_spill] sm:$0xff] }
 0x5d5   :  { %v3573_v29 = vpop.f32.mrf.mxu0 }
 0x5d6   :  { %v5580_v41 = vpop.eup %5579  ;;  %v5383_v2 = vmul.f32 -1.442695, %v3301_v1 }
 0x5d7   :  { %v5582_v52 = vpop.eup %5581  ;;  %v3313_v63 = vadd.f32 1.0, %v5580_v41 }
 0x5d8   :  { %v3316_v4 = vmul.f32 %v5582_v52, %v3312_v48  ;;  %5583 = vpow2.f32 %v5383_v2  ;;  %vm3321_vm14 = vweird.f32 %v5582_v52 }
 0x5d9   :  { %5585 = vrcp.f32 %v3313_v63  ;;  %v3296_v57 = vpop.f32.mrf.mxu3  ;;  %v3492_v59 = vpop.f32.mrf.mxu2  ;;  %v3339_v40 = vand.u32 2147483647, %v3313_v63  ;;  %vm6632_vm1 = vmor %vm3320_vm15, %vm3321_vm14  ;;  %vm3335_vm2 = vweird.f32 %v3313_v63 }
 0x5da   :  { %v3317_v43 = vsub.f32 1.0, %v3316_v4  ;;  %v3297_v36 = vadd.f32 %v3296_v57, %v3262_v56  ;;  %v3493_v1 = vadd.f32 %v3492_v59, %v3457_v46  ;;  %v3341_v56 = vand.u32 2147483648, %v3313_v63 }
 0x5db   :  { %v3324_v57 = vand.u32 2147483647, %v3312_v48  ;;  %vm3340_vm5 = vcmp.eq.f32.partialorder %v3339_v40, 8.507059e+37 }
 0x5dc   :  { %v3302_v38 = vadd.f32 %v3297_v36, %v7043_v28  ;;  %v3318_v35 = vmul.f32 %v5582_v52, %v3317_v43  ;;  %v3326_v36 = vand.u32 2147483648, %v3312_v48  ;;  %v3461_v48 = vadd.f32 %v6615_v15, %v6613_v34 }
 0x5dd   :  { %v3577_v59 = vpop.f32.mrf.mxu0  ;;  %vm3325_vm4 = vcmp.eq.f32.partialorder %v3324_v57, 8.507059e+37 }
 0x5de   :  { %v5584_v7 = vpop.eup %5583  ;;  %5587 = vtanh.f32 %v3302_v38  ;;  %v3319_v2 = vadd.f32 %v5582_v52, %v3318_v35 }
 0x5df   :  { %v5586_v55 = vpop.eup %5585  ;;  %v6629_v0 = vadd.f32 1.0, %v5584_v7 }
 0x5e0   :  { %v3331_v54 = vmul.f32 %v5586_v55, %v3313_v63  ;;  %vm3336_vm0 = vweird.f32 %v5586_v55  ;;  %v3323_v46 = vsel %vm6632_vm1, %v5582_v52, %v3319_v2 }
 0x5e1   :  { %5589 = vrcp.f32 %v6629_v0  ;;  %v3497_v9 = vpop.f32.mrf.mxu2  ;;  %v3531_v41 = vpop.f32.mrf.mxu3  ;;  %vm3337_vm3 = vmor %vm3335_vm2, %vm3336_vm0  ;;  %vm3350_vm7 = vweird.f32 %v6629_v0 }
 0x5e2   :  { %v3332_v26 = vsub.f32 1.0, %v3331_v54  ;;  %v3532_v4 = vadd.f32 %v3531_v41, %v3493_v1  ;;  %v3342_v41 = vor.u32 1.1754944e-38, %v3341_v56  ;;  %v3498_v52 = vadd.f32 %v3497_v9, %v3461_v48 }
 0x5e4   :  { %v3333_v53 = vmul.f32 %v5586_v55, %v3332_v26  ;;  %v3574_v43 = vadd.f32 %v3573_v29, %v3532_v4  ;;  %v5588_v38 = vpop.eup %5587  ;;  %v3327_v29 = vor.u32 1.1754944e-38, %v3326_v36  ;;  %v3611_v26 = vpop.f32.mrf.mxu1 }
 0x5e6   :  { %v3334_v35 = vadd.f32 %v5586_v55, %v3333_v53  ;;  %v3608_v54 = vadd.f32 %v3607_v58, %v3574_v43  ;;  %v3328_v14 = vsel %vm3325_vm4, %v3327_v29, %v3323_v46 }
 0x5e7   :  { %v5590_v1 = vpop.eup %5589  ;;  %v3362_v56 = vmul.f32 %v5588_v38, %v3328_v14  ;;  %v3354_v14 = vand.u32 2147483647, %v6629_v0  ;;  %v7047_v38 = vld [vmem:[#allocation30_spill] sm:$0xff] }
 0x5e8   :  { %v3346_v4 = vmul.f32 %v5590_v1, %v6629_v0  ;;  %v3338_v28 = vsel %vm3337_vm3, %v5586_v55, %v3334_v35  ;;  %v3622_v63 = vadd.f32 %v3608_v54, %v7046_v39  ;;  %vm3351_vm6 = vweird.f32 %v5590_v1 }
 0x5e9   :  { %v3343_v7 = vsel %vm3340_vm5, %v3342_v41, %v3338_v28  ;;  %v3537_v2 = vpop.f32.mrf.mxu3  ;;  %v3502_v12 = vpop.f32.mrf.mxu2  ;;  %v3465_v39 = vadd.f32 %v6620_v18, %v6618_v3  ;;  %v3356_v55 = vand.u32 2147483648, %v6629_v0  ;;  %vm3352_vm8 = vmor %vm3350_vm7, %vm3351_vm6  ;;  %vm3355_vm9 = vcmp.eq.f32.partialorder %v3354_v14, 8.507059e+37 }
 0x5ea   :  { %v3347_v58 = vsub.f32 1.0, %v3346_v4  ;;  %v3361_v53 = vmul.f32 %v3343_v7, %v6533_v45  ;;  %v5384_v43 = vmul.f32 -1.442695, %v3622_v63  ;;  %v3538_v34 = vadd.f32 %v3537_v2, %v3498_v52  ;;  %v3581_v45 = vpop.f32.mrf.mxu0 }
 0x5eb   :  { %v3503_v40 = vadd.f32 %v3502_v12, %v3465_v39  ;;  %v3357_v18 = vor.u32 1.1754944e-38, %v3356_v55  ;;  %v3469_v12 = vadd.f32 %v6626_v20, %v6623_v49 }
 0x5ec   :  { %v6643_v15 = vadd.f32 %v3362_v56, %v3361_v53  ;;  %5591 = vpow2.f32 %v5384_v43  ;;  %v3348_v57 = vmul.f32 %v5590_v1, %v3347_v58  ;;  %v3578_v36 = vadd.f32 %v3577_v59, %v3538_v34  ;;  %v3615_v35 = vpop.f32.mrf.mxu1  ;;  %v7048_v58 = vld [vmem:[#allocation41_spill] sm:$0xff] }
 0x5ee   :  { %5593 = vtanh.f32 %v6643_v15  ;;  %v3349_v28 = vadd.f32 %v5590_v1, %v3348_v57  ;;  %v3612_v9 = vadd.f32 %v3611_v26, %v3578_v36 }
 0x5f0   :  { %v3623_v46 = vadd.f32 %v3612_v9, %v7047_v38  ;;  %v3353_v54 = vsel %vm3352_vm8, %v5590_v1, %v3349_v28 }
 0x5f1   :  { %v3543_v59 = vpop.f32.mrf.mxu3  ;;  %v3358_v63 = vsel %vm3355_vm9, %v3357_v18, %v3353_v54  ;;  %v3507_v7 = vpop.f32.mrf.mxu2 }
 0x5f2   :  { %v5592_v41 = vpop.eup %5591  ;;  %v3544_v3 = vadd.f32 %v3543_v59, %v3503_v40  ;;  %v5385_v29 = vmul.f32 -1.442695, %v3623_v46  ;;  %v3508_v1 = vadd.f32 %v3507_v7, %v3469_v12  ;;  %v3585_v43 = vpop.f32.mrf.mxu0  ;;  %v7049_v46 = vld [vmem:[#allocation31_spill] sm:$0xff] }
 0x5f3   :  { %v3635_v48 = vadd.f32 1.0, %v5592_v41 }
 0x5f4   :  { %v5594_v4 = vpop.eup %5593  ;;  %v3582_v26 = vadd.f32 %v3581_v45, %v3544_v3  ;;  %v3619_v49 = vpop.f32.mrf.mxu1 }
 0x5f5   :  { %5595 = vrcp.f32 %v3635_v48  ;;  %v3365_v52 = vmul.f32 %v5594_v4, %v3358_v63  ;;  %v3649_v18 = vand.u32 2147483648, %v3635_v48  ;;  %vm3643_vm11 = vweird.f32 %v3635_v48 }
 0x5f6   :  { %5597 = vpow2.f32 %v5385_v29  ;;  %v3616_v0 = vadd.f32 %v3615_v35, %v3582_v26  ;;  %v3647_v4 = vand.u32 2147483647, %v3635_v48 }
 0x5f7   :  { %v6654_v2 = vand.u32 4294901760, %v3365_v52 }
 0x5f8   :  { %v3624_v53 = vadd.f32 %v3616_v0, %v7048_v58  ;;  %vm3648_vm13 = vcmp.eq.f32.partialorder %v3647_v4, 8.507059e+37 }
 0x5f9   :  { %v3549_v56 = vpop.f32.mrf.mxu3  ;;  %3709 = vmatpush.msra.mxu2 %v6654_v2  ;;  %3844 = vmatpush.msrb.mxu1 %v6654_v2  ;;  %v6660_v34 = vsub.f32 %v3365_v52, %v6654_v2  ;;  %v3650_v52 = vor.u32 1.1754944e-38, %v3649_v18 }
 0x5fa   :  { %v5386_v57 = vmul.f32 -1.442695, %v3624_v53  ;;  %v3550_v36 = vadd.f32 %v3549_v56, %v3508_v1 }
 0x5fb   :  { %v5596_v39 = vpop.eup %5595  ;;  %3804 = vmatpush.msrb.mxu0 %v6660_v34  ;;  %v3761_v20 = vand.u32 4294901760, %v6660_v34 }
 0x5fc   :  { %v5598_v28 = vpop.eup %5597  ;;  %v3639_v55 = vmul.f32 %v5596_v39, %v3635_v48  ;;  %5599 = vpow2.f32 %v5386_v57  ;;  %v3586_v9 = vadd.f32 %v3585_v43, %v3550_v36  ;;  %vm3644_vm10 = vweird.f32 %v5596_v39 }
 0x5fd   :  { %v3636_v45 = vadd.f32 1.0, %v5598_v28  ;;  %v3762_v14 = vsub.f32 %v6660_v34, %v3761_v20  ;;  %vm3645_vm12 = vmor %vm3643_vm11, %vm3644_vm10  ;;  %v7051_v34 = vld [vmem:[#allocation15_spill] sm:$0xff] }
 0x5fe   :  { %v3640_v40 = vsub.f32 1.0, %v3639_v55  ;;  %v3620_v38 = vadd.f32 %v3619_v49, %v3586_v9 }
 0x5ff   :  { %5601 = vrcp.f32 %v3636_v45  ;;  %v3763_v54 = vand.u32 4294901760, %v3762_v14  ;;  %v3664_v58 = vand.u32 2147483648, %v3636_v45  ;;  %v3662_v43 = vand.u32 2147483647, %v3636_v45 }
 0x600   :  { %v3625_v59 = vadd.f32 %v3620_v38, %v7049_v46  ;;  %v3641_v35 = vmul.f32 %v5596_v39, %v3640_v40  ;;  %vm3658_vm15 = vweird.f32 %v3636_v45 }
 0x601   :  { %3764 = vmatpush.msra.mxu3 %v3763_v54  ;;  %v3665_v48 = vor.u32 1.1754944e-38, %v3664_v58  ;;  %vm3663_vm1 = vcmp.eq.f32.partialorder %v3662_v43, 8.507059e+37 }
 0x602   :  { %v5600_v41 = vpop.eup %5599  ;;  %v3642_v3 = vadd.f32 %v5596_v39, %v3641_v35  ;;  %5603 = vtanh.f32 %v3625_v59 }
 0x603   :  { %v3637_v29 = vadd.f32 1.0, %v5600_v41 }
 0x604   :  { %v3646_v63 = vsel %vm3645_vm12, %v5596_v39, %v3642_v3 }
 0x605   :  { %v5602_v26 = vpop.eup %5601  ;;  %5605 = vrcp.f32 %v3637_v29  ;;  %v3651_v1 = vsel %vm3648_vm13, %v3650_v52, %v3646_v63  ;;  %v3679_v46 = vand.u32 2147483648, %v3637_v29  ;;  %vm3673_vm3 = vweird.f32 %v3637_v29  ;;  %v7053_v63 = vld [vmem:[#allocation17_spill] sm:$0xff] }
 0x606   :  { %v3654_v7 = vmul.f32 %v5602_v26, %v3636_v45  ;;  %vm3659_vm14 = vweird.f32 %v5602_v26  ;;  %v3677_v45 = vand.u32 2147483647, %v3637_v29 }
 0x607   :  { %vm3660_vm0 = vmor %vm3658_vm15, %vm3659_vm14  ;;  %v3680_v35 = vor.u32 1.1754944e-38, %v3679_v46 }
 0x608   :  { %v5604_v12 = vpop.eup %5603  ;;  %v3655_v0 = vsub.f32 1.0, %v3654_v7  ;;  %vm3678_vm5 = vcmp.eq.f32.partialorder %v3677_v45, 8.507059e+37  ;;  %v7054_v7 = vld [vmem:[#allocation19_spill] sm:$0xff] }
 0x609   :  { %v3685_v53 = vmul.f32 %v5604_v12, %v3651_v1 }
 0x60a   :  { %v3656_v56 = vmul.f32 %v5602_v26, %v3655_v0 }
 0x60b   :  { %v5606_v57 = vpop.eup %5605 }
 0x60c   :  { %v3669_v36 = vmul.f32 %v5606_v57, %v3637_v29  ;;  %v3657_v49 = vadd.f32 %v5602_v26, %v3656_v56  ;;  %vm3674_vm2 = vweird.f32 %v5606_v57 }
 0x60d   :  { %vm3675_vm4 = vmor %vm3673_vm3, %vm3674_vm2 }
 0x60e   :  { %v3670_v28 = vsub.f32 1.0, %v3669_v36  ;;  %v3661_v55 = vsel %vm3660_vm0, %v5602_v26, %v3657_v49 }
 0x60f   :  { %v3666_v39 = vsel %vm3663_vm1, %v3665_v48, %v3661_v55 }
 0x610   :  { %v3671_v9 = vmul.f32 %v5606_v57, %v3670_v28  ;;  %v3684_v14 = vmul.f32 %v3666_v39, %v6559_v62 }
 0x612   :  { %v6669_v40 = vadd.f32 %v3685_v53, %v3684_v14  ;;  %v3672_v38 = vadd.f32 %v5606_v57, %v3671_v9 }
 0x614   :  { %5607 = vtanh.f32 %v6669_v40  ;;  %v3676_v59 = vsel %vm3675_vm4, %v5606_v57, %v3672_v38 }
 0x615   :  { %v3681_v41 = vsel %vm3678_vm5, %v3680_v35, %v3676_v59 }
 0x61a   :  { %v5608_v54 = vpop.eup %5607 }
 0x61b   :  { %v3688_v3 = vmul.f32 %v5608_v54, %v3681_v41 }
 0x61d   :  { %v3710_v18 = vand.u32 4294901760, %v3688_v3 }
 0x61f   :  { %3711 = vmatpush.msra.mxu2 %v3710_v18  ;;  %3846 = vmatpush.msrb.mxu1 %v3710_v18  ;;  %v3766_v62 = vsub.f32 %v3688_v3, %v3710_v18 }
 0x620   :  { %3717 = vmatmul.f32.vlgmr.msra.gmra.mxu2 %v6080_v25  ;;  %3850 = vmatmul.f32.vlgmr.msrb.gmra.mxu1 %v6066_v61 }
 0x621   :  { %3889 = vmatpush.msrb.mxu2 %v3761_v20  ;;  %3807 = vmatpush.msrb.mxu0 %v3766_v62  ;;  %v3767_v29 = vand.u32 4294901760, %v3766_v62  ;;  %v7052_v20 = vld [vmem:[#allocation18_spill] sm:$0xff] }
 0x622   :  { %3810 = vmatmul.f32.vlgmr.msrb.gmra.mxu0 %v6060_v50 }
 0x623   :  { %4046 = vmatpush.msra.mxu0 %v3710_v18  ;;  %3893 = vmatpush.msrb.mxu2 %v3767_v29  ;;  %v3768_v4 = vsub.f32 %v3766_v62, %v3767_v29 }
 0x625   :  { %4217 = vmatpush.msrb.mxu0 %v3767_v29  ;;  %4135 = vmatpush.msra.mxu2 %v3766_v62  ;;  %v3769_v26 = vand.u32 4294901760, %v3768_v4 }
 0x627   :  { %3770 = vmatpush.msra.mxu3 %v3769_v26  ;;  %4100 = vmatpush.msra.mxu1 %v3769_v26 }
 0x628   :  { %3725 = vmatmul.f32.gmra.mxu2 %v6096_v42  ;;  %3772 = vmatmul.f32.vlgmr.msra.gmra.mxu3 %v6055_v44 }
 0x629   :  { %3856 = vmatmul.f32.gmra.mxu1 %v6078_v33  ;;  %3926 = vmatpush.msrb.mxu3 %v6654_v2  ;;  %v7050_v2 = vld [vmem:[#allocation16_spill] sm:$0xff] }
 0x62a   :  { %4251 = vmatpush.msrb.mxu1 %v3710_v18  ;;  %3815 = vmatmul.f32.gmra.mxu0 %v6072_v19 }
 0x62b   :  { %3928 = vmatpush.msrb.mxu3 %v3710_v18 }
 0x62d   :  { %4173 = vmatpush.msra.mxu3 %v3710_v18 }
 0x630   :  { %3733 = vmatmul.f32.gmra.mxu2 %v6112_v13  ;;  %3776 = vmatmul.f32.gmra.mxu3 %v6069_v32 }
 0x631   :  { %3862 = vmatmul.f32.gmra.mxu1 %v6094_v51 }
 0x632   :  { %3820 = vmatmul.f32.gmra.mxu0 %v6086_v60 }
 0x638   :  { %3741 = vmatmul.f32.gmra.mxu2 %v6120_v21  ;;  %3780 = vmatmul.f32.gmra.mxu3 %v6082_v10 }
 0x639   :  { %3868 = vmatmul.f32.gmra.mxu1 %v6110_v37 }
 0x63a   :  { %3825 = vmatmul.f32.gmra.mxu0 %v6103_v47 }
 0x640   :  { %3784 = vmatmul.f32.gmra.mxu3 %v6098_v31  ;;  %3895 = vmatmul.f32.vlgmr.msrb.gmra.mxu2 %v6055_v44 }
 0x641   :  { %4102 = vmatmul.f32.vlgmr.msra.gmra.mxu1 %v5810_v5 }
 0x642   :  { %4052 = vmatmul.f32.vlgmr.msra.gmra.mxu0 %v5840_v17 }
 0x648   :  { %3899 = vmatmul.f32.gmra.mxu2 %v6069_v32  ;;  %3930 = vmatmul.f32.vlgmr.msrb.gmra.mxu3 %v6055_v44 }
 0x649   :  { %4106 = vmatmul.f32.gmra.mxu1 %v5812_v6 }
 0x64a   :  { %4060 = vmatmul.f32.gmra.mxu0 %v5856_v22 }
 0x650   :  { %3903 = vmatmul.f32.gmra.mxu2 %v6082_v10  ;;  %3934 = vmatmul.f32.gmra.mxu3 %v6069_v32 }
 0x651   :  { %4110 = vmatmul.f32.gmra.mxu1 %v5837_v16 }
 0x652   :  { %4068 = vmatmul.f32.gmra.mxu0 %v5875_v27 }
 0x658   :  { %3907 = vmatmul.f32.gmra.mxu2 %v6098_v31  ;;  %3938 = vmatmul.f32.gmra.mxu3 %v6082_v10 }
 0x659   :  { %4114 = vmatmul.f32.gmra.mxu1 %v5861_v24 }
 0x65a   :  { %4076 = vmatmul.f32.gmra.mxu0 %v5889_v30 }
 0x660   :  { %3942 = vmatmul.f32.gmra.mxu3 %v6098_v31  ;;  %4138 = vmatmul.f32.vlgmr.msra.gmra.mxu2 %v5817_v8 }
 0x661   :  { %4253 = vmatmul.f32.vlgmr.msrb.gmra.mxu1 %v5810_v5 }
 0x662   :  { %4219 = vmatmul.f32.vlgmr.msrb.gmra.mxu0 %v5810_v5 }
 0x668   :  { %4143 = vmatmul.f32.gmra.mxu2 %v6988_v23  ;;  %4177 = vmatmul.f32.vlgmr.msra.gmra.mxu3 %v6989_v11 }
 0x669   :  { %4257 = vmatmul.f32.gmra.mxu1 %v5812_v6 }
 0x66a   :  { %4223 = vmatmul.f32.gmra.mxu0 %v5812_v6 }
 0x670   :  { %4148 = vmatmul.f32.gmra.mxu2 %v7050_v2  ;;  %4183 = vmatmul.f32.gmra.mxu3 %v7051_v34 }
 0x671   :  { %4261 = vmatmul.f32.gmra.mxu1 %v5837_v16 }
 0x672   :  { %4227 = vmatmul.f32.gmra.mxu0 %v5837_v16 }
 0x678   :  { %4153 = vmatmul.f32.gmra.mxu2 %v7052_v20  ;;  %4189 = vmatmul.f32.gmra.mxu3 %v7053_v63 }
 0x679   :  { %4265 = vmatmul.f32.gmra.mxu1 %v5861_v24 }
 0x67a   :  { %4231 = vmatmul.f32.gmra.mxu0 %v5861_v24 }
 0x680   :  { %4195 = vmatmul.f32.gmra.mxu3 %v7054_v7  ;;  %v7055_v7 = vld [vmem:[#allocation44_spill] sm:$0xff] }
 0x69d   :  { %v3851_v52 = vpop.f32.mrf.mxu1 }
 0x69f   :  { %v3811_v12 = vpop.f32.mrf.mxu0 }
 0x6a3   :  { %v3718_v0 = vpop.f32.mrf.mxu2 }
 0x6a6   :  { %v3857_v1 = vpop.f32.mrf.mxu1 }
 0x6a7   :  { %v3816_v58 = vpop.f32.mrf.mxu0 }
 0x6ab   :  { %v3726_v53 = vpop.f32.mrf.mxu2  ;;  %v3773_v56 = vpop.f32.mrf.mxu3 }
 0x6ac   :  { %v3774_v14 = vadd.f32 %v3773_v56, %v3718_v0 }
 0x6ae   :  { %v3863_v43 = vpop.f32.mrf.mxu1  ;;  %v3812_v59 = vadd.f32 %v3811_v12, %v3774_v14 }
 0x6af   :  { %v3821_v57 = vpop.f32.mrf.mxu0 }
 0x6b0   :  { %v3852_v41 = vadd.f32 %v3851_v52, %v3812_v59 }
 0x6b3   :  { %v3734_v36 = vpop.f32.mrf.mxu2  ;;  %v3777_v49 = vpop.f32.mrf.mxu3 }
 0x6b4   :  { %v3778_v54 = vadd.f32 %v3777_v49, %v3726_v53 }
 0x6b6   :  { %v3869_v28 = vpop.f32.mrf.mxu1  ;;  %v3817_v4 = vadd.f32 %v3816_v58, %v3778_v54 }
 0x6b7   :  { %v3826_v48 = vpop.f32.mrf.mxu0 }
 0x6b8   :  { %v3858_v34 = vadd.f32 %v3857_v1, %v3817_v4 }
 0x6bb   :  { %v3742_v55 = vpop.f32.mrf.mxu2  ;;  %v3781_v39 = vpop.f32.mrf.mxu3 }
 0x6bc   :  { %v3782_v20 = vadd.f32 %v3781_v39, %v3734_v36 }
 0x6be   :  { %v4103_v38 = vpop.f32.mrf.mxu1  ;;  %v3822_v53 = vadd.f32 %v3821_v57, %v3782_v20  ;;  %v7057_v20 = vld [vmem:[#allocation46_spill] sm:$0xff] }
 0x6bf   :  { %v4053_v9 = vpop.f32.mrf.mxu0 }
 0x6c0   :  { %v3864_v54 = vadd.f32 %v3863_v43, %v3822_v53 }
 0x6c3   :  { %v3785_v46 = vpop.f32.mrf.mxu3  ;;  %v3896_v45 = vpop.f32.mrf.mxu2 }
 0x6c4   :  { %v3897_v3 = vadd.f32 %v3896_v45, %v3852_v41  ;;  %v7056_v45 = vld [vmem:[#allocation45_spill] sm:$0xff]  ;;  %v3786_v58 = vadd.f32 %v3785_v46, %v3742_v55 }
 0x6c6   :  { %v6725_v18 = vpop.f32.mrf.mxu1  ;;  %v3827_v39 = vadd.f32 %v3826_v48, %v3786_v58  ;;  %v7058_v48 = vld [vmem:[#allocation47_spill] sm:$0xff] }
 0x6c7   :  { %v6723_v35 = vpop.f32.mrf.mxu0 }
 0x6cb   :  { %v3900_v62 = vpop.f32.mrf.mxu2  ;;  %v3931_v29 = vpop.f32.mrf.mxu3 }
 0x6cc   :  { %v3932_v26 = vadd.f32 %v3931_v29, %v3897_v3  ;;  %v3901_v2 = vadd.f32 %v3900_v62, %v3858_v34 }
 0x6ce   :  { %v3946_v63 = vadd.f32 %v3932_v26, %v7055_v7  ;;  %v6730_v49 = vpop.f32.mrf.mxu1  ;;  %v3870_v26 = vadd.f32 %v3869_v28, %v3827_v39 }
 0x6cf   :  { %v6728_v56 = vpop.f32.mrf.mxu0 }
 0x6d0   :  { %v5387_v0 = vmul.f32 -1.442695, %v3946_v63 }
 0x6d2   :  { %5609 = vpow2.f32 %v5387_v0 }
 0x6d3   :  { %v3904_v12 = vpop.f32.mrf.mxu2  ;;  %v3935_v14 = vpop.f32.mrf.mxu3 }
 0x6d4   :  { %v3936_v52 = vadd.f32 %v3935_v14, %v3901_v2  ;;  %v3905_v36 = vadd.f32 %v3904_v12, %v3864_v54 }
 0x6d6   :  { %v3947_v59 = vadd.f32 %v3936_v52, %v7056_v45  ;;  %v6736_v57 = vpop.f32.mrf.mxu1 }
 0x6d7   :  { %v6733_v63 = vpop.f32.mrf.mxu0 }
 0x6d8   :  { %v5610_v41 = vpop.eup %5609  ;;  %v5388_v3 = vmul.f32 -1.442695, %v3947_v59 }
 0x6d9   :  { %v3959_v29 = vadd.f32 1.0, %v5610_v41 }
 0x6da   :  { %5611 = vpow2.f32 %v5388_v3 }
 0x6db   :  { %5613 = vrcp.f32 %v3959_v29  ;;  %v3908_v34 = vpop.f32.mrf.mxu2  ;;  %v3939_v1 = vpop.f32.mrf.mxu3  ;;  %vm3967_vm7 = vweird.f32 %v3959_v29 }
 0x6dc   :  { %v3940_v62 = vadd.f32 %v3939_v1, %v3905_v36  ;;  %v3909_v14 = vadd.f32 %v3908_v34, %v3870_v26  ;;  %v4104_v36 = vadd.f32 %v4103_v38, %v4053_v9 }
 0x6de   :  { %v3948_v2 = vadd.f32 %v3940_v62, %v7057_v20  ;;  %v4254_v54 = vpop.f32.mrf.mxu1  ;;  %v7061_v20 = vld [vmem:[#allocation32_spill] sm:$0xff] }
 0x6df   :  { %v4220_v41 = vpop.f32.mrf.mxu0 }
 0x6e0   :  { %v5612_v4 = vpop.eup %5611  ;;  %v5389_v0 = vmul.f32 -1.442695, %v3948_v2 }
 0x6e1   :  { %v5614_v55 = vpop.eup %5613  ;;  %v3960_v43 = vadd.f32 1.0, %v5612_v4 }
 0x6e2   :  { %v3963_v46 = vmul.f32 %v5614_v55, %v3959_v29  ;;  %5615 = vpow2.f32 %v5389_v0  ;;  %vm3968_vm6 = vweird.f32 %v5614_v55 }
 0x6e3   :  { %5617 = vrcp.f32 %v3960_v43  ;;  %v3943_v12 = vpop.f32.mrf.mxu3  ;;  %v4139_v53 = vpop.f32.mrf.mxu2  ;;  %v3986_v38 = vand.u32 2147483647, %v3960_v43  ;;  %vm6742_vm9 = vmor %vm3967_vm7, %vm3968_vm6  ;;  %vm3982_vm10 = vweird.f32 %v3960_v43 }
 0x6e4   :  { %v3964_v52 = vsub.f32 1.0, %v3963_v46  ;;  %v3944_v59 = vadd.f32 %v3943_v12, %v3909_v14  ;;  %v4140_v2 = vadd.f32 %v4139_v53, %v4104_v36  ;;  %v3988_v14 = vand.u32 2147483648, %v3960_v43 }
 0x6e5   :  { %v3971_v12 = vand.u32 2147483647, %v3959_v29  ;;  %vm3987_vm13 = vcmp.eq.f32.partialorder %v3986_v38, 8.507059e+37 }
 0x6e6   :  { %v3949_v58 = vadd.f32 %v3944_v59, %v7058_v48  ;;  %v3965_v1 = vmul.f32 %v5614_v55, %v3964_v52  ;;  %v3973_v59 = vand.u32 2147483648, %v3959_v29  ;;  %v4108_v29 = vadd.f32 %v6725_v18, %v6723_v35 }
 0x6e7   :  { %v4224_v53 = vpop.f32.mrf.mxu0  ;;  %vm3972_vm12 = vcmp.eq.f32.partialorder %v3971_v12, 8.507059e+37 }
 0x6e8   :  { %v5616_v3 = vpop.eup %5615  ;;  %5619 = vtanh.f32 %v3949_v58  ;;  %v3966_v0 = vadd.f32 %v5614_v55, %v3965_v1 }
 0x6e9   :  { %v5618_v62 = vpop.eup %5617  ;;  %v6739_v28 = vadd.f32 1.0, %v5616_v3 }
 0x6ea   :  { %v3978_v39 = vmul.f32 %v5618_v62, %v3960_v43  ;;  %vm3983_vm8 = vweird.f32 %v5618_v62  ;;  %v3970_v36 = vsel %vm6742_vm9, %v5614_v55, %v3966_v0 }
 0x6eb   :  { %5621 = vrcp.f32 %v6739_v28  ;;  %v4144_v34 = vpop.f32.mrf.mxu2  ;;  %v4178_v4 = vpop.f32.mrf.mxu3  ;;  %vm3984_vm11 = vmor %vm3982_vm10, %vm3983_vm8  ;;  %vm3997_vm15 = vweird.f32 %v6739_v28 }
 0x6ec   :  { %v3979_v26 = vsub.f32 1.0, %v3978_v39  ;;  %v4179_v46 = vadd.f32 %v4178_v4, %v4140_v2  ;;  %v3989_v4 = vor.u32 1.1754944e-38, %v3988_v14  ;;  %v4145_v55 = vadd.f32 %v4144_v34, %v4108_v29 }
 0x6ee   :  { %v3980_v9 = vmul.f32 %v5618_v62, %v3979_v26  ;;  %v4221_v52 = vadd.f32 %v4220_v41, %v4179_v46  ;;  %v5620_v58 = vpop.eup %5619  ;;  %v3974_v41 = vor.u32 1.1754944e-38, %v3973_v59  ;;  %v4258_v26 = vpop.f32.mrf.mxu1 }
 0x6f0   :  { %v3981_v1 = vadd.f32 %v5618_v62, %v3980_v9  ;;  %v4255_v39 = vadd.f32 %v4254_v54, %v4221_v52  ;;  %v3975_v45 = vsel %vm3972_vm12, %v3974_v41, %v3970_v36 }
 0x6f1   :  { %v5622_v2 = vpop.eup %5621  ;;  %v4009_v14 = vmul.f32 %v5620_v58, %v3975_v45  ;;  %v4001_v45 = vand.u32 2147483647, %v6739_v28  ;;  %v7062_v58 = vld [vmem:[#allocation33_spill] sm:$0xff] }
 0x6f2   :  { %v3993_v46 = vmul.f32 %v5622_v2, %v6739_v28  ;;  %v3985_v48 = vsel %vm3984_vm11, %v5618_v62, %v3981_v1  ;;  %v4269_v43 = vadd.f32 %v4255_v39, %v7061_v20  ;;  %vm3998_vm14 = vweird.f32 %v5622_v2 }
 0x6f3   :  { %v3990_v3 = vsel %vm3987_vm13, %v3989_v4, %v3985_v48  ;;  %v4184_v0 = vpop.f32.mrf.mxu3  ;;  %v4149_v7 = vpop.f32.mrf.mxu2  ;;  %v4112_v20 = vadd.f32 %v6730_v49, %v6728_v56  ;;  %v4003_v62 = vand.u32 2147483648, %v6739_v28  ;;  %vm3999_vm0 = vmor %vm3997_vm15, %vm3998_vm14  ;;  %vm4002_vm1 = vcmp.eq.f32.partialorder %v4001_v45, 8.507059e+37 }
 0x6f4   :  { %v3994_v54 = vsub.f32 1.0, %v3993_v46  ;;  %v4008_v9 = vmul.f32 %v3990_v3, %v6643_v15  ;;  %v5390_v52 = vmul.f32 -1.442695, %v4269_v43  ;;  %v4185_v35 = vadd.f32 %v4184_v0, %v4145_v55  ;;  %v4228_v15 = vpop.f32.mrf.mxu0 }
 0x6f5   :  { %v4150_v38 = vadd.f32 %v4149_v7, %v4112_v20  ;;  %v4004_v49 = vor.u32 1.1754944e-38, %v4003_v62  ;;  %v4116_v7 = vadd.f32 %v6736_v57, %v6733_v63 }
 0x6f6   :  { %v6753_v18 = vadd.f32 %v4009_v14, %v4008_v9  ;;  %5623 = vpow2.f32 %v5390_v52  ;;  %v3995_v12 = vmul.f32 %v5622_v2, %v3994_v54  ;;  %v4225_v59 = vadd.f32 %v4224_v53, %v4185_v35  ;;  %v4262_v1 = vpop.f32.mrf.mxu1  ;;  %v7063_v54 = vld [vmem:[#allocation42_spill] sm:$0xff] }
 0x6f8   :  { %5625 = vtanh.f32 %v6753_v18  ;;  %v3996_v48 = vadd.f32 %v5622_v2, %v3995_v12  ;;  %v4259_v34 = vadd.f32 %v4258_v26, %v4225_v59 }
 0x6fa   :  { %v4270_v36 = vadd.f32 %v4259_v34, %v7062_v58  ;;  %v4000_v39 = vsel %vm3999_vm0, %v5622_v2, %v3996_v48 }
 0x6fb   :  { %v4190_v53 = vpop.f32.mrf.mxu3  ;;  %v4005_v43 = vsel %vm4002_vm1, %v4004_v49, %v4000_v39  ;;  %v4154_v3 = vpop.f32.mrf.mxu2 }
 0x6fc   :  { %v5624_v4 = vpop.eup %5623  ;;  %v4191_v56 = vadd.f32 %v4190_v53, %v4150_v38  ;;  %v5391_v41 = vmul.f32 -1.442695, %v4270_v36  ;;  %v4155_v2 = vadd.f32 %v4154_v3, %v4116_v7  ;;  %v4232_v52 = vpop.f32.mrf.mxu0  ;;  %v7064_v36 = vld [vmem:[#allocation34_spill] sm:$0xff] }
 0x6fd   :  { %v4282_v29 = vadd.f32 1.0, %v5624_v4 }
 0x6fe   :  { %v5626_v46 = vpop.eup %5625  ;;  %v4229_v26 = vadd.f32 %v4228_v15, %v4191_v56  ;;  %v4266_v63 = vpop.f32.mrf.mxu1 }
 0x6ff   :  { %5627 = vrcp.f32 %v4282_v29  ;;  %v4012_v55 = vmul.f32 %v5626_v46, %v4005_v43  ;;  %v4296_v49 = vand.u32 2147483648, %v4282_v29  ;;  %vm4290_vm3 = vweird.f32 %v4282_v29 }
 0x700   :  { %5629 = vpow2.f32 %v5391_v41  ;;  %v4263_v28 = vadd.f32 %v4262_v1, %v4229_v26  ;;  %v4294_v46 = vand.u32 2147483647, %v4282_v29 }
 0x701   :  { %v6764_v0 = vand.u32 4294901760, %v4012_v55 }
 0x702   :  { %v4271_v9 = vadd.f32 %v4263_v28, %v7063_v54  ;;  %vm4295_vm5 = vcmp.eq.f32.partialorder %v4294_v46, 8.507059e+37 }
 0x703   :  { %v4196_v14 = vpop.f32.mrf.mxu3  ;;  %4356 = vmatpush.msrb.mxu2 %v6764_v0  ;;  %4491 = vmatpush.msra.mxu1 %v6764_v0  ;;  %v6770_v35 = vsub.f32 %v4012_v55, %v6764_v0  ;;  %v4297_v55 = vor.u32 1.1754944e-38, %v4296_v49 }
 0x704   :  { %v5392_v12 = vmul.f32 -1.442695, %v4271_v9  ;;  %v4197_v59 = vadd.f32 %v4196_v14, %v4155_v2 }
 0x705   :  { %v5628_v20 = vpop.eup %5627  ;;  %4451 = vmatpush.msra.mxu0 %v6770_v35  ;;  %v4408_v57 = vand.u32 4294901760, %v6770_v35 }
 0x706   :  { %v5630_v48 = vpop.eup %5629  ;;  %v4286_v62 = vmul.f32 %v5628_v20, %v4282_v29  ;;  %5631 = vpow2.f32 %v5392_v12  ;;  %v4233_v34 = vadd.f32 %v4232_v52, %v4197_v59  ;;  %vm4291_vm2 = vweird.f32 %v5628_v20 }
 0x707   :  { %v4283_v15 = vadd.f32 1.0, %v5630_v48  ;;  %v4409_v45 = vsub.f32 %v6770_v35, %v4408_v57  ;;  %vm4292_vm4 = vmor %vm4290_vm3, %vm4291_vm2 }
 0x708   :  { %v4287_v38 = vsub.f32 1.0, %v4286_v62  ;;  %v4267_v58 = vadd.f32 %v4266_v63, %v4233_v34 }
 0x709   :  { %5633 = vrcp.f32 %v4283_v15  ;;  %v4410_v39 = vand.u32 4294901760, %v4409_v45  ;;  %v4311_v54 = vand.u32 2147483648, %v4283_v15  ;;  %v4309_v52 = vand.u32 2147483647, %v4283_v15 }
 0x70a   :  { %v4272_v53 = vadd.f32 %v4267_v58, %v7064_v36  ;;  %v4288_v1 = vmul.f32 %v5628_v20, %v4287_v38  ;;  %vm4305_vm7 = vweird.f32 %v4283_v15 }
 0x70b   :  { %4411 = vmatpush.msrb.mxu3 %v4410_v39  ;;  %v4312_v29 = vor.u32 1.1754944e-38, %v4311_v54  ;;  %vm4310_vm9 = vcmp.eq.f32.partialorder %v4309_v52, 8.507059e+37 }
 0x70c   :  { %v5632_v4 = vpop.eup %5631  ;;  %v4289_v56 = vadd.f32 %v5628_v20, %v4288_v1  ;;  %5635 = vtanh.f32 %v4272_v53 }
 0x70d   :  { %v4284_v41 = vadd.f32 1.0, %v5632_v4 }
 0x70e   :  { %v4293_v43 = vsel %vm4292_vm4, %v5628_v20, %v4289_v56 }
 0x70f   :  { %v5634_v26 = vpop.eup %5633  ;;  %5637 = vrcp.f32 %v4284_v41  ;;  %v4298_v2 = vsel %vm4295_vm5, %v4297_v55, %v4293_v43  ;;  %v4326_v36 = vand.u32 2147483648, %v4284_v41  ;;  %vm4320_vm11 = vweird.f32 %v4284_v41 }
 0x710   :  { %v4301_v3 = vmul.f32 %v5634_v26, %v4283_v15  ;;  %vm4306_vm6 = vweird.f32 %v5634_v26  ;;  %v4324_v15 = vand.u32 2147483647, %v4284_v41 }
 0x711   :  { %vm4307_vm8 = vmor %vm4305_vm7, %vm4306_vm6  ;;  %v4327_v1 = vor.u32 1.1754944e-38, %v4326_v36 }
 0x712   :  { %v5636_v7 = vpop.eup %5635  ;;  %v4302_v28 = vsub.f32 1.0, %v4301_v3  ;;  %vm4325_vm13 = vcmp.eq.f32.partialorder %v4324_v15, 8.507059e+37  ;;  %v7070_v15 = vld [vmem:[#allocation44_spill] sm:$0xff] }
 0x713   :  { %v4332_v9 = vmul.f32 %v5636_v7, %v4298_v2 }
 0x714   :  { %v4303_v14 = vmul.f32 %v5634_v26, %v4302_v28 }
 0x715   :  { %v5638_v12 = vpop.eup %5637 }
 0x716   :  { %v4316_v59 = vmul.f32 %v5638_v12, %v4284_v41  ;;  %v4304_v63 = vadd.f32 %v5634_v26, %v4303_v14  ;;  %vm4321_vm10 = vweird.f32 %v5638_v12 }
 0x717   :  { %vm4322_vm12 = vmor %vm4320_vm11, %vm4321_vm10 }
 0x718   :  { %v4317_v48 = vsub.f32 1.0, %v4316_v59  ;;  %v4308_v62 = vsel %vm4307_vm8, %v5634_v26, %v4304_v63 }
 0x719   :  { %v4313_v20 = vsel %vm4310_vm9, %v4312_v29, %v4308_v62 }
 0x71a   :  { %v4318_v34 = vmul.f32 %v5638_v12, %v4317_v48  ;;  %v4331_v45 = vmul.f32 %v4313_v20, %v6669_v40 }
 0x71c   :  { %v6779_v38 = vadd.f32 %v4332_v9, %v4331_v45  ;;  %v4319_v58 = vadd.f32 %v5638_v12, %v4318_v34 }
 0x71e   :  { %5639 = vtanh.f32 %v6779_v38  ;;  %v4323_v53 = vsel %vm4322_vm12, %v5638_v12, %v4319_v58 }
 0x71f   :  { %v4328_v4 = vsel %vm4325_vm13, %v4327_v1, %v4323_v53 }
 0x724   :  { %v5640_v39 = vpop.eup %5639 }
 0x725   :  { %v4335_v56 = vmul.f32 %v5640_v39, %v4328_v4 }
 0x727   :  { %v4357_v49 = vand.u32 4294901760, %v4335_v56 }
 0x729   :  { %4358 = vmatpush.msrb.mxu2 %v4357_v49  ;;  %4493 = vmatpush.msra.mxu1 %v4357_v49  ;;  %v4413_v40 = vsub.f32 %v4335_v56, %v4357_v49 }
 0x72a   :  { %4364 = vmatmul.f32.vlgmr.msrb.gmra.mxu2 %v6080_v25  ;;  %4497 = vmatmul.f32.vlgmr.msra.gmra.mxu1 %v6066_v61 }
 0x72b   :  { %4536 = vmatpush.msra.mxu2 %v4408_v57  ;;  %4454 = vmatpush.msra.mxu0 %v4413_v40  ;;  %v4414_v41 = vand.u32 4294901760, %v4413_v40 }
 0x72c   :  { %4457 = vmatmul.f32.vlgmr.msra.gmra.mxu0 %v6060_v50 }
 0x72d   :  { %4693 = vmatpush.msrb.mxu0 %v4357_v49  ;;  %4540 = vmatpush.msra.mxu2 %v4414_v41  ;;  %v4415_v46 = vsub.f32 %v4413_v40, %v4414_v41 }
 0x72f   :  { %4864 = vmatpush.msra.mxu0 %v4414_v41  ;;  %4782 = vmatpush.msrb.mxu2 %v4413_v40  ;;  %v4416_v26 = vand.u32 4294901760, %v4415_v46 }
 0x731   :  { %4417 = vmatpush.msrb.mxu3 %v4416_v26  ;;  %4747 = vmatpush.msrb.mxu1 %v4416_v26 }
 0x732   :  { %4372 = vmatmul.f32.gmra.mxu2 %v6096_v42  ;;  %4419 = vmatmul.f32.vlgmr.msrb.gmra.mxu3 %v6055_v44 }
 0x733   :  { %4503 = vmatmul.f32.gmra.mxu1 %v6078_v33  ;;  %4573 = vmatpush.msra.mxu3 %v6764_v0 }
 0x734   :  { %4898 = vmatpush.msra.mxu1 %v4357_v49  ;;  %4462 = vmatmul.f32.gmra.mxu0 %v6072_v19 }
 0x735   :  { %4575 = vmatpush.msra.mxu3 %v4357_v49 }
 0x737   :  { %4820 = vmatpush.msrb.mxu3 %v4357_v49 }
 0x73a   :  { %4380 = vmatmul.f32.gmra.mxu2 %v6112_v13  ;;  %4423 = vmatmul.f32.gmra.mxu3 %v6069_v32 }
 0x73b   :  { %4509 = vmatmul.f32.gmra.mxu1 %v6094_v51 }
 0x73c   :  { %4467 = vmatmul.f32.gmra.mxu0 %v6086_v60 }
 0x742   :  { %4388 = vmatmul.f32.gmra.mxu2 %v6120_v21  ;;  %4427 = vmatmul.f32.gmra.mxu3 %v6082_v10 }
 0x743   :  { %4515 = vmatmul.f32.gmra.mxu1 %v6110_v37 }
 0x744   :  { %4472 = vmatmul.f32.gmra.mxu0 %v6103_v47 }
 0x74a   :  { %4431 = vmatmul.f32.gmra.mxu3 %v6098_v31  ;;  %4542 = vmatmul.f32.vlgmr.msra.gmra.mxu2 %v6055_v44 }
 0x74b   :  { %4749 = vmatmul.f32.vlgmr.msrb.gmra.mxu1 %v5810_v5 }
 0x74c   :  { %4699 = vmatmul.f32.vlgmr.msrb.gmra.mxu0 %v5840_v17  ;;  %v7065_v17 = vld [vmem:[#allocation16_spill] sm:$0xff] }
 0x752   :  { %4546 = vmatmul.f32.gmra.mxu2 %v6069_v32  ;;  %4577 = vmatmul.f32.vlgmr.msra.gmra.mxu3 %v6055_v44 }
 0x753   :  { %4753 = vmatmul.f32.gmra.mxu1 %v5812_v6 }
 0x754   :  { %4707 = vmatmul.f32.gmra.mxu0 %v5856_v22  ;;  %v7066_v22 = vld [vmem:[#allocation15_spill] sm:$0xff] }
 0x75a   :  { %4550 = vmatmul.f32.gmra.mxu2 %v6082_v10  ;;  %4581 = vmatmul.f32.gmra.mxu3 %v6069_v32 }
 0x75b   :  { %4757 = vmatmul.f32.gmra.mxu1 %v5837_v16 }
 0x75c   :  { %4715 = vmatmul.f32.gmra.mxu0 %v5875_v27  ;;  %v7068_v27 = vld [vmem:[#allocation17_spill] sm:$0xff] }
 0x762   :  { %4554 = vmatmul.f32.gmra.mxu2 %v6098_v31  ;;  %4585 = vmatmul.f32.gmra.mxu3 %v6082_v10 }
 0x763   :  { %4761 = vmatmul.f32.gmra.mxu1 %v5861_v24 }
 0x764   :  { %4723 = vmatmul.f32.gmra.mxu0 %v5889_v30 }
 0x76a   :  { %4589 = vmatmul.f32.gmra.mxu3 %v6098_v31  ;;  %4785 = vmatmul.f32.vlgmr.msrb.gmra.mxu2 %v5817_v8  ;;  %v7067_v8 = vld [vmem:[#allocation18_spill] sm:$0xff] }
 0x76b   :  { %4900 = vmatmul.f32.vlgmr.msra.gmra.mxu1 %v5810_v5 }
 0x76c   :  { %4866 = vmatmul.f32.vlgmr.msra.gmra.mxu0 %v5810_v5  ;;  %v7069_v5 = vld [vmem:[#allocation19_spill] sm:$0xff] }
 0x772   :  { %4790 = vmatmul.f32.gmra.mxu2 %v6988_v23  ;;  %4824 = vmatmul.f32.vlgmr.msrb.gmra.mxu3 %v6989_v11 }
 0x773   :  { %4904 = vmatmul.f32.gmra.mxu1 %v5812_v6 }
 0x774   :  { %4870 = vmatmul.f32.gmra.mxu0 %v5812_v6 }
 0x77a   :  { %4795 = vmatmul.f32.gmra.mxu2 %v7065_v17  ;;  %4830 = vmatmul.f32.gmra.mxu3 %v7066_v22  ;;  %v7071_v22 = vld [vmem:[#allocation45_spill] sm:$0xff] }
 0x77b   :  { %4908 = vmatmul.f32.gmra.mxu1 %v5837_v16 }
 0x77c   :  { %4874 = vmatmul.f32.gmra.mxu0 %v5837_v16 }
 0x782   :  { %4800 = vmatmul.f32.gmra.mxu2 %v7067_v8  ;;  %4836 = vmatmul.f32.gmra.mxu3 %v7068_v27 }
 0x783   :  { %4912 = vmatmul.f32.gmra.mxu1 %v5861_v24 }
 0x784   :  { %4878 = vmatmul.f32.gmra.mxu0 %v5861_v24 }
 0x78a   :  { %4842 = vmatmul.f32.gmra.mxu3 %v7069_v5 }
 0x7a7   :  { %v4498_v30 = vpop.f32.mrf.mxu1 }
 0x7a9   :  { %v4458_v6 = vpop.f32.mrf.mxu0 }
 0x7ad   :  { %v4365_v23 = vpop.f32.mrf.mxu2 }
 0x7b0   :  { %v4504_v11 = vpop.f32.mrf.mxu1 }
 0x7b1   :  { %v4463_v0 = vpop.f32.mrf.mxu0 }
 0x7b5   :  { %v4373_v35 = vpop.f32.mrf.mxu2  ;;  %v4420_v57 = vpop.f32.mrf.mxu3 }
 0x7b6   :  { %v4421_v14 = vadd.f32 %v4420_v57, %v4365_v23 }
 0x7b8   :  { %v4510_v43 = vpop.f32.mrf.mxu1  ;;  %v4459_v59 = vadd.f32 %v4458_v6, %v4421_v14 }
 0x7b9   :  { %v4468_v3 = vpop.f32.mrf.mxu0 }
 0x7ba   :  { %v4499_v48 = vadd.f32 %v4498_v30, %v4459_v59 }
 0x7bd   :  { %v4381_v16 = vpop.f32.mrf.mxu2  ;;  %v4424_v55 = vpop.f32.mrf.mxu3 }
 0x7be   :  { %v4425_v29 = vadd.f32 %v4424_v55, %v4373_v35 }
 0x7c0   :  { %v4516_v28 = vpop.f32.mrf.mxu1  ;;  %v4464_v58 = vadd.f32 %v4463_v0, %v4425_v29 }
 0x7c1   :  { %v4473_v7 = vpop.f32.mrf.mxu0 }
 0x7c2   :  { %v4505_v39 = vadd.f32 %v4504_v11, %v4464_v58 }
 0x7c5   :  { %v4389_v2 = vpop.f32.mrf.mxu2  ;;  %v4428_v54 = vpop.f32.mrf.mxu3 }
 0x7c6   :  { %v4429_v1 = vadd.f32 %v4428_v54, %v4381_v16 }
 0x7c8   :  { %v4750_v24 = vpop.f32.mrf.mxu1  ;;  %v4469_v46 = vadd.f32 %v4468_v3, %v4429_v1  ;;  %v7072_v3 = vld [vmem:[#allocation46_spill] sm:$0xff] }
 0x7c9   :  { %v4700_v9 = vpop.f32.mrf.mxu0 }
 0x7ca   :  { %v4511_v30 = vadd.f32 %v4510_v43, %v4469_v46 }
 0x7cd   :  { %v4432_v52 = vpop.f32.mrf.mxu3  ;;  %v4543_v12 = vpop.f32.mrf.mxu2 }
 0x7ce   :  { %v4544_v62 = vadd.f32 %v4543_v12, %v4499_v48  ;;  %v4433_v5 = vadd.f32 %v4432_v52, %v4389_v2 }
 0x7d0   :  { %v6835_v20 = vpop.f32.mrf.mxu1  ;;  %v4474_v16 = vadd.f32 %v4473_v7, %v4433_v5  ;;  %v7073_v7 = vld [vmem:[#allocation47_spill] sm:$0xff] }
 0x7d1   :  { %v6833_v63 = vpop.f32.mrf.mxu0 }
 0x7d2   :  { %v4517_v59 = vadd.f32 %v4516_v28, %v4474_v16 }
 0x7d5   :  { %v4547_v34 = vpop.f32.mrf.mxu2  ;;  %v4578_v45 = vpop.f32.mrf.mxu3 }
 0x7d6   :  { %v4579_v36 = vadd.f32 %v4578_v45, %v4544_v62  ;;  %v4548_v49 = vadd.f32 %v4547_v34, %v4505_v39 }
 0x7d8   :  { %v4593_v53 = vadd.f32 %v4579_v36, %v7070_v15  ;;  %v6840_v17 = vpop.f32.mrf.mxu1 }
 0x7d9   :  { %v6838_v56 = vpop.f32.mrf.mxu0 }
 0x7da   :  { %v5393_v4 = vmul.f32 -1.442695, %v4593_v53 }
 0x7dc   :  { %5641 = vpow2.f32 %v5393_v4  ;;  %v4751_v4 = vadd.f32 %v4750_v24, %v4700_v9 }
 0x7dd   :  { %v4551_v40 = vpop.f32.mrf.mxu2  ;;  %v4582_v41 = vpop.f32.mrf.mxu3 }
 0x7de   :  { %v4583_v26 = vadd.f32 %v4582_v41, %v4548_v49  ;;  %v4552_v0 = vadd.f32 %v4551_v40, %v4511_v30 }
 0x7e0   :  { %v4594_v8 = vadd.f32 %v4583_v26, %v7071_v22  ;;  %v6846_v14 = vpop.f32.mrf.mxu1 }
 0x7e1   :  { %v6843_v11 = vpop.f32.mrf.mxu0 }
 0x7e2   :  { %v5642_v27 = vpop.eup %5641  ;;  %v5394_v6 = vmul.f32 -1.442695, %v4594_v8 }
 0x7e3   :  { %v4606_v23 = vadd.f32 1.0, %v5642_v27 }
 0x7e4   :  { %5643 = vpow2.f32 %v5394_v6 }
 0x7e5   :  { %5645 = vrcp.f32 %v4606_v23  ;;  %v4555_v35 = vpop.f32.mrf.mxu2  ;;  %v4586_v57 = vpop.f32.mrf.mxu3  ;;  %vm4614_vm15 = vweird.f32 %v4606_v23 }
 0x7e6   :  { %v4587_v55 = vadd.f32 %v4586_v57, %v4552_v0  ;;  %v4556_v48 = vadd.f32 %v4555_v35, %v4517_v59  ;;  %v4618_v0 = vand.u32 2147483647, %v4606_v23  ;;  %v4620_v35 = vand.u32 2147483648, %v4606_v23 }
 0x7e8   :  { %v4595_v54 = vadd.f32 %v4587_v55, %v7072_v3  ;;  %v4901_v1 = vpop.f32.mrf.mxu1  ;;  %vm4619_vm4 = vcmp.eq.f32.partialorder %v4618_v0, 8.507059e+37 }
 0x7e9   :  { %v4867_v36 = vpop.f32.mrf.mxu0 }
 0x7ea   :  { %v5644_v12 = vpop.eup %5643  ;;  %v5395_v29 = vmul.f32 -1.442695, %v4595_v54 }
 0x7eb   :  { %v5646_v2 = vpop.eup %5645  ;;  %v4607_v43 = vadd.f32 1.0, %v5644_v12 }
 0x7ec   :  { %v4610_v52 = vmul.f32 %v5646_v2, %v4606_v23  ;;  %5647 = vpow2.f32 %v5395_v29  ;;  %vm4615_vm14 = vweird.f32 %v5646_v2  ;;  %v4755_v23 = vadd.f32 %v6835_v20, %v6833_v63 }
 0x7ed   :  { %5649 = vrcp.f32 %v4607_v43  ;;  %v4590_v62 = vpop.f32.mrf.mxu3  ;;  %v4786_v34 = vpop.f32.mrf.mxu2  ;;  %v4635_v6 = vand.u32 2147483648, %v4607_v43  ;;  %v4633_v24 = vand.u32 2147483647, %v4607_v43  ;;  %vm6852_vm1 = vmor %vm4614_vm15, %vm4615_vm14  ;;  %vm4629_vm2 = vweird.f32 %v4607_v43 }
 0x7ee   :  { %v4611_v45 = vsub.f32 1.0, %v4610_v52  ;;  %v4591_v58 = vadd.f32 %v4590_v62, %v4556_v48  ;;  %v4787_v46 = vadd.f32 %v4786_v34, %v4751_v4  ;;  %v4621_v62 = vor.u32 1.1754944e-38, %v4620_v35 }
 0x7ef   :  { %v4636_v48 = vor.u32 1.1754944e-38, %v4635_v6  ;;  %vm4634_vm5 = vcmp.eq.f32.partialorder %v4633_v24, 8.507059e+37 }
 0x7f0   :  { %v4596_v53 = vadd.f32 %v4591_v58, %v7073_v7  ;;  %v4612_v49 = vmul.f32 %v5646_v2, %v4611_v45  ;;  %v4905_v34 = vpop.f32.mrf.mxu1 }
 0x7f1   :  { %v4871_v55 = vpop.f32.mrf.mxu0 }
 0x7f2   :  { %v5648_v39 = vpop.eup %5647  ;;  %5651 = vtanh.f32 %v4596_v53  ;;  %v4613_v5 = vadd.f32 %v5646_v2, %v4612_v49 }
 0x7f3   :  { %v5650_v40 = vpop.eup %5649  ;;  %v6849_v28 = vadd.f32 1.0, %v5648_v39 }
 0x7f4   :  { %v4625_v41 = vmul.f32 %v5650_v40, %v4607_v43  ;;  %vm4630_vm0 = vweird.f32 %v5650_v40  ;;  %v4617_v12 = vsel %vm6852_vm1, %v5646_v2, %v4613_v5 }
 0x7f5   :  { %5653 = vrcp.f32 %v6849_v28  ;;  %v4791_v26 = vpop.f32.mrf.mxu2  ;;  %v4825_v8 = vpop.f32.mrf.mxu3  ;;  %vm4631_vm3 = vmor %vm4629_vm2, %vm4630_vm0  ;;  %v4622_v53 = vsel %vm4619_vm4, %v4621_v62, %v4617_v12  ;;  %vm4644_vm7 = vweird.f32 %v6849_v28  ;;  %v4648_v0 = vand.u32 2147483647, %v6849_v28 }
 0x7f6   :  { %v4626_v27 = vsub.f32 1.0, %v4625_v41  ;;  %v4826_v30 = vadd.f32 %v4825_v8, %v4787_v46  ;;  %v4792_v2 = vadd.f32 %v4791_v26, %v4755_v23 }
 0x7f7   :  { %vm4649_vm9 = vcmp.eq.f32.partialorder %v4648_v0, 8.507059e+37 }
 0x7f8   :  { %v4627_v9 = vmul.f32 %v5650_v40, %v4626_v27  ;;  %v4868_v57 = vadd.f32 %v4867_v36, %v4826_v30  ;;  %v5652_v54 = vpop.eup %5651  ;;  %v7076_v36 = vld [vmem:[#allocation35_spill] sm:$0xff]  ;;  %v4650_v30 = vand.u32 2147483648, %v6849_v28  ;;  %v4909_v16 = vpop.f32.mrf.mxu1 }
 0x7f9   :  { %v4656_v41 = vmul.f32 %v5652_v54, %v4622_v53 }
 0x7fa   :  { %v4628_v59 = vadd.f32 %v5650_v40, %v4627_v9  ;;  %v4902_v29 = vadd.f32 %v4901_v1, %v4868_v57  ;;  %v7077_v9 = vld [vmem:[#allocation36_spill] sm:$0xff] }
 0x7fb   :  { %v5654_v52 = vpop.eup %5653 }
 0x7fc   :  { %v4640_v45 = vmul.f32 %v5654_v52, %v6849_v28  ;;  %v4632_v58 = vsel %vm4631_vm3, %v5650_v40, %v4628_v59  ;;  %v4916_v43 = vadd.f32 %v4902_v29, %v7076_v36  ;;  %vm4645_vm6 = vweird.f32 %v5654_v52  ;;  %v7078_v36 = vld [vmem:[#allocation43_spill] sm:$0xff] }
 0x7fd   :  { %v4637_v39 = vsel %vm4634_vm5, %v4636_v48, %v4632_v58  ;;  %v4831_v4 = vpop.f32.mrf.mxu3  ;;  %v4796_v8 = vpop.f32.mrf.mxu2  ;;  %v4759_v40 = vadd.f32 %v6840_v17, %v6838_v56  ;;  %vm4646_vm8 = vmor %vm4644_vm7, %vm4645_vm6  ;;  %v4651_v17 = vor.u32 1.1754944e-38, %v4650_v30  ;;  %v4763_v28 = vadd.f32 %v6846_v14, %v6843_v11 }
 0x7fe   :  { %v4641_v1 = vsub.f32 1.0, %v4640_v45  ;;  %v4655_v49 = vmul.f32 %v4637_v39, %v6753_v18  ;;  %v5396_v46 = vmul.f32 -1.442695, %v4916_v43  ;;  %v4832_v63 = vadd.f32 %v4831_v4, %v4792_v2  ;;  %v4875_v18 = vpop.f32.mrf.mxu0 }
 0x7ff   :  { %v4797_v35 = vadd.f32 %v4796_v8, %v4759_v40 }
 0x800   :  { %v6863_v20 = vadd.f32 %v4656_v41, %v4655_v49  ;;  %5655 = vpow2.f32 %v5396_v46  ;;  %v4642_v27 = vmul.f32 %v5654_v52, %v4641_v1  ;;  %v4872_v5 = vadd.f32 %v4871_v55, %v4832_v63  ;;  %v4913_v11 = vpop.f32.mrf.mxu1 }
 0x802   :  { %5657 = vtanh.f32 %v6863_v20  ;;  %v4643_v26 = vadd.f32 %v5654_v52, %v4642_v27  ;;  %v4906_v6 = vadd.f32 %v4905_v34, %v4872_v5 }
 0x804   :  { %v4917_v24 = vadd.f32 %v4906_v6, %v7077_v9  ;;  %v4647_v55 = vsel %vm4646_vm8, %v5654_v52, %v4643_v26  ;;  %v7079_v26 = vld [vmem:[#allocation37_spill] sm:$0xff] }
 0x805   :  { %v4837_v57 = vpop.f32.mrf.mxu3  ;;  %v4652_v23 = vsel %vm4649_vm9, %v4651_v17, %v4647_v55  ;;  %v4801_v62 = vpop.f32.mrf.mxu2 }
 0x806   :  { %v5656_v54 = vpop.eup %5655  ;;  %v4838_v56 = vadd.f32 %v4837_v57, %v4797_v35  ;;  %v5397_v59 = vmul.f32 -1.442695, %v4917_v24  ;;  %v4802_v52 = vadd.f32 %v4801_v62, %v4763_v28  ;;  %v4879_v39 = vpop.f32.mrf.mxu0 }
 0x807   :  { %v4929_v12 = vadd.f32 1.0, %v5656_v54 }
 0x808   :  { %v5658_v29 = vpop.eup %5657  ;;  %v4876_v48 = vadd.f32 %v4875_v18, %v4838_v56 }
 0x809   :  { %5659 = vrcp.f32 %v4929_v12  ;;  %v4659_v34 = vmul.f32 %v5658_v29, %v4652_v23  ;;  %v4943_v9 = vand.u32 2147483648, %v4929_v12  ;;  %vm4937_vm11 = vweird.f32 %v4929_v12 }
 0x80a   :  { %5661 = vpow2.f32 %v5397_v59  ;;  %v4910_v45 = vadd.f32 %v4909_v16, %v4876_v48  ;;  %v4941_v57 = vand.u32 2147483647, %v4929_v12 }
 0x80b   :  { %v6874_v58 = vand.u32 4294901760, %v4659_v34  ;;  %v4944_v56 = vor.u32 1.1754944e-38, %v4943_v9 }
 0x80c   :  { %v4918_v43 = vadd.f32 %v4910_v45, %v7078_v36  ;;  %vm4942_vm13 = vcmp.eq.f32.partialorder %v4941_v57, 8.507059e+37 }
 0x80d   :  { %v4843_v53 = vpop.f32.mrf.mxu3  ;;  %5003 = vmatpush.msra.mxu2 %v6874_v58  ;;  %5138 = vmatpush.msrb.mxu1 %v6874_v58  ;;  %v6880_v2 = vsub.f32 %v4659_v34, %v6874_v58 }
 0x80e   :  { %v5398_v4 = vmul.f32 -1.442695, %v4918_v43  ;;  %v4844_v1 = vadd.f32 %v4843_v53, %v4802_v52 }
 0x80f   :  { %v5660_v49 = vpop.eup %5659  ;;  %5098 = vmatpush.msrb.mxu0 %v6880_v2  ;;  %v5055_v14 = vand.u32 4294901760, %v6880_v2 }
 0x810   :  { %v5662_v41 = vpop.eup %5661  ;;  %v4933_v46 = vmul.f32 %v5660_v49, %v4929_v12  ;;  %5663 = vpow2.f32 %v5398_v4  ;;  %v4880_v8 = vadd.f32 %v4879_v39, %v4844_v1  ;;  %vm4938_vm10 = vweird.f32 %v5660_v49 }
 0x811   :  { %v4930_v63 = vadd.f32 1.0, %v5662_v41  ;;  %v5056_v27 = vsub.f32 %v6880_v2, %v5055_v14  ;;  %vm4939_vm12 = vmor %vm4937_vm11, %vm4938_vm10 }
 0x812   :  { %v4934_v5 = vsub.f32 1.0, %v4933_v46  ;;  %v4914_v40 = vadd.f32 %v4913_v11, %v4880_v8 }
 0x813   :  { %5665 = vrcp.f32 %v4930_v63  ;;  %v5057_v18 = vand.u32 4294901760, %v5056_v27  ;;  %v4958_v48 = vand.u32 2147483648, %v4930_v63  ;;  %v4956_v34 = vand.u32 2147483647, %v4930_v63 }
 0x814   :  { %v4919_v30 = vadd.f32 %v4914_v40, %v7079_v26  ;;  %v4935_v6 = vmul.f32 %v5660_v49, %v4934_v5  ;;  %vm4952_vm15 = vweird.f32 %v4930_v63 }
 0x815   :  { %5058 = vmatpush.msra.mxu3 %v5057_v18  ;;  %v4959_v12 = vor.u32 1.1754944e-38, %v4958_v48  ;;  %vm4957_vm1 = vcmp.eq.f32.partialorder %v4956_v34, 8.507059e+37 }
 0x816   :  { %v5664_v0 = vpop.eup %5663  ;;  %v4936_v35 = vadd.f32 %v5660_v49, %v4935_v6  ;;  %5667 = vtanh.f32 %v4919_v30 }
 0x817   :  { %v4931_v24 = vadd.f32 1.0, %v5664_v0 }
 0x818   :  { %v4940_v55 = vsel %vm4939_vm12, %v5660_v49, %v4936_v35 }
 0x819   :  { %v5666_v16 = vpop.eup %5665  ;;  %5669 = vrcp.f32 %v4931_v24  ;;  %v4945_v29 = vsel %vm4942_vm13, %v4944_v56, %v4940_v55  ;;  %v4973_v11 = vand.u32 2147483648, %v4931_v24  ;;  %vm4967_vm3 = vweird.f32 %v4931_v24 }
 0x81a   :  { %v4948_v54 = vmul.f32 %v5666_v16, %v4930_v63  ;;  %vm4953_vm14 = vweird.f32 %v5666_v16  ;;  %v4971_v41 = vand.u32 2147483647, %v4931_v24 }
 0x81b   :  { %vm4954_vm0 = vmor %vm4952_vm15, %vm4953_vm14  ;;  %v4974_v8 = vor.u32 1.1754944e-38, %v4973_v11 }
 0x81c   :  { %v5668_v17 = vpop.eup %5667  ;;  %v4949_v59 = vsub.f32 1.0, %v4948_v54  ;;  %vm4972_vm5 = vcmp.eq.f32.partialorder %v4971_v41, 8.507059e+37 }
 0x81d   :  { %v4979_v23 = vmul.f32 %v5668_v17, %v4945_v29 }
 0x81e   :  { %v4950_v62 = vmul.f32 %v5666_v16, %v4949_v59 }
 0x81f   :  { %v5670_v28 = vpop.eup %5669 }
 0x820   :  { %v4963_v45 = vmul.f32 %v5670_v28, %v4931_v24  ;;  %v4951_v52 = vadd.f32 %v5666_v16, %v4950_v62  ;;  %vm4968_vm2 = vweird.f32 %v5670_v28 }
 0x821   :  { %vm4969_vm4 = vmor %vm4967_vm3, %vm4968_vm2 }
 0x822   :  { %v4964_v36 = vsub.f32 1.0, %v4963_v45  ;;  %v4955_v43 = vsel %vm4954_vm0, %v5666_v16, %v4951_v52 }
 0x823   :  { %v4960_v53 = vsel %vm4957_vm1, %v4959_v12, %v4955_v43 }
 0x824   :  { %v4978_v39 = vmul.f32 %v4960_v53, %v6779_v38  ;;  %v4965_v4 = vmul.f32 %v5670_v28, %v4964_v36 }
 0x826   :  { %v4980_v1 = vadd.f32 %v4979_v23, %v4978_v39  ;;  %v4966_v49 = vadd.f32 %v5670_v28, %v4965_v4 }
 0x828   :  { %5671 = vtanh.f32 %v4980_v1  ;;  %v4970_v46 = vsel %vm4969_vm4, %v5670_v28, %v4966_v49 }
 0x829   :  { %v4975_v27 = vsel %vm4972_vm5, %v4974_v8, %v4970_v46 }
 0x82e   :  { %v5672_v63 = vpop.eup %5671 }
 0x82f   :  { %v4982_v5 = vmul.f32 %v5672_v63, %v4975_v27 }
 0x831   :  { %v5004_v40 = vand.u32 4294901760, %v4982_v5 }
 0x833   :  { %5005 = vmatpush.msra.mxu2 %v5004_v40  ;;  %5140 = vmatpush.msrb.mxu1 %v5004_v40  ;;  %v5060_v26 = vsub.f32 %v4982_v5, %v5004_v40 }
 0x834   :  { %5011 = vmatmul.f32.vlgmr.msra.gmra.mxu2 %v6080_v25  ;;  %5144 = vmatmul.f32.vlgmr.msrb.gmra.mxu1 %v6066_v61  ;;  %v5313_v61 = vld [vmem:[#allocation7] sm:$0x1] }
 0x835   :  { %5183 = vmatpush.msrb.mxu2 %v5055_v14  ;;  %5101 = vmatpush.msrb.mxu0 %v5060_v26  ;;  %v5061_v38 = vand.u32 4294901760, %v5060_v26 }
 0x836   :  { %5104 = vmatmul.f32.vlgmr.msrb.gmra.mxu0 %v6060_v50  ;;  %v5778_v50 = vmov 28  }
 0x837   :  { %5187 = vmatpush.msrb.mxu2 %v5061_v38  ;;  %v5062_v30 = vsub.f32 %v5060_v26, %v5061_v38  ;;  %5424 = vset.pattern.permute.xlu0 %v5778_v50 }
 0x838   :  { %5330 = vperm.xlu0 %5424, %v5313_v61  }
 0x839   :  { %v5063_v6 = vand.u32 4294901760, %v5062_v30 }
 0x83b   :  { %5064 = vmatpush.msra.mxu3 %v5063_v6 }
 0x83c   :  { %5019 = vmatmul.f32.gmra.mxu2 %v6096_v42  ;;  %5066 = vmatmul.f32.vlgmr.msra.gmra.mxu3 %v6055_v44 }
 0x83d   :  { %5150 = vmatmul.f32.gmra.mxu1 %v6078_v33  ;;  %5220 = vmatpush.msrb.mxu3 %v6874_v58  ;;  %v5312_v33 = vld [vmem:[#allocation7] sm:$0xff] }
 0x83e   :  { %5109 = vmatmul.f32.gmra.mxu0 %v6072_v19  ;;  %v5779_v19 = vmov 27  }
 0x83f   :  { %5222 = vmatpush.msrb.mxu3 %v5004_v40  ;;  %5423 = vset.pattern.permute.xlu2 %v5779_v19 }
 0x840   :  { %5318 = vperm.xlu2 %5423, %v5312_v33  }
 0x844   :  { %5027 = vmatmul.f32.gmra.mxu2 %v6112_v13  ;;  %5070 = vmatmul.f32.gmra.mxu3 %v6069_v32 }
 0x845   :  { %5156 = vmatmul.f32.gmra.mxu1 %v6094_v51 }
 0x846   :  { %5114 = vmatmul.f32.gmra.mxu0 %v6086_v60 }
 0x84c   :  { %5035 = vmatmul.f32.gmra.mxu2 %v6120_v21  ;;  %5074 = vmatmul.f32.gmra.mxu3 %v6082_v10 }
 0x84d   :  { %5162 = vmatmul.f32.gmra.mxu1 %v6110_v37 }
 0x84e   :  { %5119 = vmatmul.f32.gmra.mxu0 %v6103_v47 }
 0x854   :  { %5078 = vmatmul.f32.gmra.mxu3 %v6098_v31  ;;  %5189 = vmatmul.f32.vlgmr.msrb.gmra.mxu2 %v6055_v44 }
 0x85c   :  { %5193 = vmatmul.f32.gmra.mxu2 %v6069_v32  ;;  %5224 = vmatmul.f32.vlgmr.msrb.gmra.mxu3 %v6055_v44 }
 0x864   :  { %5197 = vmatmul.f32.gmra.mxu2 %v6082_v10  ;;  %5228 = vmatmul.f32.gmra.mxu3 %v6069_v32 }
 0x86c   :  { %5201 = vmatmul.f32.gmra.mxu2 %v6098_v31  ;;  %5232 = vmatmul.f32.gmra.mxu3 %v6082_v10 }
 0x874   :  { %5236 = vmatmul.f32.gmra.mxu3 %v6098_v31 }
 0x8b1   :  { %v5145_v13 = vpop.f32.mrf.mxu1 }
 0x8b3   :  { %v5105_v32 = vpop.f32.mrf.mxu0 }
 0x8b7   :  { %v5012_v25 = vpop.f32.mrf.mxu2 }
 0x8ba   :  { %v5151_v0 = vpop.f32.mrf.mxu1 }
 0x8bb   :  { %v5110_v31 = vpop.f32.mrf.mxu0 }
 0x8bf   :  { %v5020_v60 = vpop.f32.mrf.mxu2  ;;  %v5067_v51 = vpop.f32.mrf.mxu3 }
 0x8c0   :  { %v5068_v21 = vadd.f32 %v5067_v51, %v5012_v25 }
 0x8c2   :  { %v5106_v2 = vadd.f32 %v5105_v32, %v5068_v21  ;;  %v5157_v34 = vpop.f32.mrf.mxu1 }
 0x8c3   :  { %v5115_v59 = vpop.f32.mrf.mxu0 }
 0x8c4   :  { %v5146_v18 = vadd.f32 %v5145_v13, %v5106_v2 }
 0x8c7   :  { %v5028_v44 = vpop.f32.mrf.mxu2  ;;  %v5071_v42 = vpop.f32.mrf.mxu3 }
 0x8c8   :  { %v5072_v14 = vadd.f32 %v5071_v42, %v5020_v60 }
 0x8ca   :  { %v5111_v57 = vadd.f32 %v5110_v31, %v5072_v14  ;;  %v5163_v41 = vpop.f32.mrf.mxu1 }
 0x8cc   :  { %v5152_v56 = vadd.f32 %v5151_v0, %v5111_v57 }
 0x8cf   :  { %v5036_v47 = vpop.f32.mrf.mxu2  ;;  %v5075_v37 = vpop.f32.mrf.mxu3 }
 0x8d0   :  { %v5076_v54 = vadd.f32 %v5075_v37, %v5028_v44 }
 0x8d2   :  { %v5116_v23 = vadd.f32 %v5115_v59, %v5076_v54 }
 0x8d4   :  { %v5158_v36 = vadd.f32 %v5157_v34, %v5116_v23 }
 0x8d7   :  { %v5079_v58 = vpop.f32.mrf.mxu3  ;;  %v5190_v10 = vpop.f32.mrf.mxu2 }
 0x8d8   :  { %v5191_v35 = vadd.f32 %v5190_v10, %v5146_v18  ;;  %v5080_v12 = vadd.f32 %v5079_v58, %v5036_v47 }
 0x8df   :  { %v5194_v9 = vpop.f32.mrf.mxu2  ;;  %v5225_v24 = vpop.f32.mrf.mxu3 }
 0x8e0   :  { %v5226_v16 = vadd.f32 %v5225_v24, %v5191_v35  ;;  %v5195_v29 = vadd.f32 %v5194_v9, %v5152_v56 }
 0x8e2   :  { %v5240_v55 = vadd.f32 %v5226_v16, %v7070_v15  ;;  %v5120_v15 = vpop.f32.mrf.mxu0 }
 0x8e3   :  { %v5121_v1 = vadd.f32 %v5120_v15, %v5080_v12 }
 0x8e4   :  { %v5399_v17 = vmul.f32 -1.442695, %v5240_v55 }
 0x8e5   :  { %v5164_v63 = vadd.f32 %v5163_v41, %v5121_v1 }
 0x8e6   :  { %5673 = vpow2.f32 %v5399_v17 }
 0x8e7   :  { %v5229_v48 = vpop.f32.mrf.mxu3  ;;  %v5198_v28 = vpop.f32.mrf.mxu2 }
 0x8e8   :  { %v5230_v62 = vadd.f32 %v5229_v48, %v5195_v29  ;;  %v5199_v39 = vadd.f32 %v5198_v28, %v5158_v36 }
 0x8ea   :  { %v5241_v45 = vadd.f32 %v5230_v62, %v7071_v22  ;;  %v5319_v62 = vpop.permute.xlu2 %5318 }
 0x8ec   :  { %v5674_v52 = vpop.eup %5673  ;;  %v5400_v43 = vmul.f32 -1.442695, %v5241_v45 }
 0x8ed   :  { %v5253_v53 = vadd.f32 1.0, %v5674_v52 }
 0x8ee   :  { %5675 = vpow2.f32 %v5400_v43  ;;  %v5331_v43 = vpop.permute.xlu0 %5330 }
 0x8ef   :  { %5677 = vrcp.f32 %v5253_v53  ;;  %v5233_v4 = vpop.f32.mrf.mxu3  ;;  %v5202_v46 = vpop.f32.mrf.mxu2  ;;  %vm5261_vm7 = vweird.f32 %v5253_v53  ;;  %v5267_v42 = vand.u32 2147483648, %v5253_v53  ;;  %v5265_v37 = vand.u32 2147483647, %v5253_v53 }
 0x8f0   :  { %v5234_v49 = vadd.f32 %v5233_v4, %v5199_v39  ;;  %v5203_v26 = vadd.f32 %v5202_v46, %v5164_v63 }
 0x8f1   :  { %v5268_v10 = vor.u32 1.1754944e-38, %v5267_v42  ;;  %vm5266_vm12 = vcmp.eq.f32.partialorder %v5265_v37, 8.507059e+37 }
 0x8f2   :  { %v5242_v11 = vadd.f32 %v5234_v49, %v7072_v3 }
 0x8f4   :  { %v5676_v8 = vpop.eup %5675  ;;  %v5401_v27 = vmul.f32 -1.442695, %v5242_v11 }
 0x8f5   :  { %v5678_v22 = vpop.eup %5677  ;;  %v5254_v5 = vadd.f32 1.0, %v5676_v8 }
 0x8f6   :  { %v5257_v40 = vmul.f32 %v5678_v22, %v5253_v53  ;;  %5679 = vpow2.f32 %v5401_v27  ;;  %vm5262_vm6 = vweird.f32 %v5678_v22 }
 0x8f7   :  { %5681 = vrcp.f32 %v5254_v5  ;;  %v5237_v38 = vpop.f32.mrf.mxu3  ;;  %v5282_v44 = vand.u32 2147483648, %v5254_v5  ;;  %v5280_v32 = vand.u32 2147483647, %v5254_v5  ;;  %vm5263_vm9 = vmor %vm5261_vm7, %vm5262_vm6  ;;  %vm5276_vm10 = vweird.f32 %v5254_v5 }
 0x8f8   :  { %v5258_v30 = vsub.f32 1.0, %v5257_v40  ;;  %v5238_v6 = vadd.f32 %v5237_v38, %v5203_v26 }
 0x8f9   :  { %v5283_v2 = vor.u32 1.1754944e-38, %v5282_v44  ;;  %vm5281_vm13 = vcmp.eq.f32.partialorder %v5280_v32, 8.507059e+37 }
 0x8fa   :  { %v5243_v50 = vadd.f32 %v5238_v6, %v7073_v7  ;;  %v5259_v19 = vmul.f32 %v5678_v22, %v5258_v30 }
 0x8fc   :  { %v5680_v61 = vpop.eup %5679  ;;  %5683 = vtanh.f32 %v5243_v50  ;;  %v5260_v51 = vadd.f32 %v5678_v22, %v5259_v19 }
 0x8fd   :  { %v5682_v33 = vpop.eup %5681  ;;  %v5255_v3 = vadd.f32 1.0, %v5680_v61 }
 0x8fe   :  { %v5272_v25 = vmul.f32 %v5682_v33, %v5254_v5  ;;  %vm5277_vm8 = vweird.f32 %v5682_v33  ;;  %v5264_v7 = vsel %vm5263_vm9, %v5678_v22, %v5260_v51 }
 0x8ff   :  { %5685 = vrcp.f32 %v5255_v3  ;;  %vm5278_vm11 = vmor %vm5276_vm10, %vm5277_vm8  ;;  %v5269_v18 = vsel %vm5266_vm12, %v5268_v10, %v5264_v7  ;;  %v5297_v54 = vand.u32 2147483648, %v5255_v3  ;;  %vm5291_vm15 = vweird.f32 %v5255_v3 }
 0x900   :  { %v5273_v60 = vsub.f32 1.0, %v5272_v25  ;;  %v5295_v56 = vand.u32 2147483647, %v5255_v3 }
 0x901   :  { %v5298_v59 = vor.u32 1.1754944e-38, %v5297_v54 }
 0x902   :  { %v5274_v47 = vmul.f32 %v5682_v33, %v5273_v60  ;;  %v5684_v13 = vpop.eup %5683  ;;  %vm5296_vm1 = vcmp.eq.f32.partialorder %v5295_v56, 8.507059e+37 }
 0x903   :  { %v5303_v35 = vmul.f32 %v5684_v13, %v5269_v18 }
 0x904   :  { %v5275_v21 = vadd.f32 %v5682_v33, %v5274_v47 }
 0x905   :  { %v5686_v58 = vpop.eup %5685 }
 0x906   :  { %v5279_v31 = vsel %vm5278_vm11, %v5682_v33, %v5275_v21  ;;  %v5287_v14 = vmul.f32 %v5686_v58, %v5255_v3  ;;  %vm5292_vm14 = vweird.f32 %v5686_v58 }
 0x907   :  { %v5284_v0 = vsel %vm5281_vm13, %v5283_v2, %v5279_v31  ;;  %vm5293_vm0 = vmor %vm5291_vm15, %vm5292_vm14 }
 0x908   :  { %v5288_v9 = vsub.f32 1.0, %v5287_v14  ;;  %v5302_v24 = vmul.f32 %v5284_v0, %v6863_v20 }
 0x90a   :  { %v5289_v57 = vmul.f32 %v5686_v58, %v5288_v9  ;;  %v5304_v16 = vadd.f32 %v5303_v35, %v5302_v24 }
 0x90c   :  { %v5290_v55 = vadd.f32 %v5686_v58, %v5289_v57  ;;  %5687 = vtanh.f32 %v5304_v16 }
 0x90e   :  { %v5294_v17 = vsel %vm5293_vm0, %v5686_v58, %v5290_v55 }
 0x90f   :  { %v5299_v48 = vsel %vm5296_vm1, %v5298_v59, %v5294_v17 }
 0x912   :  { %v5688_v29 = vpop.eup %5687 }
 0x913   :  { %v5306_v23 = vmul.f32 %v5688_v29, %v5299_v48 }
 0x915   :  { %v5315_v34 = vmax.f32 %v5306_v23, 0.0 }
 0x917   :  { %v5321_v28 = vmul.f32 %v5319_v62, %v5315_v34 }
 0x919   :  { %v5322_v45 = vrot.slane %v5321_v28, 4 }
 0x91b   :  { %v5323_v20 = vadd.f32 %v5322_v45, %v5321_v28 }
 0x91d   :  { %v5324_v52 = vrot.slane %v5323_v20, 2 }
 0x91f   :  { %v5325_v12 = vadd.f32 %v5324_v52, %v5323_v20 }
 0x921   :  { %v5326_v36 = vrot.slane %v5325_v12, 1 }
 0x923   :  { %v5327_v53 = vadd.f32 %v5326_v36, %v5325_v12 }
 0x925   :  { %v5333_v39 = vadd.f32 %v5331_v43, %v5327_v53 }
 0x927   :  { %v5334_v15 = vmax.f32 %v5333_v39, 0.0 }
 0x929   :  { %5335 = vst [vmem:[#allocation9] sm:$0x1] %v5334_v15 }
 0x92a   :  { %5346 = dma.vmem_to_hbm [thread:$0]  %s5342_s23, 16, %s5344_s26, [#allocation6]  }
 0x92b   :  { %5765 = dma.done.wait [#allocation6], 16  }
 0x92c   :  { %5766 = vsyncadd [#allocation6], 4294967280 }
 0x92d   :  { %5351 = vsyncpa [#allocation5], 1 }
 0x92e   :  { %5352 = vsyncpa [#allocation8], 1 }
 0x92f   :  { %5353 = vsyncpa [#allocation6], 1 }

</bundles_post_ra>
